<compile_context>
chip_gen: v5e
topology: v5e:2x2
jax: 0.10.0
libtpu: 0.0.40
codegen_flags: <defaults>
</compile_context>

<pallas_src>
import jax
import jax.numpy as jnp
from jax import lax
from jax.experimental import pallas as pl
from jax.experimental.pallas import tpu as pltpu


_VMEM_LIMIT = 32 * 1024 * 1024  # valid on v5e/v6e/v7x; raises v5e's 16 MiB default


def _mosaic_params():
    return pltpu.CompilerParams(dimension_semantics=("parallel",),
                                vmem_limit_bytes=_VMEM_LIMIT)


# --------------------------------------------------------------------------- #
# Kernel 1: per-image channel sum / sum-of-squares for BatchNorm (train mode).
# --------------------------------------------------------------------------- #
def _batch_stats(x_nhwc):
    n, h, w, c = x_nhwc.shape

    def kernel(x_ref, s_ref, q_ref):
        x = x_ref[0]                                        # (h, w, c) f32
        s_ref[...] = jnp.sum(x, axis=(0, 1), keepdims=True)
        q_ref[...] = jnp.sum(x * x, axis=(0, 1), keepdims=True)

    return pl.pallas_call(
        kernel,
        out_shape=(jax.ShapeDtypeStruct((n, 1, c), jnp.float32),
                   jax.ShapeDtypeStruct((n, 1, c), jnp.float32)),
        grid=(n,),
        in_specs=[pl.BlockSpec((1, h, w, c), lambda i: (i, 0, 0, 0))],
        out_specs=(pl.BlockSpec((1, 1, c), lambda i: (i, 0, 0)),
                   pl.BlockSpec((1, 1, c), lambda i: (i, 0, 0))),
        compiler_params=_mosaic_params(),
    )(x_nhwc)


def _bn_affine(sums, sqs, count, gamma, beta, eps):
    s = jnp.sum(sums, axis=0)[0]
    q = jnp.sum(sqs, axis=0)[0]
    mean = s / count
    var = q / count - mean * mean           # biased variance (train-mode BN)
    scale = gamma * lax.rsqrt(var + eps)
    bias = beta - mean * scale
    return scale[None, :].astype(jnp.float32), bias[None, :].astype(jnp.float32)


# --------------------------------------------------------------------------- #
# Kernels 2/3: fused BN(scale,bias)+ReLU -> 3x3 conv (pad=1), one image per
# grid step.  Optional fusions: 1x1 stride-s shortcut conv (w_sc), residual
# add (residual), per-image sum / sum-of-squares of the conv output
# (want_stats, feeds the next BatchNorm).
# --------------------------------------------------------------------------- #
def _fused_bn_relu_conv3x3(x_nhwc, scale, bias, w_taps, *, stride,
                           w_sc=None, residual=None, want_stats=False):
    assert stride in (1, 2)
    n, h, w, cin = x_nhwc.shape
    cout = w_taps.shape[-1]
    ho = (h - 1) // stride + 1
    wo = (w - 1) // stride + 1
    assert (ho * wo) % 8 == 0 or n == 1, "output rows per image must be 8-aligned"

    # Spatial zero pad (pad=1).  For stride 2, split into the 4 even/odd phases
    # so every in-kernel tap is a contiguous (unit-stride) window load.
    xp = jnp.pad(x_nhwc, ((0, 0), (1, 1), (1, 1), (0, 0)))
    if stride == 1:
        taps = [(0, dh, dw, dh, dw) for dh in range(3) for dw in range(3)]
        x_taps = xp[:, None]                                 # (n,1,h+2,w+2,cin)
    else:
        hp = xp.shape[1] + (xp.shape[1] & 1)
        wp = xp.shape[2] + (xp.shape[2] & 1)
        xp = jnp.pad(xp, ((0, 0), (0, hp - xp.shape[1]),
                          (0, wp - xp.shape[2]), (0, 0)))
        x_taps = jnp.stack([xp[:, a::2, b::2, :] for a in range(2)
                            for b in range(2)], axis=1)      # (n,4,hp/2,wp/2,cin)
        taps = [((dh % 2) * 2 + (dw % 2), dh // 2, dw // 2, dh, dw)
                for dh in range(3) for dw in range(3)]
    t, hs, ws = x_taps.shape[1:4]
    x_taps = x_taps.reshape(n * t, hs, ws, cin)

    has_sc = w_sc is not None
    has_res = residual is not None

    def kernel(*refs):
        it = iter(refs)
        x_ref, sc_ref, b_ref, w_ref = next(it), next(it), next(it), next(it)
        wsc_ref = next(it) if has_sc else None
        r_ref = next(it) if has_res else None
        o_ref = next(it)
        sco_ref = next(it) if has_sc else None
        sum_ref = next(it) if want_stats else None
        sq_ref = next(it) if want_stats else None

        scl = sc_ref[...]                                    # (1, cin)
        bia = b_ref[...]
        hoi = lax.broadcasted_iota(jnp.int32, (ho, wo, 1), 0)
        woi = lax.broadcasted_iota(jnp.int32, (ho, wo, 1), 1)

        acc = None
        for k, (tix, oh, ow, dh, dw) in enumerate(taps):
            xs = x_ref[tix, pl.ds(oh, ho), pl.ds(ow, wo), :]     # (ho, wo, cin)
            a = jnp.maximum(xs * scl + bia, 0.0)                 # BN + ReLU (f32)
            ih = dh + stride * hoi                               # padded coords
            iw = dw + stride * woi
            inside = (ih >= 1) & (ih <= h) & (iw >= 1) & (iw <= w)
            a = jnp.where(inside, a, 0.0)                        # re-zero pad ring
            amat = a.reshape(ho * wo, cin).astype(jnp.bfloat16)  # MXU operand
            part = jnp.dot(amat, w_ref[k], preferred_element_type=jnp.float32)
            acc = part if acc is None else acc + part
            if has_sc and dh == 1 and dw == 1:
                # tap (1,1) is exactly the 1x1 / stride-s shortcut conv input
                sco_ref[...] = jnp.dot(amat, wsc_ref[...],
                                       preferred_element_type=jnp.float32)
        if want_stats:                                           # BN2 statistics
            sum_ref[...] = jnp.sum(acc, axis=0, keepdims=True)[None]
            sq_ref[...] = jnp.sum(acc * acc, axis=0, keepdims=True)[None]
        if has_res:
            acc = acc + r_ref[...]                               # fused residual
        o_ref[...] = acc

    in_specs = [pl.BlockSpec((t, hs, ws, cin), lambda i: (i, 0, 0, 0)),
                pl.BlockSpec((1, cin), lambda i: (0, 0)),
                pl.BlockSpec((1, cin), lambda i: (0, 0)),
                pl.BlockSpec((9, cin, cout), lambda i: (0, 0, 0))]
    args = [x_taps, scale, bias, w_taps]
    if has_sc:
        in_specs.append(pl.BlockSpec((cin, cout), lambda i: (0, 0)))
        args.append(w_sc)
    if has_res:
        in_specs.append(pl.BlockSpec((ho * wo, cout), lambda i: (i, 0)))
        args.append(residual)

    out_shape = [jax.ShapeDtypeStruct((n * ho * wo, cout), jnp.float32)]
    out_specs = [pl.BlockSpec((ho * wo, cout), lambda i: (i, 0))]
    if has_sc:
        out_shape.append(jax.ShapeDtypeStruct((n * ho * wo, cout), jnp.float32))
        out_specs.append(pl.BlockSpec((ho * wo, cout), lambda i: (i, 0)))
    if want_stats:
        out_shape += [jax.ShapeDtypeStruct((n, 1, cout), jnp.float32)] * 2
        out_specs += [pl.BlockSpec((1, 1, cout), lambda i: (i, 0, 0)),
                      pl.BlockSpec((1, 1, cout), lambda i: (i, 0, 0))]

    outs = pl.pallas_call(
        kernel,
        out_shape=tuple(out_shape),
        grid=(n,),
        in_specs=in_specs,
        out_specs=tuple(out_specs),
        compiler_params=_mosaic_params(),
    )(*args)
    outs = list(outs) if isinstance(outs, (tuple, list)) else [outs]
    out = outs.pop(0)
    shortcut = outs.pop(0) if has_sc else None
    stats = (outs.pop(0), outs.pop(0)) if want_stats else None
    return out, shortcut, stats


# ------------------------------ parameters ---------------------------------- #

def _conv3x3_to_taps(wt):
    # (Cout, Cin, 3, 3) -> (9, Cin, Cout) bf16 tap matrices (k = dh*3 + dw).
    cout, cin = wt.shape[0], wt.shape[1]
    return jnp.transpose(wt, (2, 3, 1, 0)).reshape(9, cin, cout).astype(jnp.bfloat16)


def spectral_normalize(wt, key, n_iter=16):
    # Deterministic approximation of nn.utils.parametrizations.spectral_norm:
    # power iteration on the weight reshaped to (Cout, -1), then w / sigma.
    cout = wt.shape[0]
    wm = wt.reshape(cout, -1)
    u = jax.random.normal(key, (cout,), jnp.float32)
    u = u / (jnp.linalg.norm(u) + 1e-12)
    v = None
    for _ in range(n_iter):
        v = wm.T @ u
        v = v / (jnp.linalg.norm(v) + 1e-12)
        u = wm @ v
        u = u / (jnp.linalg.norm(u) + 1e-12)
    sigma = u @ (wm @ v)
    return wt / sigma


def kaiming_normal(key, shape):
    fan_in = shape[1] * shape[2] * shape[3]
    return jax.random.normal(key, shape, jnp.float32) * jnp.sqrt(2.0 / fan_in)


def init_params(key, in_planes, out_planes):
    k1, k2, k3, ku1, ku2, ku3 = jax.random.split(key, 6)
    w1 = spectral_normalize(kaiming_normal(k1, (out_planes, in_planes, 3, 3)), ku1)
    w2 = spectral_normalize(kaiming_normal(k2, (out_planes, out_planes, 3, 3)), ku2)
    params = {
        "w1_taps": _conv3x3_to_taps(w1),
        "w2_taps": _conv3x3_to_taps(w2),
        "gamma1": jnp.ones((in_planes,), jnp.float32),
        "beta1": jnp.zeros((in_planes,), jnp.float32),
        "gamma2": jnp.ones((out_planes,), jnp.float32),
        "beta2": jnp.zeros((out_planes,), jnp.float32),
    }
    if in_planes != out_planes:
        wsc = spectral_normalize(kaiming_normal(k3, (out_planes, in_planes, 1, 1)), ku3)
        params["wsc_mat"] = jnp.transpose(wsc[:, :, 0, 0]).astype(jnp.bfloat16)
    return params


# -------------------------------- forward ----------------------------------- #

def basic_block_forward(x_nchw, params, stride, equal_in_out, dropout_p=0.0,
                        eps=1e-5):
    if equal_in_out:
        assert stride == 1, "identity shortcut requires stride == 1"
    x = jnp.transpose(x_nchw, (0, 2, 3, 1)).astype(jnp.float32)      # NHWC
    n, h, w, cin = x.shape
    cout = params["w1_taps"].shape[-1]
    ho = (h - 1) // stride + 1
    wo = (w - 1) // stride + 1

    # BN1 batch statistics (train mode, biased variance).
    s1, q1 = _batch_stats(x)
    scale1, bias1 = _bn_affine(s1, q1, n * h * w,
                               params["gamma1"], params["beta1"], eps)

    # conv1: BN1+ReLU prologue, 3x3 stride-s conv, BN2-stats epilogue, and
    # (when in_planes != out_planes) the fused 1x1 stride-s shortcut conv.
    w_sc = None if equal_in_out else params["wsc_mat"]
    c1, shortcut, (s2, q2) = _fused_bn_relu_conv3x3(
        x, scale1, bias1, params["w1_taps"], stride=stride, w_sc=w_sc,
        want_stats=True)
    if equal_in_out:
        shortcut = x.reshape(n * h * w, cin)     # raw-input residual

    scale2, bias2 = _bn_affine(s2, q2, n * ho * wo,
                               params["gamma2"], params["beta2"], eps)
    # TODO(synk): F.dropout2d for dropout_p > 0 not implemented (default 0.0 => no-op).

    # conv2: BN2+ReLU prologue, 3x3 stride-1 conv, fused residual add.
    out2d, _, _ = _fused_bn_relu_conv3x3(
        c1.reshape(n, ho, wo, cout), scale2, bias2, params["w2_taps"],
        stride=1, residual=shortcut)
    out = out2d.reshape(n, ho, wo, cout)
    return jnp.transpose(out, (0, 3, 1, 2))                          # NCHW


# -------------------------- pure-JAX reference ------------------------------ #

def _reference_forward(x_nchw, params, stride, equal_in_out, eps=1e-5):
    x = jnp.transpose(x_nchw, (0, 2, 3, 1)).astype(jnp.float32)
    cin = x.shape[-1]
    cout = params["w1_taps"].shape[-1]
    w1 = params["w1_taps"].astype(jnp.float32).reshape(3, 3, cin, cout)
    w2 = params["w2_taps"].astype(jnp.float32).reshape(3, 3, cout, cout)

    def bn_relu(z, gamma, beta):
        mean = jnp.mean(z, axis=(0, 1, 2))
        var = jnp.mean((z - mean) ** 2, axis=(0, 1, 2))
        return jnp.maximum((z - mean) * lax.rsqrt(var + eps) * gamma + beta, 0.0)

    def conv(z, wk, s, pad):
        return lax.conv_general_dilated(
            z, wk, window_strides=(s, s), padding=((pad, pad), (pad, pad)),
            dimension_numbers=("NHWC", "HWIO", "NHWC"))

    h1 = bn_relu(x, params["gamma1"], params["beta1"])
    c1 = conv(h1, w1, stride, 1)
    h2 = bn_relu(c1, params["gamma2"], params["beta2"])
    c2 = conv(h2, w2, 1, 1)
    if equal_in_out:
        sc = x
    else:
        wsc = params["wsc_mat"].astype(jnp.float32).reshape(1, 1, cin, cout)
        sc = conv(h1, wsc, stride, 0)
    return jnp.transpose(c2 + sc, (0, 3, 1, 2))


if __name__ == "__main__":
    key = jax.random.PRNGKey(0)
    kx, kp1, kp2 = jax.random.split(key, 3)
    x = jax.random.normal(kx, (2, 4, 16, 16), jnp.float32)

    fwd = jax.jit(basic_block_forward, static_argnames=("stride", "equal_in_out"))

    # Case 1: in_planes != out_planes, stride 2 (fused convShortcut path).
    params = init_params(kp1, in_planes=4, out_planes=8)
    y1 = fwd(x, params, stride=2, equal_in_out=False)
    jax.block_until_ready(y1)
    assert y1.shape == (2, 8, 8, 8)
    y1_ref = _reference_forward(x, params, 2, False)
    e1 = float(jnp.max(jnp.abs(y1 - y1_ref)))
    assert e1 < 0.1 * (float(jnp.max(jnp.abs(y1_ref))) + 1.0), f"mismatch {e1}"

    # Case 2: in_planes == out_planes, stride 1 (identity shortcut path).
    params_eq = init_params(kp2, in_planes=4, out_planes=4)
    y2 = fwd(x, params_eq, stride=1, equal_in_out=True)
    jax.block_until_ready(y2)
    assert y2.shape == (2, 4, 16, 16)
    y2_ref = _reference_forward(x, params_eq, 1, True)
    e2 = float(jnp.max(jnp.abs(y2 - y2_ref)))
    assert e2 < 0.1 * (float(jnp.max(jnp.abs(y2_ref))) + 1.0), f"mismatch {e2}"

    print("KERNEL_OK")
</pallas_src>

<mosaic_0001>
module attributes {stable_mosaic.version = 11 : i64} {
  func.func @kernel(%arg0: i32, %arg1: memref<1x16x16x4xf32, #tpu.memory_space<vmem>>, %arg2: memref<1x1x4xf32, #tpu.memory_space<vmem>>, %arg3: memref<1x1x4xf32, #tpu.memory_space<vmem>>) attributes {dimension_semantics = [#tpu.dimension_semantics<parallel>], iteration_bounds = array<i64: 2>, scalar_prefetch = 0 : i64, scratch_operands = 0 : i64, tpu.core_type = #tpu.core_type<tc>, window_params = [{transform_indices = @transform_0, window_bounds = array<i64: 1, 16, 16, 4>}, {transform_indices = @transform_1, window_bounds = array<i64: 1, 1, 4>}, {transform_indices = @transform_2, window_bounds = array<i64: 1, 1, 4>}]} {
    %c0 = arith.constant 0 : index
    %c0_0 = arith.constant 0 : index
    %c0_1 = arith.constant 0 : index
    %c0_2 = arith.constant 0 : index
    %0 = vector.load %arg1[%c0, %c0_0, %c0_1, %c0_2] : memref<1x16x16x4xf32, #tpu.memory_space<vmem>>, vector<1x16x16x4xf32>
    %1 = vector.shape_cast %0 : vector<1x16x16x4xf32> to vector<16x16x4xf32>
    %cst = arith.constant dense<0.000000e+00> : vector<4xf32>
    %2 = vector.multi_reduction <add>, %1, %cst [0, 1] : vector<16x16x4xf32> to vector<4xf32>
    %3 = vector.shape_cast %2 : vector<4xf32> to vector<1x1x4xf32>
    %c0_3 = arith.constant 0 : index
    %c0_4 = arith.constant 0 : index
    %c0_5 = arith.constant 0 : index
    %4 = vector.load %arg2[%c0_3, %c0_4, %c0_5] : memref<1x1x4xf32, #tpu.memory_space<vmem>>, vector<1x1x4xf32>
    tpu.vector_store %arg2[%c0_3, %c0_4, %c0_5], %3 {strides = array<i32>} : memref<1x1x4xf32, #tpu.memory_space<vmem>>, vector<1x1x4xf32>,
    %5 = arith.mulf %1, %1 : vector<16x16x4xf32>
    %cst_6 = arith.constant dense<0.000000e+00> : vector<4xf32>
    %6 = vector.multi_reduction <add>, %5, %cst_6 [0, 1] : vector<16x16x4xf32> to vector<4xf32>
    %7 = vector.shape_cast %6 : vector<4xf32> to vector<1x1x4xf32>
    %c0_7 = arith.constant 0 : index
    %c0_8 = arith.constant 0 : index
    %c0_9 = arith.constant 0 : index
    %8 = vector.load %arg3[%c0_7, %c0_8, %c0_9] : memref<1x1x4xf32, #tpu.memory_space<vmem>>, vector<1x1x4xf32>
    tpu.vector_store %arg3[%c0_7, %c0_8, %c0_9], %7 {strides = array<i32>} : memref<1x1x4xf32, #tpu.memory_space<vmem>>, vector<1x1x4xf32>,
    return
  }
  func.func @transform_0(%arg0: i32) -> (i32, i32, i32, i32) {
    %c0_i32 = arith.constant 0 : i32
    %c0_i32_0 = arith.constant 0 : i32
    %c0_i32_1 = arith.constant 0 : i32
    %c0_i32_2 = arith.constant 0 : i32
    return %arg0, %c0_i32, %c0_i32_0, %c0_i32_1 : i32, i32, i32, i32
  }
  func.func @transform_1(%arg0: i32) -> (i32, i32, i32) {
    %c0_i32 = arith.constant 0 : i32
    %c0_i32_0 = arith.constant 0 : i32
    %c0_i32_1 = arith.constant 0 : i32
    return %arg0, %c0_i32, %c0_i32_0 : i32, i32, i32
  }
  func.func @transform_2(%arg0: i32) -> (i32, i32, i32) {
    %c0_i32 = arith.constant 0 : i32
    %c0_i32_0 = arith.constant 0 : i32
    %c0_i32_1 = arith.constant 0 : i32
    return %arg0, %c0_i32, %c0_i32_0 : i32, i32, i32
  }
}

module attributes {stable_mosaic.version = 11 : i64} {
  func.func @kernel(%arg0: i32, %arg1: memref<4x9x9x4xf32, #tpu.memory_space<vmem>>, %arg2: memref<1x4xf32, #tpu.memory_space<vmem>>, %arg3: memref<1x4xf32, #tpu.memory_space<vmem>>, %arg4: memref<9x4x8xbf16, #tpu.memory_space<vmem>>, %arg5: memref<4x8xbf16, #tpu.memory_space<vmem>>, %arg6: memref<64x8xf32, #tpu.memory_space<vmem>>, %arg7: memref<64x8xf32, #tpu.memory_space<vmem>>, %arg8: memref<1x1x8xf32, #tpu.memory_space<vmem>>, %arg9: memref<1x1x8xf32, #tpu.memory_space<vmem>>) attributes {dimension_semantics = [#tpu.dimension_semantics<parallel>], iteration_bounds = array<i64: 2>, scalar_prefetch = 0 : i64, scratch_operands = 0 : i64, tpu.core_type = #tpu.core_type<tc>, window_params = [{transform_indices = @transform_0, window_bounds = array<i64: 4, 9, 9, 4>}, {pipeline_mode = #tpu.pipeline_mode<synchronous>, transform_indices = @transform_1, window_bounds = array<i64: 1, 4>}, {pipeline_mode = #tpu.pipeline_mode<synchronous>, transform_indices = @transform_2, window_bounds = array<i64: 1, 4>}, {pipeline_mode = #tpu.pipeline_mode<synchronous>, transform_indices = @transform_3, window_bounds = array<i64: 9, 4, 8>}, {pipeline_mode = #tpu.pipeline_mode<synchronous>, transform_indices = @transform_4, window_bounds = array<i64: 4, 8>}, {transform_indices = @transform_5, window_bounds = array<i64: 64, 8>}, {transform_indices = @transform_6, window_bounds = array<i64: 64, 8>}, {transform_indices = @transform_7, window_bounds = array<i64: 1, 1, 8>}, {transform_indices = @transform_8, window_bounds = array<i64: 1, 1, 8>}]} {
    %c0 = arith.constant 0 : index
    %c0_0 = arith.constant 0 : index
    %0 = vector.load %arg2[%c0, %c0_0] : memref<1x4xf32, #tpu.memory_space<vmem>>, vector<1x4xf32>
    %c0_1 = arith.constant 0 : index
    %c0_2 = arith.constant 0 : index
    %1 = vector.load %arg3[%c0_1, %c0_2] : memref<1x4xf32, #tpu.memory_space<vmem>>, vector<1x4xf32>
    %2 = tpu.iota {dimensions = array<i32: 0>} : vector<8x8x1xi32>
    %3 = tpu.iota {dimensions = array<i32: 1>} : vector<8x8x1xi32>
    %c0_3 = arith.constant 0 : index
    %c0_4 = arith.constant 0 : index
    %c0_5 = arith.constant 0 : index
    %c0_6 = arith.constant 0 : index
    %4 = vector.load %arg1[%c0_3, %c0_4, %c0_5, %c0_6] : memref<4x9x9x4xf32, #tpu.memory_space<vmem>>, vector<1x8x8x4xf32>
    %5 = vector.shape_cast %4 : vector<1x8x8x4xf32> to vector<8x8x4xf32>
    %6 = vector.shape_cast %0 : vector<1x4xf32> to vector<1x1x4xf32>
    %7 = vector.broadcast %6 : vector<1x1x4xf32> to vector<8x8x4xf32>
    %8 = arith.mulf %5, %7 : vector<8x8x4xf32>
    %9 = vector.shape_cast %1 : vector<1x4xf32> to vector<1x1x4xf32>
    %10 = vector.broadcast %9 : vector<1x1x4xf32> to vector<8x8x4xf32>
    %11 = arith.addf %8, %10 : vector<8x8x4xf32>
    %cst = arith.constant 0.000000e+00 : f32
    %12 = vector.broadcast %cst : f32 to vector<8x8x4xf32>
    %13 = arith.maximumf %11, %12 : vector<8x8x4xf32>
    %c2_i32 = arith.constant 2 : i32
    %14 = vector.broadcast %c2_i32 : i32 to vector<8x8x1xi32>
    %15 = arith.muli %14, %2 : vector<8x8x1xi32>
    %c0_i32 = arith.constant 0 : i32
    %16 = vector.broadcast %c0_i32 : i32 to vector<8x8x1xi32>
    %17 = arith.addi %16, %15 : vector<8x8x1xi32>
    %c2_i32_7 = arith.constant 2 : i32
    %18 = vector.broadcast %c2_i32_7 : i32 to vector<8x8x1xi32>
    %19 = arith.muli %18, %3 : vector<8x8x1xi32>
    %c0_i32_8 = arith.constant 0 : i32
    %20 = vector.broadcast %c0_i32_8 : i32 to vector<8x8x1xi32>
    %21 = arith.addi %20, %19 : vector<8x8x1xi32>
    %c1_i32 = arith.constant 1 : i32
    %22 = vector.broadcast %c1_i32 : i32 to vector<8x8x1xi32>
    %23 = arith.cmpi sge, %17, %22 : vector<8x8x1xi32>
    %c16_i32 = arith.constant 16 : i32
    %24 = vector.broadcast %c16_i32 : i32 to vector<8x8x1xi32>
    %25 = arith.cmpi sle, %17, %24 : vector<8x8x1xi32>
    %26 = arith.andi %23, %25 : vector<8x8x1xi1>
    %c1_i32_9 = arith.constant 1 : i32
    %27 = vector.broadcast %c1_i32_9 : i32 to vector<8x8x1xi32>
    %28 = arith.cmpi sge, %21, %27 : vector<8x8x1xi32>
    %29 = arith.andi %26, %28 : vector<8x8x1xi1>
    %c16_i32_10 = arith.constant 16 : i32
    %30 = vector.broadcast %c16_i32_10 : i32 to vector<8x8x1xi32>
    %31 = arith.cmpi sle, %21, %30 : vector<8x8x1xi32>
    %32 = arith.andi %29, %31 : vector<8x8x1xi1>
    %cst_11 = arith.constant 0.000000e+00 : f32
    %33 = vector.shape_cast %32 : vector<8x8x1xi1> to vector<8x8x1xi1>
    %34 = vector.broadcast %33 : vector<8x8x1xi1> to vector<8x8x4xi1>
    %35 = vector.broadcast %cst_11 : f32 to vector<8x8x4xf32>
    %36 = arith.select %34, %13, %35 : vector<8x8x4xi1>, vector<8x8x4xf32>
    %37 = vector.shape_cast %36 : vector<8x8x4xf32> to vector<64x4xf32>
    %38 = arith.truncf %37 : vector<64x4xf32> to vector<64x4xbf16>
    %c0_12 = arith.constant 0 : index
    %c0_13 = arith.constant 0 : index
    %c0_14 = arith.constant 0 : index
    %39 = vector.load %arg4[%c0_12, %c0_13, %c0_14] : memref<9x4x8xbf16, #tpu.memory_space<vmem>>, vector<1x4x8xbf16>
    %40 = vector.shape_cast %39 : vector<1x4x8xbf16> to vector<4x8xbf16>
    %cst_15 = arith.constant dense<0.000000e+00> : vector<64x8xf32>
    %41 = tpu.matmul %38, %40, %cst_15 {dimension_numbers = #tpu.dot_dimension_numbers<[1], [0], [0], [1], [0, 0, 1, 1], [], []>} : vector<64x4xbf16>, vector<4x8xbf16>, vector<64x8xf32> -> vector<64x8xf32>
    %c1 = arith.constant 1 : index
    %c0_16 = arith.constant 0 : index
    %c0_17 = arith.constant 0 : index
    %c0_18 = arith.constant 0 : index
    %42 = vector.load %arg1[%c1, %c0_16, %c0_17, %c0_18] : memref<4x9x9x4xf32, #tpu.memory_space<vmem>>, vector<1x8x8x4xf32>
    %43 = vector.shape_cast %42 : vector<1x8x8x4xf32> to vector<8x8x4xf32>
    %44 = vector.shape_cast %0 : vector<1x4xf32> to vector<1x1x4xf32>
    %45 = vector.broadcast %44 : vector<1x1x4xf32> to vector<8x8x4xf32>
    %46 = arith.mulf %43, %45 : vector<8x8x4xf32>
    %47 = vector.shape_cast %1 : vector<1x4xf32> to vector<1x1x4xf32>
    %48 = vector.broadcast %47 : vector<1x1x4xf32> to vector<8x8x4xf32>
    %49 = arith.addf %46, %48 : vector<8x8x4xf32>
    %cst_19 = arith.constant 0.000000e+00 : f32
    %50 = vector.broadcast %cst_19 : f32 to vector<8x8x4xf32>
    %51 = arith.maximumf %49, %50 : vector<8x8x4xf32>
    %c2_i32_20 = arith.constant 2 : i32
    %52 = vector.broadcast %c2_i32_20 : i32 to vector<8x8x1xi32>
    %53 = arith.muli %52, %2 : vector<8x8x1xi32>
    %c0_i32_21 = arith.constant 0 : i32
    %54 = vector.broadcast %c0_i32_21 : i32 to vector<8x8x1xi32>
    %55 = arith.addi %54, %53 : vector<8x8x1xi32>
    %c2_i32_22 = arith.constant 2 : i32
    %56 = vector.broadcast %c2_i32_22 : i32 to vector<8x8x1xi32>
    %57 = arith.muli %56, %3 : vector<8x8x1xi32>
    %c1_i32_23 = arith.constant 1 : i32
    %58 = vector.broadcast %c1_i32_23 : i32 to vector<8x8x1xi32>
    %59 = arith.addi %58, %57 : vector<8x8x1xi32>
    %c1_i32_24 = arith.constant 1 : i32
    %60 = vector.broadcast %c1_i32_24 : i32 to vector<8x8x1xi32>
    %61 = arith.cmpi sge, %55, %60 : vector<8x8x1xi32>
    %c16_i32_25 = arith.constant 16 : i32
    %62 = vector.broadcast %c16_i32_25 : i32 to vector<8x8x1xi32>
    %63 = arith.cmpi sle, %55, %62 : vector<8x8x1xi32>
    %64 = arith.andi %61, %63 : vector<8x8x1xi1>
    %c1_i32_26 = arith.constant 1 : i32
    %65 = vector.broadcast %c1_i32_26 : i32 to vector<8x8x1xi32>
    %66 = arith.cmpi sge, %59, %65 : vector<8x8x1xi32>
    %67 = arith.andi %64, %66 : vector<8x8x1xi1>
    %c16_i32_27 = arith.constant 16 : i32
    %68 = vector.broadcast %c16_i32_27 : i32 to vector<8x8x1xi32>
    %69 = arith.cmpi sle, %59, %68 : vector<8x8x1xi32>
    %70 = arith.andi %67, %69 : vector<8x8x1xi1>
    %cst_28 = arith.constant 0.000000e+00 : f32
    %71 = vector.shape_cast %70 : vector<8x8x1xi1> to vector<8x8x1xi1>
    %72 = vector.broadcast %71 : vector<8x8x1xi1> to vector<8x8x4xi1>
    %73 = vector.broadcast %cst_28 : f32 to vector<8x8x4xf32>
    %74 = arith.select %72, %51, %73 : vector<8x8x4xi1>, vector<8x8x4xf32>
    %75 = vector.shape_cast %74 : vector<8x8x4xf32> to vector<64x4xf32>
    %76 = arith.truncf %75 : vector<64x4xf32> to vector<64x4xbf16>
    %c1_29 = arith.constant 1 : index
    %c0_30 = arith.constant 0 : index
    %c0_31 = arith.constant 0 : index
    %77 = vector.load %arg4[%c1_29, %c0_30, %c0_31] : memref<9x4x8xbf16, #tpu.memory_space<vmem>>, vector<1x4x8xbf16>
    %78 = vector.shape_cast %77 : vector<1x4x8xbf16> to vector<4x8xbf16>
    %cst_32 = arith.constant dense<0.000000e+00> : vector<64x8xf32>
    %79 = tpu.matmul %76, %78, %cst_32 {dimension_numbers = #tpu.dot_dimension_numbers<[1], [0], [0], [1], [0, 0, 1, 1], [], []>} : vector<64x4xbf16>, vector<4x8xbf16>, vector<64x8xf32> -> vector<64x8xf32>
    %80 = arith.addf %41, %79 : vector<64x8xf32>
    %c0_33 = arith.constant 0 : index
    %c0_34 = arith.constant 0 : index
    %c1_35 = arith.constant 1 : index
    %c0_36 = arith.constant 0 : index
    %81 = vector.load %arg1[%c0_33, %c0_34, %c1_35, %c0_36] : memref<4x9x9x4xf32, #tpu.memory_space<vmem>>, vector<1x8x8x4xf32>
    %82 = vector.shape_cast %81 : vector<1x8x8x4xf32> to vector<8x8x4xf32>
    %83 = vector.shape_cast %0 : vector<1x4xf32> to vector<1x1x4xf32>
    %84 = vector.broadcast %83 : vector<1x1x4xf32> to vector<8x8x4xf32>
    %85 = arith.mulf %82, %84 : vector<8x8x4xf32>
    %86 = vector.shape_cast %1 : vector<1x4xf32> to vector<1x1x4xf32>
    %87 = vector.broadcast %86 : vector<1x1x4xf32> to vector<8x8x4xf32>
    %88 = arith.addf %85, %87 : vector<8x8x4xf32>
    %cst_37 = arith.constant 0.000000e+00 : f32
    %89 = vector.broadcast %cst_37 : f32 to vector<8x8x4xf32>
    %90 = arith.maximumf %88, %89 : vector<8x8x4xf32>
    %c2_i32_38 = arith.constant 2 : i32
    %91 = vector.broadcast %c2_i32_38 : i32 to vector<8x8x1xi32>
    %92 = arith.muli %91, %2 : vector<8x8x1xi32>
    %c0_i32_39 = arith.constant 0 : i32
    %93 = vector.broadcast %c0_i32_39 : i32 to vector<8x8x1xi32>
    %94 = arith.addi %93, %92 : vector<8x8x1xi32>
    %c2_i32_40 = arith.constant 2 : i32
    %95 = vector.broadcast %c2_i32_40 : i32 to vector<8x8x1xi32>
    %96 = arith.muli %95, %3 : vector<8x8x1xi32>
    %c2_i32_41 = arith.constant 2 : i32
    %97 = vector.broadcast %c2_i32_41 : i32 to vector<8x8x1xi32>
    %98 = arith.addi %97, %96 : vector<8x8x1xi32>
    %c1_i32_42 = arith.constant 1 : i32
    %99 = vector.broadcast %c1_i32_42 : i32 to vector<8x8x1xi32>
    %100 = arith.cmpi sge, %94, %99 : vector<8x8x1xi32>
    %c16_i32_43 = arith.constant 16 : i32
    %101 = vector.broadcast %c16_i32_43 : i32 to vector<8x8x1xi32>
    %102 = arith.cmpi sle, %94, %101 : vector<8x8x1xi32>
    %103 = arith.andi %100, %102 : vector<8x8x1xi1>
    %c1_i32_44 = arith.constant 1 : i32
    %104 = vector.broadcast %c1_i32_44 : i32 to vector<8x8x1xi32>
    %105 = arith.cmpi sge, %98, %104 : vector<8x8x1xi32>
    %106 = arith.andi %103, %105 : vector<8x8x1xi1>
    %c16_i32_45 = arith.constant 16 : i32
    %107 = vector.broadcast %c16_i32_45 : i32 to vector<8x8x1xi32>
    %108 = arith.cmpi sle, %98, %107 : vector<8x8x1xi32>
    %109 = arith.andi %106, %108 : vector<8x8x1xi1>
    %cst_46 = arith.constant 0.000000e+00 : f32
    %110 = vector.shape_cast %109 : vector<8x8x1xi1> to vector<8x8x1xi1>
    %111 = vector.broadcast %110 : vector<8x8x1xi1> to vector<8x8x4xi1>
    %112 = vector.broadcast %cst_46 : f32 to vector<8x8x4xf32>
    %113 = arith.select %111, %90, %112 : vector<8x8x4xi1>, vector<8x8x4xf32>
    %114 = vector.shape_cast %113 : vector<8x8x4xf32> to vector<64x4xf32>
    %115 = arith.truncf %114 : vector<64x4xf32> to vector<64x4xbf16>
    %c2 = arith.constant 2 : index
    %c0_47 = arith.constant 0 : index
    %c0_48 = arith.constant 0 : index
    %116 = vector.load %arg4[%c2, %c0_47, %c0_48] : memref<9x4x8xbf16, #tpu.memory_space<vmem>>, vector<1x4x8xbf16>
    %117 = vector.shape_cast %116 : vector<1x4x8xbf16> to vector<4x8xbf16>
    %cst_49 = arith.constant dense<0.000000e+00> : vector<64x8xf32>
    %118 = tpu.matmul %115, %117, %cst_49 {dimension_numbers = #tpu.dot_dimension_numbers<[1], [0], [0], [1], [0, 0, 1, 1], [], []>} : vector<64x4xbf16>, vector<4x8xbf16>, vector<64x8xf32> -> vector<64x8xf32>
    %119 = arith.addf %80, %118 : vector<64x8xf32>
    %c2_50 = arith.constant 2 : index
    %c0_51 = arith.constant 0 : index
    %c0_52 = arith.constant 0 : index
    %c0_53 = arith.constant 0 : index
    %120 = vector.load %arg1[%c2_50, %c0_51, %c0_52, %c0_53] : memref<4x9x9x4xf32, #tpu.memory_space<vmem>>, vector<1x8x8x4xf32>
    %121 = vector.shape_cast %120 : vector<1x8x8x4xf32> to vector<8x8x4xf32>
    %122 = vector.shape_cast %0 : vector<1x4xf32> to vector<1x1x4xf32>
    %123 = vector.broadcast %122 : vector<1x1x4xf32> to vector<8x8x4xf32>
    %124 = arith.mulf %121, %123 : vector<8x8x4xf32>
    %125 = vector.shape_cast %1 : vector<1x4xf32> to vector<1x1x4xf32>
    %126 = vector.broadcast %125 : vector<1x1x4xf32> to vector<8x8x4xf32>
    %127 = arith.addf %124, %126 : vector<8x8x4xf32>
    %cst_54 = arith.constant 0.000000e+00 : f32
    %128 = vector.broadcast %cst_54 : f32 to vector<8x8x4xf32>
    %129 = arith.maximumf %127, %128 : vector<8x8x4xf32>
    %c2_i32_55 = arith.constant 2 : i32
    %130 = vector.broadcast %c2_i32_55 : i32 to vector<8x8x1xi32>
    %131 = arith.muli %130, %2 : vector<8x8x1xi32>
    %c1_i32_56 = arith.constant 1 : i32
    %132 = vector.broadcast %c1_i32_56 : i32 to vector<8x8x1xi32>
    %133 = arith.addi %132, %131 : vector<8x8x1xi32>
    %c2_i32_57 = arith.constant 2 : i32
    %134 = vector.broadcast %c2_i32_57 : i32 to vector<8x8x1xi32>
    %135 = arith.muli %134, %3 : vector<8x8x1xi32>
    %c0_i32_58 = arith.constant 0 : i32
    %136 = vector.broadcast %c0_i32_58 : i32 to vector<8x8x1xi32>
    %137 = arith.addi %136, %135 : vector<8x8x1xi32>
    %c1_i32_59 = arith.constant 1 : i32
    %138 = vector.broadcast %c1_i32_59 : i32 to vector<8x8x1xi32>
    %139 = arith.cmpi sge, %133, %138 : vector<8x8x1xi32>
    %c16_i32_60 = arith.constant 16 : i32
    %140 = vector.broadcast %c16_i32_60 : i32 to vector<8x8x1xi32>
    %141 = arith.cmpi sle, %133, %140 : vector<8x8x1xi32>
    %142 = arith.andi %139, %141 : vector<8x8x1xi1>
    %c1_i32_61 = arith.constant 1 : i32
    %143 = vector.broadcast %c1_i32_61 : i32 to vector<8x8x1xi32>
    %144 = arith.cmpi sge, %137, %143 : vector<8x8x1xi32>
    %145 = arith.andi %142, %144 : vector<8x8x1xi1>
    %c16_i32_62 = arith.constant 16 : i32
    %146 = vector.broadcast %c16_i32_62 : i32 to vector<8x8x1xi32>
    %147 = arith.cmpi sle, %137, %146 : vector<8x8x1xi32>
    %148 = arith.andi %145, %147 : vector<8x8x1xi1>
    %cst_63 = arith.constant 0.000000e+00 : f32
    %149 = vector.shape_cast %148 : vector<8x8x1xi1> to vector<8x8x1xi1>
    %150 = vector.broadcast %149 : vector<8x8x1xi1> to vector<8x8x4xi1>
    %151 = vector.broadcast %cst_63 : f32 to vector<8x8x4xf32>
    %152 = arith.select %150, %129, %151 : vector<8x8x4xi1>, vector<8x8x4xf32>
    %153 = vector.shape_cast %152 : vector<8x8x4xf32> to vector<64x4xf32>
    %154 = arith.truncf %153 : vector<64x4xf32> to vector<64x4xbf16>
    %c3 = arith.constant 3 : index
    %c0_64 = arith.constant 0 : index
    %c0_65 = arith.constant 0 : index
    %155 = vector.load %arg4[%c3, %c0_64, %c0_65] : memref<9x4x8xbf16, #tpu.memory_space<vmem>>, vector<1x4x8xbf16>
    %156 = vector.shape_cast %155 : vector<1x4x8xbf16> to vector<4x8xbf16>
    %cst_66 = arith.constant dense<0.000000e+00> : vector<64x8xf32>
    %157 = tpu.matmul %154, %156, %cst_66 {dimension_numbers = #tpu.dot_dimension_numbers<[1], [0], [0], [1], [0, 0, 1, 1], [], []>} : vector<64x4xbf16>, vector<4x8xbf16>, vector<64x8xf32> -> vector<64x8xf32>
    %158 = arith.addf %119, %157 : vector<64x8xf32>
    %c3_67 = arith.constant 3 : index
    %c0_68 = arith.constant 0 : index
    %c0_69 = arith.constant 0 : index
    %c0_70 = arith.constant 0 : index
    %159 = vector.load %arg1[%c3_67, %c0_68, %c0_69, %c0_70] : memref<4x9x9x4xf32, #tpu.memory_space<vmem>>, vector<1x8x8x4xf32>
    %160 = vector.shape_cast %159 : vector<1x8x8x4xf32> to vector<8x8x4xf32>
    %161 = vector.shape_cast %0 : vector<1x4xf32> to vector<1x1x4xf32>
    %162 = vector.broadcast %161 : vector<1x1x4xf32> to vector<8x8x4xf32>
    %163 = arith.mulf %160, %162 : vector<8x8x4xf32>
    %164 = vector.shape_cast %1 : vector<1x4xf32> to vector<1x1x4xf32>
    %165 = vector.broadcast %164 : vector<1x1x4xf32> to vector<8x8x4xf32>
    %166 = arith.addf %163, %165 : vector<8x8x4xf32>
    %cst_71 = arith.constant 0.000000e+00 : f32
    %167 = vector.broadcast %cst_71 : f32 to vector<8x8x4xf32>
    %168 = arith.maximumf %166, %167 : vector<8x8x4xf32>
    %c2_i32_72 = arith.constant 2 : i32
    %169 = vector.broadcast %c2_i32_72 : i32 to vector<8x8x1xi32>
    %170 = arith.muli %169, %2 : vector<8x8x1xi32>
    %c1_i32_73 = arith.constant 1 : i32
    %171 = vector.broadcast %c1_i32_73 : i32 to vector<8x8x1xi32>
    %172 = arith.addi %171, %170 : vector<8x8x1xi32>
    %c2_i32_74 = arith.constant 2 : i32
    %173 = vector.broadcast %c2_i32_74 : i32 to vector<8x8x1xi32>
    %174 = arith.muli %173, %3 : vector<8x8x1xi32>
    %c1_i32_75 = arith.constant 1 : i32
    %175 = vector.broadcast %c1_i32_75 : i32 to vector<8x8x1xi32>
    %176 = arith.addi %175, %174 : vector<8x8x1xi32>
    %c1_i32_76 = arith.constant 1 : i32
    %177 = vector.broadcast %c1_i32_76 : i32 to vector<8x8x1xi32>
    %178 = arith.cmpi sge, %172, %177 : vector<8x8x1xi32>
    %c16_i32_77 = arith.constant 16 : i32
    %179 = vector.broadcast %c16_i32_77 : i32 to vector<8x8x1xi32>
    %180 = arith.cmpi sle, %172, %179 : vector<8x8x1xi32>
    %181 = arith.andi %178, %180 : vector<8x8x1xi1>
    %c1_i32_78 = arith.constant 1 : i32
    %182 = vector.broadcast %c1_i32_78 : i32 to vector<8x8x1xi32>
    %183 = arith.cmpi sge, %176, %182 : vector<8x8x1xi32>
    %184 = arith.andi %181, %183 : vector<8x8x1xi1>
    %c16_i32_79 = arith.constant 16 : i32
    %185 = vector.broadcast %c16_i32_79 : i32 to vector<8x8x1xi32>
    %186 = arith.cmpi sle, %176, %185 : vector<8x8x1xi32>
    %187 = arith.andi %184, %186 : vector<8x8x1xi1>
    %cst_80 = arith.constant 0.000000e+00 : f32
    %188 = vector.shape_cast %187 : vector<8x8x1xi1> to vector<8x8x1xi1>
    %189 = vector.broadcast %188 : vector<8x8x1xi1> to vector<8x8x4xi1>
    %190 = vector.broadcast %cst_80 : f32 to vector<8x8x4xf32>
    %191 = arith.select %189, %168, %190 : vector<8x8x4xi1>, vector<8x8x4xf32>
    %192 = vector.shape_cast %191 : vector<8x8x4xf32> to vector<64x4xf32>
    %193 = arith.truncf %192 : vector<64x4xf32> to vector<64x4xbf16>
    %c4 = arith.constant 4 : index
    %c0_81 = arith.constant 0 : index
    %c0_82 = arith.constant 0 : index
    %194 = vector.load %arg4[%c4, %c0_81, %c0_82] : memref<9x4x8xbf16, #tpu.memory_space<vmem>>, vector<1x4x8xbf16>
    %195 = vector.shape_cast %194 : vector<1x4x8xbf16> to vector<4x8xbf16>
    %cst_83 = arith.constant dense<0.000000e+00> : vector<64x8xf32>
    %196 = tpu.matmul %193, %195, %cst_83 {dimension_numbers = #tpu.dot_dimension_numbers<[1], [0], [0], [1], [0, 0, 1, 1], [], []>} : vector<64x4xbf16>, vector<4x8xbf16>, vector<64x8xf32> -> vector<64x8xf32>
    %197 = arith.addf %158, %196 : vector<64x8xf32>
    %c0_84 = arith.constant 0 : index
    %c0_85 = arith.constant 0 : index
    %198 = vector.load %arg5[%c0_84, %c0_85] : memref<4x8xbf16, #tpu.memory_space<vmem>>, vector<4x8xbf16>
    %cst_86 = arith.constant dense<0.000000e+00> : vector<64x8xf32>
    %199 = tpu.matmul %193, %198, %cst_86 {dimension_numbers = #tpu.dot_dimension_numbers<[1], [0], [0], [1], [0, 0, 1, 1], [], []>} : vector<64x4xbf16>, vector<4x8xbf16>, vector<64x8xf32> -> vector<64x8xf32>
    %c0_87 = arith.constant 0 : index
    %c0_88 = arith.constant 0 : index
    %200 = vector.load %arg7[%c0_87, %c0_88] : memref<64x8xf32, #tpu.memory_space<vmem>>, vector<64x8xf32>
    tpu.vector_store %arg7[%c0_87, %c0_88], %199 {strides = array<i32>} : memref<64x8xf32, #tpu.memory_space<vmem>>, vector<64x8xf32>,
    %c2_89 = arith.constant 2 : index
    %c0_90 = arith.constant 0 : index
    %c1_91 = arith.constant 1 : index
    %c0_92 = arith.constant 0 : index
    %201 = vector.load %arg1[%c2_89, %c0_90, %c1_91, %c0_92] : memref<4x9x9x4xf32, #tpu.memory_space<vmem>>, vector<1x8x8x4xf32>
    %202 = vector.shape_cast %201 : vector<1x8x8x4xf32> to vector<8x8x4xf32>
    %203 = vector.shape_cast %0 : vector<1x4xf32> to vector<1x1x4xf32>
    %204 = vector.broadcast %203 : vector<1x1x4xf32> to vector<8x8x4xf32>
    %205 = arith.mulf %202, %204 : vector<8x8x4xf32>
    %206 = vector.shape_cast %1 : vector<1x4xf32> to vector<1x1x4xf32>
    %207 = vector.broadcast %206 : vector<1x1x4xf32> to vector<8x8x4xf32>
    %208 = arith.addf %205, %207 : vector<8x8x4xf32>
    %cst_93 = arith.constant 0.000000e+00 : f32
    %209 = vector.broadcast %cst_93 : f32 to vector<8x8x4xf32>
    %210 = arith.maximumf %208, %209 : vector<8x8x4xf32>
    %c2_i32_94 = arith.constant 2 : i32
    %211 = vector.broadcast %c2_i32_94 : i32 to vector<8x8x1xi32>
    %212 = arith.muli %211, %2 : vector<8x8x1xi32>
    %c1_i32_95 = arith.constant 1 : i32
    %213 = vector.broadcast %c1_i32_95 : i32 to vector<8x8x1xi32>
    %214 = arith.addi %213, %212 : vector<8x8x1xi32>
    %c2_i32_96 = arith.constant 2 : i32
    %215 = vector.broadcast %c2_i32_96 : i32 to vector<8x8x1xi32>
    %216 = arith.muli %215, %3 : vector<8x8x1xi32>
    %c2_i32_97 = arith.constant 2 : i32
    %217 = vector.broadcast %c2_i32_97 : i32 to vector<8x8x1xi32>
    %218 = arith.addi %217, %216 : vector<8x8x1xi32>
    %c1_i32_98 = arith.constant 1 : i32
    %219 = vector.broadcast %c1_i32_98 : i32 to vector<8x8x1xi32>
    %220 = arith.cmpi sge, %214, %219 : vector<8x8x1xi32>
    %c16_i32_99 = arith.constant 16 : i32
    %221 = vector.broadcast %c16_i32_99 : i32 to vector<8x8x1xi32>
    %222 = arith.cmpi sle, %214, %221 : vector<8x8x1xi32>
    %223 = arith.andi %220, %222 : vector<8x8x1xi1>
    %c1_i32_100 = arith.constant 1 : i32
    %224 = vector.broadcast %c1_i32_100 : i32 to vector<8x8x1xi32>
    %225 = arith.cmpi sge, %218, %224 : vector<8x8x1xi32>
    %226 = arith.andi %223, %225 : vector<8x8x1xi1>
    %c16_i32_101 = arith.constant 16 : i32
    %227 = vector.broadcast %c16_i32_101 : i32 to vector<8x8x1xi32>
    %228 = arith.cmpi sle, %218, %227 : vector<8x8x1xi32>
    %229 = arith.andi %226, %228 : vector<8x8x1xi1>
    %cst_102 = arith.constant 0.000000e+00 : f32
    %230 = vector.shape_cast %229 : vector<8x8x1xi1> to vector<8x8x1xi1>
    %231 = vector.broadcast %230 : vector<8x8x1xi1> to vector<8x8x4xi1>
    %232 = vector.broadcast %cst_102 : f32 to vector<8x8x4xf32>
    %233 = arith.select %231, %210, %232 : vector<8x8x4xi1>, vector<8x8x4xf32>
    %234 = vector.shape_cast %233 : vector<8x8x4xf32> to vector<64x4xf32>
    %235 = arith.truncf %234 : vector<64x4xf32> to vector<64x4xbf16>
    %c5 = arith.constant 5 : index
    %c0_103 = arith.constant 0 : index
    %c0_104 = arith.constant 0 : index
    %236 = vector.load %arg4[%c5, %c0_103, %c0_104] : memref<9x4x8xbf16, #tpu.memory_space<vmem>>, vector<1x4x8xbf16>
    %237 = vector.shape_cast %236 : vector<1x4x8xbf16> to vector<4x8xbf16>
    %cst_105 = arith.constant dense<0.000000e+00> : vector<64x8xf32>
    %238 = tpu.matmul %235, %237, %cst_105 {dimension_numbers = #tpu.dot_dimension_numbers<[1], [0], [0], [1], [0, 0, 1, 1], [], []>} : vector<64x4xbf16>, vector<4x8xbf16>, vector<64x8xf32> -> vector<64x8xf32>
    %239 = arith.addf %197, %238 : vector<64x8xf32>
    %c0_106 = arith.constant 0 : index
    %c1_107 = arith.constant 1 : index
    %c0_108 = arith.constant 0 : index
    %c0_109 = arith.constant 0 : index
    %240 = vector.load %arg1[%c0_106, %c1_107, %c0_108, %c0_109] : memref<4x9x9x4xf32, #tpu.memory_space<vmem>>, vector<1x8x8x4xf32>
    %241 = vector.shape_cast %240 : vector<1x8x8x4xf32> to vector<8x8x4xf32>
    %242 = vector.shape_cast %0 : vector<1x4xf32> to vector<1x1x4xf32>
    %243 = vector.broadcast %242 : vector<1x1x4xf32> to vector<8x8x4xf32>
    %244 = arith.mulf %241, %243 : vector<8x8x4xf32>
    %245 = vector.shape_cast %1 : vector<1x4xf32> to vector<1x1x4xf32>
    %246 = vector.broadcast %245 : vector<1x1x4xf32> to vector<8x8x4xf32>
    %247 = arith.addf %244, %246 : vector<8x8x4xf32>
    %cst_110 = arith.constant 0.000000e+00 : f32
    %248 = vector.broadcast %cst_110 : f32 to vector<8x8x4xf32>
    %249 = arith.maximumf %247, %248 : vector<8x8x4xf32>
    %c2_i32_111 = arith.constant 2 : i32
    %250 = vector.broadcast %c2_i32_111 : i32 to vector<8x8x1xi32>
    %251 = arith.muli %250, %2 : vector<8x8x1xi32>
    %c2_i32_112 = arith.constant 2 : i32
    %252 = vector.broadcast %c2_i32_112 : i32 to vector<8x8x1xi32>
    %253 = arith.addi %252, %251 : vector<8x8x1xi32>
    %c2_i32_113 = arith.constant 2 : i32
    %254 = vector.broadcast %c2_i32_113 : i32 to vector<8x8x1xi32>
    %255 = arith.muli %254, %3 : vector<8x8x1xi32>
    %c0_i32_114 = arith.constant 0 : i32
    %256 = vector.broadcast %c0_i32_114 : i32 to vector<8x8x1xi32>
    %257 = arith.addi %256, %255 : vector<8x8x1xi32>
    %c1_i32_115 = arith.constant 1 : i32
    %258 = vector.broadcast %c1_i32_115 : i32 to vector<8x8x1xi32>
    %259 = arith.cmpi sge, %253, %258 : vector<8x8x1xi32>
    %c16_i32_116 = arith.constant 16 : i32
    %260 = vector.broadcast %c16_i32_116 : i32 to vector<8x8x1xi32>
    %261 = arith.cmpi sle, %253, %260 : vector<8x8x1xi32>
    %262 = arith.andi %259, %261 : vector<8x8x1xi1>
    %c1_i32_117 = arith.constant 1 : i32
    %263 = vector.broadcast %c1_i32_117 : i32 to vector<8x8x1xi32>
    %264 = arith.cmpi sge, %257, %263 : vector<8x8x1xi32>
    %265 = arith.andi %262, %264 : vector<8x8x1xi1>
    %c16_i32_118 = arith.constant 16 : i32
    %266 = vector.broadcast %c16_i32_118 : i32 to vector<8x8x1xi32>
    %267 = arith.cmpi sle, %257, %266 : vector<8x8x1xi32>
    %268 = arith.andi %265, %267 : vector<8x8x1xi1>
    %cst_119 = arith.constant 0.000000e+00 : f32
    %269 = vector.shape_cast %268 : vector<8x8x1xi1> to vector<8x8x1xi1>
    %270 = vector.broadcast %269 : vector<8x8x1xi1> to vector<8x8x4xi1>
    %271 = vector.broadcast %cst_119 : f32 to vector<8x8x4xf32>
    %272 = arith.select %270, %249, %271 : vector<8x8x4xi1>, vector<8x8x4xf32>
    %273 = vector.shape_cast %272 : vector<8x8x4xf32> to vector<64x4xf32>
    %274 = arith.truncf %273 : vector<64x4xf32> to vector<64x4xbf16>
    %c6 = arith.constant 6 : index
    %c0_120 = arith.constant 0 : index
    %c0_121 = arith.constant 0 : index
    %275 = vector.load %arg4[%c6, %c0_120, %c0_121] : memref<9x4x8xbf16, #tpu.memory_space<vmem>>, vector<1x4x8xbf16>
    %276 = vector.shape_cast %275 : vector<1x4x8xbf16> to vector<4x8xbf16>
    %cst_122 = arith.constant dense<0.000000e+00> : vector<64x8xf32>
    %277 = tpu.matmul %274, %276, %cst_122 {dimension_numbers = #tpu.dot_dimension_numbers<[1], [0], [0], [1], [0, 0, 1, 1], [], []>} : vector<64x4xbf16>, vector<4x8xbf16>, vector<64x8xf32> -> vector<64x8xf32>
    %278 = arith.addf %239, %277 : vector<64x8xf32>
    %c1_123 = arith.constant 1 : index
    %c1_124 = arith.constant 1 : index
    %c0_125 = arith.constant 0 : index
    %c0_126 = arith.constant 0 : index
    %279 = vector.load %arg1[%c1_123, %c1_124, %c0_125, %c0_126] : memref<4x9x9x4xf32, #tpu.memory_space<vmem>>, vector<1x8x8x4xf32>
    %280 = vector.shape_cast %279 : vector<1x8x8x4xf32> to vector<8x8x4xf32>
    %281 = vector.shape_cast %0 : vector<1x4xf32> to vector<1x1x4xf32>
    %282 = vector.broadcast %281 : vector<1x1x4xf32> to vector<8x8x4xf32>
    %283 = arith.mulf %280, %282 : vector<8x8x4xf32>
    %284 = vector.shape_cast %1 : vector<1x4xf32> to vector<1x1x4xf32>
    %285 = vector.broadcast %284 : vector<1x1x4xf32> to vector<8x8x4xf32>
    %286 = arith.addf %283, %285 : vector<8x8x4xf32>
    %cst_127 = arith.constant 0.000000e+00 : f32
    %287 = vector.broadcast %cst_127 : f32 to vector<8x8x4xf32>
    %288 = arith.maximumf %286, %287 : vector<8x8x4xf32>
    %c2_i32_128 = arith.constant 2 : i32
    %289 = vector.broadcast %c2_i32_128 : i32 to vector<8x8x1xi32>
    %290 = arith.muli %289, %2 : vector<8x8x1xi32>
    %c2_i32_129 = arith.constant 2 : i32
    %291 = vector.broadcast %c2_i32_129 : i32 to vector<8x8x1xi32>
    %292 = arith.addi %291, %290 : vector<8x8x1xi32>
    %c2_i32_130 = arith.constant 2 : i32
    %293 = vector.broadcast %c2_i32_130 : i32 to vector<8x8x1xi32>
    %294 = arith.muli %293, %3 : vector<8x8x1xi32>
    %c1_i32_131 = arith.constant 1 : i32
    %295 = vector.broadcast %c1_i32_131 : i32 to vector<8x8x1xi32>
    %296 = arith.addi %295, %294 : vector<8x8x1xi32>
    %c1_i32_132 = arith.constant 1 : i32
    %297 = vector.broadcast %c1_i32_132 : i32 to vector<8x8x1xi32>
    %298 = arith.cmpi sge, %292, %297 : vector<8x8x1xi32>
    %c16_i32_133 = arith.constant 16 : i32
    %299 = vector.broadcast %c16_i32_133 : i32 to vector<8x8x1xi32>
    %300 = arith.cmpi sle, %292, %299 : vector<8x8x1xi32>
    %301 = arith.andi %298, %300 : vector<8x8x1xi1>
    %c1_i32_134 = arith.constant 1 : i32
    %302 = vector.broadcast %c1_i32_134 : i32 to vector<8x8x1xi32>
    %303 = arith.cmpi sge, %296, %302 : vector<8x8x1xi32>
    %304 = arith.andi %301, %303 : vector<8x8x1xi1>
    %c16_i32_135 = arith.constant 16 : i32
    %305 = vector.broadcast %c16_i32_135 : i32 to vector<8x8x1xi32>
    %306 = arith.cmpi sle, %296, %305 : vector<8x8x1xi32>
    %307 = arith.andi %304, %306 : vector<8x8x1xi1>
    %cst_136 = arith.constant 0.000000e+00 : f32
    %308 = vector.shape_cast %307 : vector<8x8x1xi1> to vector<8x8x1xi1>
    %309 = vector.broadcast %308 : vector<8x8x1xi1> to vector<8x8x4xi1>
    %310 = vector.broadcast %cst_136 : f32 to vector<8x8x4xf32>
    %311 = arith.select %309, %288, %310 : vector<8x8x4xi1>, vector<8x8x4xf32>
    %312 = vector.shape_cast %311 : vector<8x8x4xf32> to vector<64x4xf32>
    %313 = arith.truncf %312 : vector<64x4xf32> to vector<64x4xbf16>
    %c7 = arith.constant 7 : index
    %c0_137 = arith.constant 0 : index
    %c0_138 = arith.constant 0 : index
    %314 = vector.load %arg4[%c7, %c0_137, %c0_138] : memref<9x4x8xbf16, #tpu.memory_space<vmem>>, vector<1x4x8xbf16>
    %315 = vector.shape_cast %314 : vector<1x4x8xbf16> to vector<4x8xbf16>
    %cst_139 = arith.constant dense<0.000000e+00> : vector<64x8xf32>
    %316 = tpu.matmul %313, %315, %cst_139 {dimension_numbers = #tpu.dot_dimension_numbers<[1], [0], [0], [1], [0, 0, 1, 1], [], []>} : vector<64x4xbf16>, vector<4x8xbf16>, vector<64x8xf32> -> vector<64x8xf32>
    %317 = arith.addf %278, %316 : vector<64x8xf32>
    %c0_140 = arith.constant 0 : index
    %c1_141 = arith.constant 1 : index
    %c1_142 = arith.constant 1 : index
    %c0_143 = arith.constant 0 : index
    %318 = vector.load %arg1[%c0_140, %c1_141, %c1_142, %c0_143] : memref<4x9x9x4xf32, #tpu.memory_space<vmem>>, vector<1x8x8x4xf32>
    %319 = vector.shape_cast %318 : vector<1x8x8x4xf32> to vector<8x8x4xf32>
    %320 = vector.shape_cast %0 : vector<1x4xf32> to vector<1x1x4xf32>
    %321 = vector.broadcast %320 : vector<1x1x4xf32> to vector<8x8x4xf32>
    %322 = arith.mulf %319, %321 : vector<8x8x4xf32>
    %323 = vector.shape_cast %1 : vector<1x4xf32> to vector<1x1x4xf32>
    %324 = vector.broadcast %323 : vector<1x1x4xf32> to vector<8x8x4xf32>
    %325 = arith.addf %322, %324 : vector<8x8x4xf32>
    %cst_144 = arith.constant 0.000000e+00 : f32
    %326 = vector.broadcast %cst_144 : f32 to vector<8x8x4xf32>
    %327 = arith.maximumf %325, %326 : vector<8x8x4xf32>
    %c2_i32_145 = arith.constant 2 : i32
    %328 = vector.broadcast %c2_i32_145 : i32 to vector<8x8x1xi32>
    %329 = arith.muli %328, %2 : vector<8x8x1xi32>
    %c2_i32_146 = arith.constant 2 : i32
    %330 = vector.broadcast %c2_i32_146 : i32 to vector<8x8x1xi32>
    %331 = arith.addi %330, %329 : vector<8x8x1xi32>
    %c2_i32_147 = arith.constant 2 : i32
    %332 = vector.broadcast %c2_i32_147 : i32 to vector<8x8x1xi32>
    %333 = arith.muli %332, %3 : vector<8x8x1xi32>
    %c2_i32_148 = arith.constant 2 : i32
    %334 = vector.broadcast %c2_i32_148 : i32 to vector<8x8x1xi32>
    %335 = arith.addi %334, %333 : vector<8x8x1xi32>
    %c1_i32_149 = arith.constant 1 : i32
    %336 = vector.broadcast %c1_i32_149 : i32 to vector<8x8x1xi32>
    %337 = arith.cmpi sge, %331, %336 : vector<8x8x1xi32>
    %c16_i32_150 = arith.constant 16 : i32
    %338 = vector.broadcast %c16_i32_150 : i32 to vector<8x8x1xi32>
    %339 = arith.cmpi sle, %331, %338 : vector<8x8x1xi32>
    %340 = arith.andi %337, %339 : vector<8x8x1xi1>
    %c1_i32_151 = arith.constant 1 : i32
    %341 = vector.broadcast %c1_i32_151 : i32 to vector<8x8x1xi32>
    %342 = arith.cmpi sge, %335, %341 : vector<8x8x1xi32>
    %343 = arith.andi %340, %342 : vector<8x8x1xi1>
    %c16_i32_152 = arith.constant 16 : i32
    %344 = vector.broadcast %c16_i32_152 : i32 to vector<8x8x1xi32>
    %345 = arith.cmpi sle, %335, %344 : vector<8x8x1xi32>
    %346 = arith.andi %343, %345 : vector<8x8x1xi1>
    %cst_153 = arith.constant 0.000000e+00 : f32
    %347 = vector.shape_cast %346 : vector<8x8x1xi1> to vector<8x8x1xi1>
    %348 = vector.broadcast %347 : vector<8x8x1xi1> to vector<8x8x4xi1>
    %349 = vector.broadcast %cst_153 : f32 to vector<8x8x4xf32>
    %350 = arith.select %348, %327, %349 : vector<8x8x4xi1>, vector<8x8x4xf32>
    %351 = vector.shape_cast %350 : vector<8x8x4xf32> to vector<64x4xf32>
    %352 = arith.truncf %351 : vector<64x4xf32> to vector<64x4xbf16>
    %c8 = arith.constant 8 : index
    %c0_154 = arith.constant 0 : index
    %c0_155 = arith.constant 0 : index
    %353 = vector.load %arg4[%c8, %c0_154, %c0_155] : memref<9x4x8xbf16, #tpu.memory_space<vmem>>, vector<1x4x8xbf16>
    %354 = vector.shape_cast %353 : vector<1x4x8xbf16> to vector<4x8xbf16>
    %cst_156 = arith.constant dense<0.000000e+00> : vector<64x8xf32>
    %355 = tpu.matmul %352, %354, %cst_156 {dimension_numbers = #tpu.dot_dimension_numbers<[1], [0], [0], [1], [0, 0, 1, 1], [], []>} : vector<64x4xbf16>, vector<4x8xbf16>, vector<64x8xf32> -> vector<64x8xf32>
    %356 = arith.addf %317, %355 : vector<64x8xf32>
    %cst_157 = arith.constant dense<0.000000e+00> : vector<8xf32>
    %357 = vector.multi_reduction <add>, %356, %cst_157 [0] : vector<64x8xf32> to vector<8xf32>
    %358 = vector.shape_cast %357 : vector<8xf32> to vector<1x8xf32>
    %359 = vector.shape_cast %358 : vector<1x8xf32> to vector<1x1x8xf32>
    %c0_158 = arith.constant 0 : index
    %c0_159 = arith.constant 0 : index
    %c0_160 = arith.constant 0 : index
    %360 = vector.load %arg8[%c0_158, %c0_159, %c0_160] : memref<1x1x8xf32, #tpu.memory_space<vmem>>, vector<1x1x8xf32>
    tpu.vector_store %arg8[%c0_158, %c0_159, %c0_160], %359 {strides = array<i32>} : memref<1x1x8xf32, #tpu.memory_space<vmem>>, vector<1x1x8xf32>,
    %361 = arith.mulf %356, %356 : vector<64x8xf32>
    %cst_161 = arith.constant dense<0.000000e+00> : vector<8xf32>
    %362 = vector.multi_reduction <add>, %361, %cst_161 [0] : vector<64x8xf32> to vector<8xf32>
    %363 = vector.shape_cast %362 : vector<8xf32> to vector<1x8xf32>
    %364 = vector.shape_cast %363 : vector<1x8xf32> to vector<1x1x8xf32>
    %c0_162 = arith.constant 0 : index
    %c0_163 = arith.constant 0 : index
    %c0_164 = arith.constant 0 : index
    %365 = vector.load %arg9[%c0_162, %c0_163, %c0_164] : memref<1x1x8xf32, #tpu.memory_space<vmem>>, vector<1x1x8xf32>
    tpu.vector_store %arg9[%c0_162, %c0_163, %c0_164], %364 {strides = array<i32>} : memref<1x1x8xf32, #tpu.memory_space<vmem>>, vector<1x1x8xf32>,
    %c0_165 = arith.constant 0 : index
    %c0_166 = arith.constant 0 : index
    %366 = vector.load %arg6[%c0_165, %c0_166] : memref<64x8xf32, #tpu.memory_space<vmem>>, vector<64x8xf32>
    tpu.vector_store %arg6[%c0_165, %c0_166], %356 {strides = array<i32>} : memref<64x8xf32, #tpu.memory_space<vmem>>, vector<64x8xf32>,
    return
  }
  func.func @transform_0(%arg0: i32) -> (i32, i32, i32, i32) {
    %c0_i32 = arith.constant 0 : i32
    %c0_i32_0 = arith.constant 0 : i32
    %c0_i32_1 = arith.constant 0 : i32
    %c0_i32_2 = arith.constant 0 : i32
    return %arg0, %c0_i32, %c0_i32_0, %c0_i32_1 : i32, i32, i32, i32
  }
  func.func @transform_1(%arg0: i32) -> (i32, i32) {
    %c0_i32 = arith.constant 0 : i32
    %c0_i32_0 = arith.constant 0 : i32
    %c0_i32_1 = arith.constant 0 : i32
    return %c0_i32, %c0_i32_0 : i32, i32
  }
  func.func @transform_2(%arg0: i32) -> (i32, i32) {
    %c0_i32 = arith.constant 0 : i32
    %c0_i32_0 = arith.constant 0 : i32
    %c0_i32_1 = arith.constant 0 : i32
    return %c0_i32, %c0_i32_0 : i32, i32
  }
  func.func @transform_3(%arg0: i32) -> (i32, i32, i32) {
    %c0_i32 = arith.constant 0 : i32
    %c0_i32_0 = arith.constant 0 : i32
    %c0_i32_1 = arith.constant 0 : i32
    %c0_i32_2 = arith.constant 0 : i32
    return %c0_i32, %c0_i32_0, %c0_i32_1 : i32, i32, i32
  }
  func.func @transform_4(%arg0: i32) -> (i32, i32) {
    %c0_i32 = arith.constant 0 : i32
    %c0_i32_0 = arith.constant 0 : i32
    %c0_i32_1 = arith.constant 0 : i32
    return %c0_i32, %c0_i32_0 : i32, i32
  }
  func.func @transform_5(%arg0: i32) -> (i32, i32) {
    %c0_i32 = arith.constant 0 : i32
    %c0_i32_0 = arith.constant 0 : i32
    return %arg0, %c0_i32 : i32, i32
  }
  func.func @transform_6(%arg0: i32) -> (i32, i32) {
    %c0_i32 = arith.constant 0 : i32
    %c0_i32_0 = arith.constant 0 : i32
    return %arg0, %c0_i32 : i32, i32
  }
  func.func @transform_7(%arg0: i32) -> (i32, i32, i32) {
    %c0_i32 = arith.constant 0 : i32
    %c0_i32_0 = arith.constant 0 : i32
    %c0_i32_1 = arith.constant 0 : i32
    return %arg0, %c0_i32, %c0_i32_0 : i32, i32, i32
  }
  func.func @transform_8(%arg0: i32) -> (i32, i32, i32) {
    %c0_i32 = arith.constant 0 : i32
    %c0_i32_0 = arith.constant 0 : i32
    %c0_i32_1 = arith.constant 0 : i32
    return %arg0, %c0_i32, %c0_i32_0 : i32, i32, i32
  }
}

module attributes {stable_mosaic.version = 11 : i64} {
  func.func @kernel(%arg0: i32, %arg1: memref<1x10x10x8xf32, #tpu.memory_space<vmem>>, %arg2: memref<1x8xf32, #tpu.memory_space<vmem>>, %arg3: memref<1x8xf32, #tpu.memory_space<vmem>>, %arg4: memref<9x8x8xbf16, #tpu.memory_space<vmem>>, %arg5: memref<64x8xf32, #tpu.memory_space<vmem>>, %arg6: memref<64x8xf32, #tpu.memory_space<vmem>>) attributes {dimension_semantics = [#tpu.dimension_semantics<parallel>], iteration_bounds = array<i64: 2>, scalar_prefetch = 0 : i64, scratch_operands = 0 : i64, tpu.core_type = #tpu.core_type<tc>, window_params = [{transform_indices = @transform_0, window_bounds = array<i64: 1, 10, 10, 8>}, {pipeline_mode = #tpu.pipeline_mode<synchronous>, transform_indices = @transform_1, window_bounds = array<i64: 1, 8>}, {pipeline_mode = #tpu.pipeline_mode<synchronous>, transform_indices = @transform_2, window_bounds = array<i64: 1, 8>}, {pipeline_mode = #tpu.pipeline_mode<synchronous>, transform_indices = @transform_3, window_bounds = array<i64: 9, 8, 8>}, {transform_indices = @transform_4, window_bounds = array<i64: 64, 8>}, {transform_indices = @transform_5, window_bounds = array<i64: 64, 8>}]} {
    %c0 = arith.constant 0 : index
    %c0_0 = arith.constant 0 : index
    %0 = vector.load %arg2[%c0, %c0_0] : memref<1x8xf32, #tpu.memory_space<vmem>>, vector<1x8xf32>
    %c0_1 = arith.constant 0 : index
    %c0_2 = arith.constant 0 : index
    %1 = vector.load %arg3[%c0_1, %c0_2] : memref<1x8xf32, #tpu.memory_space<vmem>>, vector<1x8xf32>
    %2 = tpu.iota {dimensions = array<i32: 0>} : vector<8x8x1xi32>
    %3 = tpu.iota {dimensions = array<i32: 1>} : vector<8x8x1xi32>
    %c0_3 = arith.constant 0 : index
    %c0_4 = arith.constant 0 : index
    %c0_5 = arith.constant 0 : index
    %c0_6 = arith.constant 0 : index
    %4 = vector.load %arg1[%c0_3, %c0_4, %c0_5, %c0_6] : memref<1x10x10x8xf32, #tpu.memory_space<vmem>>, vector<1x8x8x8xf32>
    %5 = vector.shape_cast %4 : vector<1x8x8x8xf32> to vector<8x8x8xf32>
    %6 = vector.shape_cast %0 : vector<1x8xf32> to vector<1x1x8xf32>
    %7 = vector.broadcast %6 : vector<1x1x8xf32> to vector<8x8x8xf32>
    %8 = arith.mulf %5, %7 : vector<8x8x8xf32>
    %9 = vector.shape_cast %1 : vector<1x8xf32> to vector<1x1x8xf32>
    %10 = vector.broadcast %9 : vector<1x1x8xf32> to vector<8x8x8xf32>
    %11 = arith.addf %8, %10 : vector<8x8x8xf32>
    %cst = arith.constant 0.000000e+00 : f32
    %12 = vector.broadcast %cst : f32 to vector<8x8x8xf32>
    %13 = arith.maximumf %11, %12 : vector<8x8x8xf32>
    %c1_i32 = arith.constant 1 : i32
    %14 = vector.broadcast %c1_i32 : i32 to vector<8x8x1xi32>
    %15 = arith.muli %14, %2 : vector<8x8x1xi32>
    %c0_i32 = arith.constant 0 : i32
    %16 = vector.broadcast %c0_i32 : i32 to vector<8x8x1xi32>
    %17 = arith.addi %16, %15 : vector<8x8x1xi32>
    %c1_i32_7 = arith.constant 1 : i32
    %18 = vector.broadcast %c1_i32_7 : i32 to vector<8x8x1xi32>
    %19 = arith.muli %18, %3 : vector<8x8x1xi32>
    %c0_i32_8 = arith.constant 0 : i32
    %20 = vector.broadcast %c0_i32_8 : i32 to vector<8x8x1xi32>
    %21 = arith.addi %20, %19 : vector<8x8x1xi32>
    %c1_i32_9 = arith.constant 1 : i32
    %22 = vector.broadcast %c1_i32_9 : i32 to vector<8x8x1xi32>
    %23 = arith.cmpi sge, %17, %22 : vector<8x8x1xi32>
    %c8_i32 = arith.constant 8 : i32
    %24 = vector.broadcast %c8_i32 : i32 to vector<8x8x1xi32>
    %25 = arith.cmpi sle, %17, %24 : vector<8x8x1xi32>
    %26 = arith.andi %23, %25 : vector<8x8x1xi1>
    %c1_i32_10 = arith.constant 1 : i32
    %27 = vector.broadcast %c1_i32_10 : i32 to vector<8x8x1xi32>
    %28 = arith.cmpi sge, %21, %27 : vector<8x8x1xi32>
    %29 = arith.andi %26, %28 : vector<8x8x1xi1>
    %c8_i32_11 = arith.constant 8 : i32
    %30 = vector.broadcast %c8_i32_11 : i32 to vector<8x8x1xi32>
    %31 = arith.cmpi sle, %21, %30 : vector<8x8x1xi32>
    %32 = arith.andi %29, %31 : vector<8x8x1xi1>
    %cst_12 = arith.constant 0.000000e+00 : f32
    %33 = vector.shape_cast %32 : vector<8x8x1xi1> to vector<8x8x1xi1>
    %34 = vector.broadcast %33 : vector<8x8x1xi1> to vector<8x8x8xi1>
    %35 = vector.broadcast %cst_12 : f32 to vector<8x8x8xf32>
    %36 = arith.select %34, %13, %35 : vector<8x8x8xi1>, vector<8x8x8xf32>
    %37 = vector.shape_cast %36 : vector<8x8x8xf32> to vector<64x8xf32>
    %38 = arith.truncf %37 : vector<64x8xf32> to vector<64x8xbf16>
    %c0_13 = arith.constant 0 : index
    %c0_14 = arith.constant 0 : index
    %c0_15 = arith.constant 0 : index
    %39 = vector.load %arg4[%c0_13, %c0_14, %c0_15] : memref<9x8x8xbf16, #tpu.memory_space<vmem>>, vector<1x8x8xbf16>
    %40 = vector.shape_cast %39 : vector<1x8x8xbf16> to vector<8x8xbf16>
    %cst_16 = arith.constant dense<0.000000e+00> : vector<64x8xf32>
    %41 = tpu.matmul %38, %40, %cst_16 {dimension_numbers = #tpu.dot_dimension_numbers<[1], [0], [0], [1], [0, 0, 1, 1], [], []>} : vector<64x8xbf16>, vector<8x8xbf16>, vector<64x8xf32> -> vector<64x8xf32>
    %c0_17 = arith.constant 0 : index
    %c0_18 = arith.constant 0 : index
    %c1 = arith.constant 1 : index
    %c0_19 = arith.constant 0 : index
    %42 = vector.load %arg1[%c0_17, %c0_18, %c1, %c0_19] : memref<1x10x10x8xf32, #tpu.memory_space<vmem>>, vector<1x8x8x8xf32>
    %43 = vector.shape_cast %42 : vector<1x8x8x8xf32> to vector<8x8x8xf32>
    %44 = vector.shape_cast %0 : vector<1x8xf32> to vector<1x1x8xf32>
    %45 = vector.broadcast %44 : vector<1x1x8xf32> to vector<8x8x8xf32>
    %46 = arith.mulf %43, %45 : vector<8x8x8xf32>
    %47 = vector.shape_cast %1 : vector<1x8xf32> to vector<1x1x8xf32>
    %48 = vector.broadcast %47 : vector<1x1x8xf32> to vector<8x8x8xf32>
    %49 = arith.addf %46, %48 : vector<8x8x8xf32>
    %cst_20 = arith.constant 0.000000e+00 : f32
    %50 = vector.broadcast %cst_20 : f32 to vector<8x8x8xf32>
    %51 = arith.maximumf %49, %50 : vector<8x8x8xf32>
    %c1_i32_21 = arith.constant 1 : i32
    %52 = vector.broadcast %c1_i32_21 : i32 to vector<8x8x1xi32>
    %53 = arith.muli %52, %2 : vector<8x8x1xi32>
    %c0_i32_22 = arith.constant 0 : i32
    %54 = vector.broadcast %c0_i32_22 : i32 to vector<8x8x1xi32>
    %55 = arith.addi %54, %53 : vector<8x8x1xi32>
    %c1_i32_23 = arith.constant 1 : i32
    %56 = vector.broadcast %c1_i32_23 : i32 to vector<8x8x1xi32>
    %57 = arith.muli %56, %3 : vector<8x8x1xi32>
    %c1_i32_24 = arith.constant 1 : i32
    %58 = vector.broadcast %c1_i32_24 : i32 to vector<8x8x1xi32>
    %59 = arith.addi %58, %57 : vector<8x8x1xi32>
    %c1_i32_25 = arith.constant 1 : i32
    %60 = vector.broadcast %c1_i32_25 : i32 to vector<8x8x1xi32>
    %61 = arith.cmpi sge, %55, %60 : vector<8x8x1xi32>
    %c8_i32_26 = arith.constant 8 : i32
    %62 = vector.broadcast %c8_i32_26 : i32 to vector<8x8x1xi32>
    %63 = arith.cmpi sle, %55, %62 : vector<8x8x1xi32>
    %64 = arith.andi %61, %63 : vector<8x8x1xi1>
    %c1_i32_27 = arith.constant 1 : i32
    %65 = vector.broadcast %c1_i32_27 : i32 to vector<8x8x1xi32>
    %66 = arith.cmpi sge, %59, %65 : vector<8x8x1xi32>
    %67 = arith.andi %64, %66 : vector<8x8x1xi1>
    %c8_i32_28 = arith.constant 8 : i32
    %68 = vector.broadcast %c8_i32_28 : i32 to vector<8x8x1xi32>
    %69 = arith.cmpi sle, %59, %68 : vector<8x8x1xi32>
    %70 = arith.andi %67, %69 : vector<8x8x1xi1>
    %cst_29 = arith.constant 0.000000e+00 : f32
    %71 = vector.shape_cast %70 : vector<8x8x1xi1> to vector<8x8x1xi1>
    %72 = vector.broadcast %71 : vector<8x8x1xi1> to vector<8x8x8xi1>
    %73 = vector.broadcast %cst_29 : f32 to vector<8x8x8xf32>
    %74 = arith.select %72, %51, %73 : vector<8x8x8xi1>, vector<8x8x8xf32>
    %75 = vector.shape_cast %74 : vector<8x8x8xf32> to vector<64x8xf32>
    %76 = arith.truncf %75 : vector<64x8xf32> to vector<64x8xbf16>
    %c1_30 = arith.constant 1 : index
    %c0_31 = arith.constant 0 : index
    %c0_32 = arith.constant 0 : index
    %77 = vector.load %arg4[%c1_30, %c0_31, %c0_32] : memref<9x8x8xbf16, #tpu.memory_space<vmem>>, vector<1x8x8xbf16>
    %78 = vector.shape_cast %77 : vector<1x8x8xbf16> to vector<8x8xbf16>
    %cst_33 = arith.constant dense<0.000000e+00> : vector<64x8xf32>
    %79 = tpu.matmul %76, %78, %cst_33 {dimension_numbers = #tpu.dot_dimension_numbers<[1], [0], [0], [1], [0, 0, 1, 1], [], []>} : vector<64x8xbf16>, vector<8x8xbf16>, vector<64x8xf32> -> vector<64x8xf32>
    %80 = arith.addf %41, %79 : vector<64x8xf32>
    %c0_34 = arith.constant 0 : index
    %c0_35 = arith.constant 0 : index
    %c2 = arith.constant 2 : index
    %c0_36 = arith.constant 0 : index
    %81 = vector.load %arg1[%c0_34, %c0_35, %c2, %c0_36] : memref<1x10x10x8xf32, #tpu.memory_space<vmem>>, vector<1x8x8x8xf32>
    %82 = vector.shape_cast %81 : vector<1x8x8x8xf32> to vector<8x8x8xf32>
    %83 = vector.shape_cast %0 : vector<1x8xf32> to vector<1x1x8xf32>
    %84 = vector.broadcast %83 : vector<1x1x8xf32> to vector<8x8x8xf32>
    %85 = arith.mulf %82, %84 : vector<8x8x8xf32>
    %86 = vector.shape_cast %1 : vector<1x8xf32> to vector<1x1x8xf32>
    %87 = vector.broadcast %86 : vector<1x1x8xf32> to vector<8x8x8xf32>
    %88 = arith.addf %85, %87 : vector<8x8x8xf32>
    %cst_37 = arith.constant 0.000000e+00 : f32
    %89 = vector.broadcast %cst_37 : f32 to vector<8x8x8xf32>
    %90 = arith.maximumf %88, %89 : vector<8x8x8xf32>
    %c1_i32_38 = arith.constant 1 : i32
    %91 = vector.broadcast %c1_i32_38 : i32 to vector<8x8x1xi32>
    %92 = arith.muli %91, %2 : vector<8x8x1xi32>
    %c0_i32_39 = arith.constant 0 : i32
    %93 = vector.broadcast %c0_i32_39 : i32 to vector<8x8x1xi32>
    %94 = arith.addi %93, %92 : vector<8x8x1xi32>
    %c1_i32_40 = arith.constant 1 : i32
    %95 = vector.broadcast %c1_i32_40 : i32 to vector<8x8x1xi32>
    %96 = arith.muli %95, %3 : vector<8x8x1xi32>
    %c2_i32 = arith.constant 2 : i32
    %97 = vector.broadcast %c2_i32 : i32 to vector<8x8x1xi32>
    %98 = arith.addi %97, %96 : vector<8x8x1xi32>
    %c1_i32_41 = arith.constant 1 : i32
    %99 = vector.broadcast %c1_i32_41 : i32 to vector<8x8x1xi32>
    %100 = arith.cmpi sge, %94, %99 : vector<8x8x1xi32>
    %c8_i32_42 = arith.constant 8 : i32
    %101 = vector.broadcast %c8_i32_42 : i32 to vector<8x8x1xi32>
    %102 = arith.cmpi sle, %94, %101 : vector<8x8x1xi32>
    %103 = arith.andi %100, %102 : vector<8x8x1xi1>
    %c1_i32_43 = arith.constant 1 : i32
    %104 = vector.broadcast %c1_i32_43 : i32 to vector<8x8x1xi32>
    %105 = arith.cmpi sge, %98, %104 : vector<8x8x1xi32>
    %106 = arith.andi %103, %105 : vector<8x8x1xi1>
    %c8_i32_44 = arith.constant 8 : i32
    %107 = vector.broadcast %c8_i32_44 : i32 to vector<8x8x1xi32>
    %108 = arith.cmpi sle, %98, %107 : vector<8x8x1xi32>
    %109 = arith.andi %106, %108 : vector<8x8x1xi1>
    %cst_45 = arith.constant 0.000000e+00 : f32
    %110 = vector.shape_cast %109 : vector<8x8x1xi1> to vector<8x8x1xi1>
    %111 = vector.broadcast %110 : vector<8x8x1xi1> to vector<8x8x8xi1>
    %112 = vector.broadcast %cst_45 : f32 to vector<8x8x8xf32>
    %113 = arith.select %111, %90, %112 : vector<8x8x8xi1>, vector<8x8x8xf32>
    %114 = vector.shape_cast %113 : vector<8x8x8xf32> to vector<64x8xf32>
    %115 = arith.truncf %114 : vector<64x8xf32> to vector<64x8xbf16>
    %c2_46 = arith.constant 2 : index
    %c0_47 = arith.constant 0 : index
    %c0_48 = arith.constant 0 : index
    %116 = vector.load %arg4[%c2_46, %c0_47, %c0_48] : memref<9x8x8xbf16, #tpu.memory_space<vmem>>, vector<1x8x8xbf16>
    %117 = vector.shape_cast %116 : vector<1x8x8xbf16> to vector<8x8xbf16>
    %cst_49 = arith.constant dense<0.000000e+00> : vector<64x8xf32>
    %118 = tpu.matmul %115, %117, %cst_49 {dimension_numbers = #tpu.dot_dimension_numbers<[1], [0], [0], [1], [0, 0, 1, 1], [], []>} : vector<64x8xbf16>, vector<8x8xbf16>, vector<64x8xf32> -> vector<64x8xf32>
    %119 = arith.addf %80, %118 : vector<64x8xf32>
    %c0_50 = arith.constant 0 : index
    %c1_51 = arith.constant 1 : index
    %c0_52 = arith.constant 0 : index
    %c0_53 = arith.constant 0 : index
    %120 = vector.load %arg1[%c0_50, %c1_51, %c0_52, %c0_53] : memref<1x10x10x8xf32, #tpu.memory_space<vmem>>, vector<1x8x8x8xf32>
    %121 = vector.shape_cast %120 : vector<1x8x8x8xf32> to vector<8x8x8xf32>
    %122 = vector.shape_cast %0 : vector<1x8xf32> to vector<1x1x8xf32>
    %123 = vector.broadcast %122 : vector<1x1x8xf32> to vector<8x8x8xf32>
    %124 = arith.mulf %121, %123 : vector<8x8x8xf32>
    %125 = vector.shape_cast %1 : vector<1x8xf32> to vector<1x1x8xf32>
    %126 = vector.broadcast %125 : vector<1x1x8xf32> to vector<8x8x8xf32>
    %127 = arith.addf %124, %126 : vector<8x8x8xf32>
    %cst_54 = arith.constant 0.000000e+00 : f32
    %128 = vector.broadcast %cst_54 : f32 to vector<8x8x8xf32>
    %129 = arith.maximumf %127, %128 : vector<8x8x8xf32>
    %c1_i32_55 = arith.constant 1 : i32
    %130 = vector.broadcast %c1_i32_55 : i32 to vector<8x8x1xi32>
    %131 = arith.muli %130, %2 : vector<8x8x1xi32>
    %c1_i32_56 = arith.constant 1 : i32
    %132 = vector.broadcast %c1_i32_56 : i32 to vector<8x8x1xi32>
    %133 = arith.addi %132, %131 : vector<8x8x1xi32>
    %c1_i32_57 = arith.constant 1 : i32
    %134 = vector.broadcast %c1_i32_57 : i32 to vector<8x8x1xi32>
    %135 = arith.muli %134, %3 : vector<8x8x1xi32>
    %c0_i32_58 = arith.constant 0 : i32
    %136 = vector.broadcast %c0_i32_58 : i32 to vector<8x8x1xi32>
    %137 = arith.addi %136, %135 : vector<8x8x1xi32>
    %c1_i32_59 = arith.constant 1 : i32
    %138 = vector.broadcast %c1_i32_59 : i32 to vector<8x8x1xi32>
    %139 = arith.cmpi sge, %133, %138 : vector<8x8x1xi32>
    %c8_i32_60 = arith.constant 8 : i32
    %140 = vector.broadcast %c8_i32_60 : i32 to vector<8x8x1xi32>
    %141 = arith.cmpi sle, %133, %140 : vector<8x8x1xi32>
    %142 = arith.andi %139, %141 : vector<8x8x1xi1>
    %c1_i32_61 = arith.constant 1 : i32
    %143 = vector.broadcast %c1_i32_61 : i32 to vector<8x8x1xi32>
    %144 = arith.cmpi sge, %137, %143 : vector<8x8x1xi32>
    %145 = arith.andi %142, %144 : vector<8x8x1xi1>
    %c8_i32_62 = arith.constant 8 : i32
    %146 = vector.broadcast %c8_i32_62 : i32 to vector<8x8x1xi32>
    %147 = arith.cmpi sle, %137, %146 : vector<8x8x1xi32>
    %148 = arith.andi %145, %147 : vector<8x8x1xi1>
    %cst_63 = arith.constant 0.000000e+00 : f32
    %149 = vector.shape_cast %148 : vector<8x8x1xi1> to vector<8x8x1xi1>
    %150 = vector.broadcast %149 : vector<8x8x1xi1> to vector<8x8x8xi1>
    %151 = vector.broadcast %cst_63 : f32 to vector<8x8x8xf32>
    %152 = arith.select %150, %129, %151 : vector<8x8x8xi1>, vector<8x8x8xf32>
    %153 = vector.shape_cast %152 : vector<8x8x8xf32> to vector<64x8xf32>
    %154 = arith.truncf %153 : vector<64x8xf32> to vector<64x8xbf16>
    %c3 = arith.constant 3 : index
    %c0_64 = arith.constant 0 : index
    %c0_65 = arith.constant 0 : index
    %155 = vector.load %arg4[%c3, %c0_64, %c0_65] : memref<9x8x8xbf16, #tpu.memory_space<vmem>>, vector<1x8x8xbf16>
    %156 = vector.shape_cast %155 : vector<1x8x8xbf16> to vector<8x8xbf16>
    %cst_66 = arith.constant dense<0.000000e+00> : vector<64x8xf32>
    %157 = tpu.matmul %154, %156, %cst_66 {dimension_numbers = #tpu.dot_dimension_numbers<[1], [0], [0], [1], [0, 0, 1, 1], [], []>} : vector<64x8xbf16>, vector<8x8xbf16>, vector<64x8xf32> -> vector<64x8xf32>
    %158 = arith.addf %119, %157 : vector<64x8xf32>
    %c0_67 = arith.constant 0 : index
    %c1_68 = arith.constant 1 : index
    %c1_69 = arith.constant 1 : index
    %c0_70 = arith.constant 0 : index
    %159 = vector.load %arg1[%c0_67, %c1_68, %c1_69, %c0_70] : memref<1x10x10x8xf32, #tpu.memory_space<vmem>>, vector<1x8x8x8xf32>
    %160 = vector.shape_cast %159 : vector<1x8x8x8xf32> to vector<8x8x8xf32>
    %161 = vector.shape_cast %0 : vector<1x8xf32> to vector<1x1x8xf32>
    %162 = vector.broadcast %161 : vector<1x1x8xf32> to vector<8x8x8xf32>
    %163 = arith.mulf %160, %162 : vector<8x8x8xf32>
    %164 = vector.shape_cast %1 : vector<1x8xf32> to vector<1x1x8xf32>
    %165 = vector.broadcast %164 : vector<1x1x8xf32> to vector<8x8x8xf32>
    %166 = arith.addf %163, %165 : vector<8x8x8xf32>
    %cst_71 = arith.constant 0.000000e+00 : f32
    %167 = vector.broadcast %cst_71 : f32 to vector<8x8x8xf32>
    %168 = arith.maximumf %166, %167 : vector<8x8x8xf32>
    %c1_i32_72 = arith.constant 1 : i32
    %169 = vector.broadcast %c1_i32_72 : i32 to vector<8x8x1xi32>
    %170 = arith.muli %169, %2 : vector<8x8x1xi32>
    %c1_i32_73 = arith.constant 1 : i32
    %171 = vector.broadcast %c1_i32_73 : i32 to vector<8x8x1xi32>
    %172 = arith.addi %171, %170 : vector<8x8x1xi32>
    %c1_i32_74 = arith.constant 1 : i32
    %173 = vector.broadcast %c1_i32_74 : i32 to vector<8x8x1xi32>
    %174 = arith.muli %173, %3 : vector<8x8x1xi32>
    %c1_i32_75 = arith.constant 1 : i32
    %175 = vector.broadcast %c1_i32_75 : i32 to vector<8x8x1xi32>
    %176 = arith.addi %175, %174 : vector<8x8x1xi32>
    %c1_i32_76 = arith.constant 1 : i32
    %177 = vector.broadcast %c1_i32_76 : i32 to vector<8x8x1xi32>
    %178 = arith.cmpi sge, %172, %177 : vector<8x8x1xi32>
    %c8_i32_77 = arith.constant 8 : i32
    %179 = vector.broadcast %c8_i32_77 : i32 to vector<8x8x1xi32>
    %180 = arith.cmpi sle, %172, %179 : vector<8x8x1xi32>
    %181 = arith.andi %178, %180 : vector<8x8x1xi1>
    %c1_i32_78 = arith.constant 1 : i32
    %182 = vector.broadcast %c1_i32_78 : i32 to vector<8x8x1xi32>
    %183 = arith.cmpi sge, %176, %182 : vector<8x8x1xi32>
    %184 = arith.andi %181, %183 : vector<8x8x1xi1>
    %c8_i32_79 = arith.constant 8 : i32
    %185 = vector.broadcast %c8_i32_79 : i32 to vector<8x8x1xi32>
    %186 = arith.cmpi sle, %176, %185 : vector<8x8x1xi32>
    %187 = arith.andi %184, %186 : vector<8x8x1xi1>
    %cst_80 = arith.constant 0.000000e+00 : f32
    %188 = vector.shape_cast %187 : vector<8x8x1xi1> to vector<8x8x1xi1>
    %189 = vector.broadcast %188 : vector<8x8x1xi1> to vector<8x8x8xi1>
    %190 = vector.broadcast %cst_80 : f32 to vector<8x8x8xf32>
    %191 = arith.select %189, %168, %190 : vector<8x8x8xi1>, vector<8x8x8xf32>
    %192 = vector.shape_cast %191 : vector<8x8x8xf32> to vector<64x8xf32>
    %193 = arith.truncf %192 : vector<64x8xf32> to vector<64x8xbf16>
    %c4 = arith.constant 4 : index
    %c0_81 = arith.constant 0 : index
    %c0_82 = arith.constant 0 : index
    %194 = vector.load %arg4[%c4, %c0_81, %c0_82] : memref<9x8x8xbf16, #tpu.memory_space<vmem>>, vector<1x8x8xbf16>
    %195 = vector.shape_cast %194 : vector<1x8x8xbf16> to vector<8x8xbf16>
    %cst_83 = arith.constant dense<0.000000e+00> : vector<64x8xf32>
    %196 = tpu.matmul %193, %195, %cst_83 {dimension_numbers = #tpu.dot_dimension_numbers<[1], [0], [0], [1], [0, 0, 1, 1], [], []>} : vector<64x8xbf16>, vector<8x8xbf16>, vector<64x8xf32> -> vector<64x8xf32>
    %197 = arith.addf %158, %196 : vector<64x8xf32>
    %c0_84 = arith.constant 0 : index
    %c1_85 = arith.constant 1 : index
    %c2_86 = arith.constant 2 : index
    %c0_87 = arith.constant 0 : index
    %198 = vector.load %arg1[%c0_84, %c1_85, %c2_86, %c0_87] : memref<1x10x10x8xf32, #tpu.memory_space<vmem>>, vector<1x8x8x8xf32>
    %199 = vector.shape_cast %198 : vector<1x8x8x8xf32> to vector<8x8x8xf32>
    %200 = vector.shape_cast %0 : vector<1x8xf32> to vector<1x1x8xf32>
    %201 = vector.broadcast %200 : vector<1x1x8xf32> to vector<8x8x8xf32>
    %202 = arith.mulf %199, %201 : vector<8x8x8xf32>
    %203 = vector.shape_cast %1 : vector<1x8xf32> to vector<1x1x8xf32>
    %204 = vector.broadcast %203 : vector<1x1x8xf32> to vector<8x8x8xf32>
    %205 = arith.addf %202, %204 : vector<8x8x8xf32>
    %cst_88 = arith.constant 0.000000e+00 : f32
    %206 = vector.broadcast %cst_88 : f32 to vector<8x8x8xf32>
    %207 = arith.maximumf %205, %206 : vector<8x8x8xf32>
    %c1_i32_89 = arith.constant 1 : i32
    %208 = vector.broadcast %c1_i32_89 : i32 to vector<8x8x1xi32>
    %209 = arith.muli %208, %2 : vector<8x8x1xi32>
    %c1_i32_90 = arith.constant 1 : i32
    %210 = vector.broadcast %c1_i32_90 : i32 to vector<8x8x1xi32>
    %211 = arith.addi %210, %209 : vector<8x8x1xi32>
    %c1_i32_91 = arith.constant 1 : i32
    %212 = vector.broadcast %c1_i32_91 : i32 to vector<8x8x1xi32>
    %213 = arith.muli %212, %3 : vector<8x8x1xi32>
    %c2_i32_92 = arith.constant 2 : i32
    %214 = vector.broadcast %c2_i32_92 : i32 to vector<8x8x1xi32>
    %215 = arith.addi %214, %213 : vector<8x8x1xi32>
    %c1_i32_93 = arith.constant 1 : i32
    %216 = vector.broadcast %c1_i32_93 : i32 to vector<8x8x1xi32>
    %217 = arith.cmpi sge, %211, %216 : vector<8x8x1xi32>
    %c8_i32_94 = arith.constant 8 : i32
    %218 = vector.broadcast %c8_i32_94 : i32 to vector<8x8x1xi32>
    %219 = arith.cmpi sle, %211, %218 : vector<8x8x1xi32>
    %220 = arith.andi %217, %219 : vector<8x8x1xi1>
    %c1_i32_95 = arith.constant 1 : i32
    %221 = vector.broadcast %c1_i32_95 : i32 to vector<8x8x1xi32>
    %222 = arith.cmpi sge, %215, %221 : vector<8x8x1xi32>
    %223 = arith.andi %220, %222 : vector<8x8x1xi1>
    %c8_i32_96 = arith.constant 8 : i32
    %224 = vector.broadcast %c8_i32_96 : i32 to vector<8x8x1xi32>
    %225 = arith.cmpi sle, %215, %224 : vector<8x8x1xi32>
    %226 = arith.andi %223, %225 : vector<8x8x1xi1>
    %cst_97 = arith.constant 0.000000e+00 : f32
    %227 = vector.shape_cast %226 : vector<8x8x1xi1> to vector<8x8x1xi1>
    %228 = vector.broadcast %227 : vector<8x8x1xi1> to vector<8x8x8xi1>
    %229 = vector.broadcast %cst_97 : f32 to vector<8x8x8xf32>
    %230 = arith.select %228, %207, %229 : vector<8x8x8xi1>, vector<8x8x8xf32>
    %231 = vector.shape_cast %230 : vector<8x8x8xf32> to vector<64x8xf32>
    %232 = arith.truncf %231 : vector<64x8xf32> to vector<64x8xbf16>
    %c5 = arith.constant 5 : index
    %c0_98 = arith.constant 0 : index
    %c0_99 = arith.constant 0 : index
    %233 = vector.load %arg4[%c5, %c0_98, %c0_99] : memref<9x8x8xbf16, #tpu.memory_space<vmem>>, vector<1x8x8xbf16>
    %234 = vector.shape_cast %233 : vector<1x8x8xbf16> to vector<8x8xbf16>
    %cst_100 = arith.constant dense<0.000000e+00> : vector<64x8xf32>
    %235 = tpu.matmul %232, %234, %cst_100 {dimension_numbers = #tpu.dot_dimension_numbers<[1], [0], [0], [1], [0, 0, 1, 1], [], []>} : vector<64x8xbf16>, vector<8x8xbf16>, vector<64x8xf32> -> vector<64x8xf32>
    %236 = arith.addf %197, %235 : vector<64x8xf32>
    %c0_101 = arith.constant 0 : index
    %c2_102 = arith.constant 2 : index
    %c0_103 = arith.constant 0 : index
    %c0_104 = arith.constant 0 : index
    %237 = vector.load %arg1[%c0_101, %c2_102, %c0_103, %c0_104] : memref<1x10x10x8xf32, #tpu.memory_space<vmem>>, vector<1x8x8x8xf32>
    %238 = vector.shape_cast %237 : vector<1x8x8x8xf32> to vector<8x8x8xf32>
    %239 = vector.shape_cast %0 : vector<1x8xf32> to vector<1x1x8xf32>
    %240 = vector.broadcast %239 : vector<1x1x8xf32> to vector<8x8x8xf32>
    %241 = arith.mulf %238, %240 : vector<8x8x8xf32>
    %242 = vector.shape_cast %1 : vector<1x8xf32> to vector<1x1x8xf32>
    %243 = vector.broadcast %242 : vector<1x1x8xf32> to vector<8x8x8xf32>
    %244 = arith.addf %241, %243 : vector<8x8x8xf32>
    %cst_105 = arith.constant 0.000000e+00 : f32
    %245 = vector.broadcast %cst_105 : f32 to vector<8x8x8xf32>
    %246 = arith.maximumf %244, %245 : vector<8x8x8xf32>
    %c1_i32_106 = arith.constant 1 : i32
    %247 = vector.broadcast %c1_i32_106 : i32 to vector<8x8x1xi32>
    %248 = arith.muli %247, %2 : vector<8x8x1xi32>
    %c2_i32_107 = arith.constant 2 : i32
    %249 = vector.broadcast %c2_i32_107 : i32 to vector<8x8x1xi32>
    %250 = arith.addi %249, %248 : vector<8x8x1xi32>
    %c1_i32_108 = arith.constant 1 : i32
    %251 = vector.broadcast %c1_i32_108 : i32 to vector<8x8x1xi32>
    %252 = arith.muli %251, %3 : vector<8x8x1xi32>
    %c0_i32_109 = arith.constant 0 : i32
    %253 = vector.broadcast %c0_i32_109 : i32 to vector<8x8x1xi32>
    %254 = arith.addi %253, %252 : vector<8x8x1xi32>
    %c1_i32_110 = arith.constant 1 : i32
    %255 = vector.broadcast %c1_i32_110 : i32 to vector<8x8x1xi32>
    %256 = arith.cmpi sge, %250, %255 : vector<8x8x1xi32>
    %c8_i32_111 = arith.constant 8 : i32
    %257 = vector.broadcast %c8_i32_111 : i32 to vector<8x8x1xi32>
    %258 = arith.cmpi sle, %250, %257 : vector<8x8x1xi32>
    %259 = arith.andi %256, %258 : vector<8x8x1xi1>
    %c1_i32_112 = arith.constant 1 : i32
    %260 = vector.broadcast %c1_i32_112 : i32 to vector<8x8x1xi32>
    %261 = arith.cmpi sge, %254, %260 : vector<8x8x1xi32>
    %262 = arith.andi %259, %261 : vector<8x8x1xi1>
    %c8_i32_113 = arith.constant 8 : i32
    %263 = vector.broadcast %c8_i32_113 : i32 to vector<8x8x1xi32>
    %264 = arith.cmpi sle, %254, %263 : vector<8x8x1xi32>
    %265 = arith.andi %262, %264 : vector<8x8x1xi1>
    %cst_114 = arith.constant 0.000000e+00 : f32
    %266 = vector.shape_cast %265 : vector<8x8x1xi1> to vector<8x8x1xi1>
    %267 = vector.broadcast %266 : vector<8x8x1xi1> to vector<8x8x8xi1>
    %268 = vector.broadcast %cst_114 : f32 to vector<8x8x8xf32>
    %269 = arith.select %267, %246, %268 : vector<8x8x8xi1>, vector<8x8x8xf32>
    %270 = vector.shape_cast %269 : vector<8x8x8xf32> to vector<64x8xf32>
    %271 = arith.truncf %270 : vector<64x8xf32> to vector<64x8xbf16>
    %c6 = arith.constant 6 : index
    %c0_115 = arith.constant 0 : index
    %c0_116 = arith.constant 0 : index
    %272 = vector.load %arg4[%c6, %c0_115, %c0_116] : memref<9x8x8xbf16, #tpu.memory_space<vmem>>, vector<1x8x8xbf16>
    %273 = vector.shape_cast %272 : vector<1x8x8xbf16> to vector<8x8xbf16>
    %cst_117 = arith.constant dense<0.000000e+00> : vector<64x8xf32>
    %274 = tpu.matmul %271, %273, %cst_117 {dimension_numbers = #tpu.dot_dimension_numbers<[1], [0], [0], [1], [0, 0, 1, 1], [], []>} : vector<64x8xbf16>, vector<8x8xbf16>, vector<64x8xf32> -> vector<64x8xf32>
    %275 = arith.addf %236, %274 : vector<64x8xf32>
    %c0_118 = arith.constant 0 : index
    %c2_119 = arith.constant 2 : index
    %c1_120 = arith.constant 1 : index
    %c0_121 = arith.constant 0 : index
    %276 = vector.load %arg1[%c0_118, %c2_119, %c1_120, %c0_121] : memref<1x10x10x8xf32, #tpu.memory_space<vmem>>, vector<1x8x8x8xf32>
    %277 = vector.shape_cast %276 : vector<1x8x8x8xf32> to vector<8x8x8xf32>
    %278 = vector.shape_cast %0 : vector<1x8xf32> to vector<1x1x8xf32>
    %279 = vector.broadcast %278 : vector<1x1x8xf32> to vector<8x8x8xf32>
    %280 = arith.mulf %277, %279 : vector<8x8x8xf32>
    %281 = vector.shape_cast %1 : vector<1x8xf32> to vector<1x1x8xf32>
    %282 = vector.broadcast %281 : vector<1x1x8xf32> to vector<8x8x8xf32>
    %283 = arith.addf %280, %282 : vector<8x8x8xf32>
    %cst_122 = arith.constant 0.000000e+00 : f32
    %284 = vector.broadcast %cst_122 : f32 to vector<8x8x8xf32>
    %285 = arith.maximumf %283, %284 : vector<8x8x8xf32>
    %c1_i32_123 = arith.constant 1 : i32
    %286 = vector.broadcast %c1_i32_123 : i32 to vector<8x8x1xi32>
    %287 = arith.muli %286, %2 : vector<8x8x1xi32>
    %c2_i32_124 = arith.constant 2 : i32
    %288 = vector.broadcast %c2_i32_124 : i32 to vector<8x8x1xi32>
    %289 = arith.addi %288, %287 : vector<8x8x1xi32>
    %c1_i32_125 = arith.constant 1 : i32
    %290 = vector.broadcast %c1_i32_125 : i32 to vector<8x8x1xi32>
    %291 = arith.muli %290, %3 : vector<8x8x1xi32>
    %c1_i32_126 = arith.constant 1 : i32
    %292 = vector.broadcast %c1_i32_126 : i32 to vector<8x8x1xi32>
    %293 = arith.addi %292, %291 : vector<8x8x1xi32>
    %c1_i32_127 = arith.constant 1 : i32
    %294 = vector.broadcast %c1_i32_127 : i32 to vector<8x8x1xi32>
    %295 = arith.cmpi sge, %289, %294 : vector<8x8x1xi32>
    %c8_i32_128 = arith.constant 8 : i32
    %296 = vector.broadcast %c8_i32_128 : i32 to vector<8x8x1xi32>
    %297 = arith.cmpi sle, %289, %296 : vector<8x8x1xi32>
    %298 = arith.andi %295, %297 : vector<8x8x1xi1>
    %c1_i32_129 = arith.constant 1 : i32
    %299 = vector.broadcast %c1_i32_129 : i32 to vector<8x8x1xi32>
    %300 = arith.cmpi sge, %293, %299 : vector<8x8x1xi32>
    %301 = arith.andi %298, %300 : vector<8x8x1xi1>
    %c8_i32_130 = arith.constant 8 : i32
    %302 = vector.broadcast %c8_i32_130 : i32 to vector<8x8x1xi32>
    %303 = arith.cmpi sle, %293, %302 : vector<8x8x1xi32>
    %304 = arith.andi %301, %303 : vector<8x8x1xi1>
    %cst_131 = arith.constant 0.000000e+00 : f32
    %305 = vector.shape_cast %304 : vector<8x8x1xi1> to vector<8x8x1xi1>
    %306 = vector.broadcast %305 : vector<8x8x1xi1> to vector<8x8x8xi1>
    %307 = vector.broadcast %cst_131 : f32 to vector<8x8x8xf32>
    %308 = arith.select %306, %285, %307 : vector<8x8x8xi1>, vector<8x8x8xf32>
    %309 = vector.shape_cast %308 : vector<8x8x8xf32> to vector<64x8xf32>
    %310 = arith.truncf %309 : vector<64x8xf32> to vector<64x8xbf16>
    %c7 = arith.constant 7 : index
    %c0_132 = arith.constant 0 : index
    %c0_133 = arith.constant 0 : index
    %311 = vector.load %arg4[%c7, %c0_132, %c0_133] : memref<9x8x8xbf16, #tpu.memory_space<vmem>>, vector<1x8x8xbf16>
    %312 = vector.shape_cast %311 : vector<1x8x8xbf16> to vector<8x8xbf16>
    %cst_134 = arith.constant dense<0.000000e+00> : vector<64x8xf32>
    %313 = tpu.matmul %310, %312, %cst_134 {dimension_numbers = #tpu.dot_dimension_numbers<[1], [0], [0], [1], [0, 0, 1, 1], [], []>} : vector<64x8xbf16>, vector<8x8xbf16>, vector<64x8xf32> -> vector<64x8xf32>
    %314 = arith.addf %275, %313 : vector<64x8xf32>
    %c0_135 = arith.constant 0 : index
    %c2_136 = arith.constant 2 : index
    %c2_137 = arith.constant 2 : index
    %c0_138 = arith.constant 0 : index
    %315 = vector.load %arg1[%c0_135, %c2_136, %c2_137, %c0_138] : memref<1x10x10x8xf32, #tpu.memory_space<vmem>>, vector<1x8x8x8xf32>
    %316 = vector.shape_cast %315 : vector<1x8x8x8xf32> to vector<8x8x8xf32>
    %317 = vector.shape_cast %0 : vector<1x8xf32> to vector<1x1x8xf32>
    %318 = vector.broadcast %317 : vector<1x1x8xf32> to vector<8x8x8xf32>
    %319 = arith.mulf %316, %318 : vector<8x8x8xf32>
    %320 = vector.shape_cast %1 : vector<1x8xf32> to vector<1x1x8xf32>
    %321 = vector.broadcast %320 : vector<1x1x8xf32> to vector<8x8x8xf32>
    %322 = arith.addf %319, %321 : vector<8x8x8xf32>
    %cst_139 = arith.constant 0.000000e+00 : f32
    %323 = vector.broadcast %cst_139 : f32 to vector<8x8x8xf32>
    %324 = arith.maximumf %322, %323 : vector<8x8x8xf32>
    %c1_i32_140 = arith.constant 1 : i32
    %325 = vector.broadcast %c1_i32_140 : i32 to vector<8x8x1xi32>
    %326 = arith.muli %325, %2 : vector<8x8x1xi32>
    %c2_i32_141 = arith.constant 2 : i32
    %327 = vector.broadcast %c2_i32_141 : i32 to vector<8x8x1xi32>
    %328 = arith.addi %327, %326 : vector<8x8x1xi32>
    %c1_i32_142 = arith.constant 1 : i32
    %329 = vector.broadcast %c1_i32_142 : i32 to vector<8x8x1xi32>
    %330 = arith.muli %329, %3 : vector<8x8x1xi32>
    %c2_i32_143 = arith.constant 2 : i32
    %331 = vector.broadcast %c2_i32_143 : i32 to vector<8x8x1xi32>
    %332 = arith.addi %331, %330 : vector<8x8x1xi32>
    %c1_i32_144 = arith.constant 1 : i32
    %333 = vector.broadcast %c1_i32_144 : i32 to vector<8x8x1xi32>
    %334 = arith.cmpi sge, %328, %333 : vector<8x8x1xi32>
    %c8_i32_145 = arith.constant 8 : i32
    %335 = vector.broadcast %c8_i32_145 : i32 to vector<8x8x1xi32>
    %336 = arith.cmpi sle, %328, %335 : vector<8x8x1xi32>
    %337 = arith.andi %334, %336 : vector<8x8x1xi1>
    %c1_i32_146 = arith.constant 1 : i32
    %338 = vector.broadcast %c1_i32_146 : i32 to vector<8x8x1xi32>
    %339 = arith.cmpi sge, %332, %338 : vector<8x8x1xi32>
    %340 = arith.andi %337, %339 : vector<8x8x1xi1>
    %c8_i32_147 = arith.constant 8 : i32
    %341 = vector.broadcast %c8_i32_147 : i32 to vector<8x8x1xi32>
    %342 = arith.cmpi sle, %332, %341 : vector<8x8x1xi32>
    %343 = arith.andi %340, %342 : vector<8x8x1xi1>
    %cst_148 = arith.constant 0.000000e+00 : f32
    %344 = vector.shape_cast %343 : vector<8x8x1xi1> to vector<8x8x1xi1>
    %345 = vector.broadcast %344 : vector<8x8x1xi1> to vector<8x8x8xi1>
    %346 = vector.broadcast %cst_148 : f32 to vector<8x8x8xf32>
    %347 = arith.select %345, %324, %346 : vector<8x8x8xi1>, vector<8x8x8xf32>
    %348 = vector.shape_cast %347 : vector<8x8x8xf32> to vector<64x8xf32>
    %349 = arith.truncf %348 : vector<64x8xf32> to vector<64x8xbf16>
    %c8 = arith.constant 8 : index
    %c0_149 = arith.constant 0 : index
    %c0_150 = arith.constant 0 : index
    %350 = vector.load %arg4[%c8, %c0_149, %c0_150] : memref<9x8x8xbf16, #tpu.memory_space<vmem>>, vector<1x8x8xbf16>
    %351 = vector.shape_cast %350 : vector<1x8x8xbf16> to vector<8x8xbf16>
    %cst_151 = arith.constant dense<0.000000e+00> : vector<64x8xf32>
    %352 = tpu.matmul %349, %351, %cst_151 {dimension_numbers = #tpu.dot_dimension_numbers<[1], [0], [0], [1], [0, 0, 1, 1], [], []>} : vector<64x8xbf16>, vector<8x8xbf16>, vector<64x8xf32> -> vector<64x8xf32>
    %353 = arith.addf %314, %352 : vector<64x8xf32>
    %c0_152 = arith.constant 0 : index
    %c0_153 = arith.constant 0 : index
    %354 = vector.load %arg5[%c0_152, %c0_153] : memref<64x8xf32, #tpu.memory_space<vmem>>, vector<64x8xf32>
    %355 = arith.addf %353, %354 : vector<64x8xf32>
    %c0_154 = arith.constant 0 : index
    %c0_155 = arith.constant 0 : index
    %356 = vector.load %arg6[%c0_154, %c0_155] : memref<64x8xf32, #tpu.memory_space<vmem>>, vector<64x8xf32>
    tpu.vector_store %arg6[%c0_154, %c0_155], %355 {strides = array<i32>} : memref<64x8xf32, #tpu.memory_space<vmem>>, vector<64x8xf32>,
    return
  }
  func.func @transform_0(%arg0: i32) -> (i32, i32, i32, i32) {
    %c0_i32 = arith.constant 0 : i32
    %c0_i32_0 = arith.constant 0 : i32
    %c0_i32_1 = arith.constant 0 : i32
    %c0_i32_2 = arith.constant 0 : i32
    return %arg0, %c0_i32, %c0_i32_0, %c0_i32_1 : i32, i32, i32, i32
  }
  func.func @transform_1(%arg0: i32) -> (i32, i32) {
    %c0_i32 = arith.constant 0 : i32
    %c0_i32_0 = arith.constant 0 : i32
    %c0_i32_1 = arith.constant 0 : i32
    return %c0_i32, %c0_i32_0 : i32, i32
  }
  func.func @transform_2(%arg0: i32) -> (i32, i32) {
    %c0_i32 = arith.constant 0 : i32
    %c0_i32_0 = arith.constant 0 : i32
    %c0_i32_1 = arith.constant 0 : i32
    return %c0_i32, %c0_i32_0 : i32, i32
  }
  func.func @transform_3(%arg0: i32) -> (i32, i32, i32) {
    %c0_i32 = arith.constant 0 : i32
    %c0_i32_0 = arith.constant 0 : i32
    %c0_i32_1 = arith.constant 0 : i32
    %c0_i32_2 = arith.constant 0 : i32
    return %c0_i32, %c0_i32_0, %c0_i32_1 : i32, i32, i32
  }
  func.func @transform_4(%arg0: i32) -> (i32, i32) {
    %c0_i32 = arith.constant 0 : i32
    %c0_i32_0 = arith.constant 0 : i32
    return %arg0, %c0_i32 : i32, i32
  }
  func.func @transform_5(%arg0: i32) -> (i32, i32) {
    %c0_i32 = arith.constant 0 : i32
    %c0_i32_0 = arith.constant 0 : i32
    return %arg0, %c0_i32 : i32, i32
  }
}

</mosaic_0001>

<bundles_post_ra>
// kernel: basic_block_forward.3
= control target key start
LH: loop header
LB: loop body
LE: loop exit
PB: predicated region body
PF: predicated region fallthrough
CT: control target
= control target key end

     0   :  { %s468_s9 = smov 0   ;;  %s591_s0 = inlined_call_operand.vmem [shape: f32[2,16,16,4], index: 0, kind: input, shape index: {}]   ;;  %s592_s1 = inlined_call_operand.vmem [shape: f32[2,1,4], index: 1, kind: output, shape index: {0}]   ;;  %s593_s2 = inlined_call_operand.vmem [shape: f32[2,1,4], index: 2, kind: output, shape index: {1}]  }
   0x1 LB: > { %s427_s10 = sadd.s32 4294967295, %s451_s9   ;;  %p431_p0 = scmp.ge.s32.totalorder %s451_s9, 1  ;;  %s451_s9 = sphi %s468_s9, %s13_s9  }
   0x2   : > { %p115_p1 = scmp.lt.s32.totalorder %s451_s9, 3 }
   0x4   : > { %p116_p2 = pnand %p431_p0, %p115_p1 }
   0x5   : > { %p138_p3 = scmp.lt.s32.totalorder (!%p116_p2), %s427_s10, 1 }
   0x6   : > { %119 = sbr.rel (%p116_p2) target bundleno = 95 (0x5f), region = 24 }
   0xb   : > { %s595_s10 = smov (!%p138_p3, %s427_s10), 1  ;;  %vm181_vm0 = vcmask 31744   ;;  %vm251_vm1 = vcmask 24576  }
   0xc   : > { %s436_s11 = sshll.u32 %s595_s10, 8  ;;  %s145_s17 = scalar_lea.vmem %s592_s1, %s595_s10 }
   0xd   : > { %s482_s14 = scalar_lea.vmem %s591_s0, %s436_s11  ;;  %s148_s20 = scalar_lea.vmem %s593_s2, %s595_s10 }
   0xe   : > { %v149_v0 = vld [vmem:[%s482_s14] sm:$0xff]  ;;  %v150_v1 = vld [vmem:[%s482_s14 + $0x8] sm:$0xff]  ;;  %v151_v2 = vld [vmem:[%s482_s14 + $0x10] sm:$0xff] }
   0xf   : > { %v182_v3 = vsel %vm181_vm0, %v149_v0, 0.0  ;;  %v183_v4 = vsel %vm181_vm0, %v150_v1, 0.0  ;;  %v185_v5 = vsel %vm181_vm0, %v151_v2, 0.0  ;;  %v152_v6 = vld [vmem:[%s482_s14 + $0x18] sm:$0xff]  ;;  %v153_v9 = vld [vmem:[%s482_s14 + $0x20] sm:$0xff]  ;;  %v154_v12 = vld [vmem:[%s482_s14 + $0x28] sm:$0xff]  ;;  %v253_v20 = vmul.f32 %v149_v0, %v149_v0 }
  0x10   : > { %v184_v7 = vadd.f32 %v183_v4, %v182_v3  ;;  %v187_v8 = vsel %vm181_vm0, %v152_v6, 0.0  ;;  %v189_v11 = vsel %vm181_vm0, %v153_v9, 0.0  ;;  %v191_v14 = vsel %vm181_vm0, %v154_v12, 0.0  ;;  %v155_v15 = vld [vmem:[%s482_s14 + $0x30] sm:$0xff]  ;;  %v156_v18 = vld [vmem:[%s482_s14 + $0x38] sm:$0xff]  ;;  %v157_v24 = vld [vmem:[%s482_s14 + $0x40] sm:$0xff] }
  0x11   : > { %v193_v17 = vsel %vm181_vm0, %v155_v15, 0.0  ;;  %v195_v21 = vsel %vm181_vm0, %v156_v18, 0.0  ;;  %v254_v22 = vmul.f32 %v150_v1, %v150_v1  ;;  %v255_v23 = vmul.f32 %v151_v2, %v151_v2  ;;  %v158_v28 = vld [vmem:[%s482_s14 + $0x48] sm:$0xff]  ;;  %v159_v35 = vld [vmem:[%s482_s14 + $0x50] sm:$0xff]  ;;  %v160_v41 = vld [vmem:[%s482_s14 + $0x58] sm:$0xff] }
  0x12   : > { %v186_v10 = vadd.f32 %v185_v5, %v184_v7  ;;  %v197_v26 = vsel %vm181_vm0, %v157_v24, 0.0  ;;  %v256_v27 = vmul.f32 %v152_v6, %v152_v6  ;;  %v285_v30 = vsel %vm181_vm0, %v253_v20, 0.0  ;;  %v161_v47 = vld [vmem:[%s482_s14 + $0x60] sm:$0xff]  ;;  %v162_v53 = vld [vmem:[%s482_s14 + $0x68] sm:$0xff]  ;;  %v163_v59 = vld [vmem:[%s482_s14 + $0x70] sm:$0xff] }
  0x13   : > { %v199_v31 = vsel %vm181_vm0, %v158_v28, 0.0  ;;  %v257_v32 = vmul.f32 %v153_v9, %v153_v9  ;;  %v286_v33 = vsel %vm181_vm0, %v254_v22, 0.0  ;;  %v288_v34 = vsel %vm181_vm0, %v255_v23, 0.0  ;;  %v164_v1 = vld [vmem:[%s482_s14 + $0x78] sm:$0xff]  ;;  %v165_v7 = vld [vmem:[%s482_s14 + $0x80] sm:$0xff] }
  0x14   : > { %v188_v13 = vadd.f32 %v187_v8, %v186_v10  ;;  %v287_v37 = vadd.f32 %v286_v33, %v285_v30  ;;  %v201_v38 = vsel %vm181_vm0, %v159_v35, 0.0  ;;  %v258_v39 = vmul.f32 %v154_v12, %v154_v12 }
  0x15   : > { %v290_v40 = vsel %vm181_vm0, %v256_v27, 0.0  ;;  %v203_v44 = vsel %vm181_vm0, %v160_v41, 0.0  ;;  %v259_v45 = vmul.f32 %v155_v15, %v155_v15  ;;  %v292_v46 = vsel %vm181_vm0, %v257_v32, 0.0 }
  0x16   : > { %v190_v16 = vadd.f32 %v189_v11, %v188_v13  ;;  %v289_v43 = vadd.f32 %v288_v34, %v287_v37  ;;  %v205_v50 = vsel %vm181_vm0, %v161_v47, 0.0  ;;  %v260_v51 = vmul.f32 %v156_v18, %v156_v18  ;;  %v166_v13 = vld [vmem:[%s482_s14 + $0x88] sm:$0xff] }
  0x17   : > { %v294_v52 = vsel %vm181_vm0, %v258_v39, 0.0  ;;  %v207_v56 = vsel %vm181_vm0, %v162_v53, 0.0  ;;  %v261_v57 = vmul.f32 %v157_v24, %v157_v24  ;;  %v296_v58 = vsel %vm181_vm0, %v259_v45, 0.0  ;;  %v170_v37 = vld [vmem:[%s482_s14 + $0xa8] sm:$0xff] }
  0x18   : > { %v192_v19 = vadd.f32 %v191_v14, %v190_v16  ;;  %v291_v49 = vadd.f32 %v290_v40, %v289_v43  ;;  %v209_v62 = vsel %vm181_vm0, %v163_v59, 0.0  ;;  %v262_v63 = vmul.f32 %v158_v28, %v158_v28  ;;  %v171_v43 = vld [vmem:[%s482_s14 + $0xb0] sm:$0xff] }
  0x19   : > { %v298_v0 = vsel %vm181_vm0, %v260_v51, 0.0  ;;  %v211_v4 = vsel %vm181_vm0, %v164_v1, 0.0  ;;  %v263_v5 = vmul.f32 %v159_v35, %v159_v35  ;;  %v300_v6 = vsel %vm181_vm0, %v261_v57, 0.0 }
  0x1a   : > { %v194_v25 = vadd.f32 %v193_v17, %v192_v19  ;;  %v293_v55 = vadd.f32 %v292_v46, %v291_v49  ;;  %v213_v10 = vsel %vm181_vm0, %v165_v7, 0.0  ;;  %v264_v11 = vmul.f32 %v160_v41, %v160_v41  ;;  %v167_v19 = vld [vmem:[%s482_s14 + $0x90] sm:$0xff]  ;;  %v172_v49 = vld [vmem:[%s482_s14 + $0xb8] sm:$0xff] }
  0x1b   : > { %v302_v12 = vsel %vm181_vm0, %v262_v63, 0.0  ;;  %v215_v16 = vsel %vm181_vm0, %v166_v13, 0.0  ;;  %v265_v17 = vmul.f32 %v161_v47, %v161_v47  ;;  %v304_v18 = vsel %vm181_vm0, %v263_v5, 0.0 }
  0x1c   : > { %v196_v29 = vadd.f32 %v195_v21, %v194_v25  ;;  %v295_v61 = vadd.f32 %v294_v52, %v293_v55  ;;  %v217_v22 = vsel %vm181_vm0, %v167_v19, 0.0  ;;  %v266_v23 = vmul.f32 %v162_v53, %v162_v53  ;;  %v168_v25 = vld [vmem:[%s482_s14 + $0x98] sm:$0xff]  ;;  %v173_v55 = vld [vmem:[%s482_s14 + $0xc0] sm:$0xff] }
  0x1d   : > { %v306_v24 = vsel %vm181_vm0, %v264_v11, 0.0  ;;  %v219_v28 = vsel %vm181_vm0, %v168_v25, 0.0  ;;  %v308_v30 = vsel %vm181_vm0, %v265_v17, 0.0  ;;  %v268_v35 = vmul.f32 %v164_v1, %v164_v1 }
  0x1e   : > { %v198_v36 = vadd.f32 %v197_v26, %v196_v29  ;;  %v297_v3 = vadd.f32 %v296_v58, %v295_v61  ;;  %v267_v29 = vmul.f32 %v163_v59, %v163_v59  ;;  %v223_v40 = vsel %vm181_vm0, %v170_v37, 0.0  ;;  %v174_v61 = vld [vmem:[%s482_s14 + $0xc8] sm:$0xff] }
  0x1f   : > { %v269_v41 = vmul.f32 %v165_v7, %v165_v7  ;;  %v225_v46 = vsel %vm181_vm0, %v171_v43, 0.0  ;;  %v270_v47 = vmul.f32 %v166_v13, %v166_v13  ;;  %v227_v52 = vsel %vm181_vm0, %v172_v49, 0.0 }
  0x20   : > { %v200_v42 = vadd.f32 %v199_v31, %v198_v36  ;;  %v299_v9 = vadd.f32 %v298_v0, %v297_v3  ;;  %v169_v31 = vld [vmem:[%s482_s14 + $0xa0] sm:$0xff]  ;;  %v310_v36 = vsel %vm181_vm0, %v266_v23, 0.0  ;;  %v271_v53 = vmul.f32 %v167_v19, %v167_v19  ;;  %v175_v3 = vld [vmem:[%s482_s14 + $0xd0] sm:$0xff] }
  0x21   : > { %v221_v34 = vsel %vm181_vm0, %v169_v31, 0.0  ;;  %v229_v58 = vsel %vm181_vm0, %v173_v55, 0.0  ;;  %v272_v59 = vmul.f32 %v168_v25, %v168_v25  ;;  %v231_v0 = vsel %vm181_vm0, %v174_v61, 0.0 }
  0x22   : > { %v202_v48 = vadd.f32 %v201_v38, %v200_v42  ;;  %v301_v15 = vadd.f32 %v300_v6, %v299_v9  ;;  %v312_v42 = vsel %vm181_vm0, %v267_v29, 0.0  ;;  %v273_v1 = vmul.f32 %v169_v31, %v169_v31  ;;  %v176_v9 = vld [vmem:[%s482_s14 + $0xd8] sm:$0xff] }
  0x23   : > { %v233_v6 = vsel %vm181_vm0, %v175_v3, 0.0  ;;  %v274_v7 = vmul.f32 %v170_v37, %v170_v37  ;;  %v275_v13 = vmul.f32 %v171_v43, %v171_v43  ;;  %v276_v19 = vmul.f32 %v172_v49, %v172_v49 }
  0x24   : > { %v204_v54 = vadd.f32 %v203_v44, %v202_v48  ;;  %v303_v21 = vadd.f32 %v302_v12, %v301_v15  ;;  %v314_v48 = vsel %vm181_vm0, %v268_v35, 0.0  ;;  %v235_v12 = vsel %vm181_vm0, %v176_v9, 0.0  ;;  %v177_v15 = vld [vmem:[%s482_s14 + $0xe0] sm:$0xff] }
  0x25   : > { %v277_v25 = vmul.f32 %v173_v55, %v173_v55  ;;  %v278_v31 = vmul.f32 %v174_v61, %v174_v61  ;;  %v279_v37 = vmul.f32 %v175_v3, %v175_v3 }
  0x26   : > { %v206_v60 = vadd.f32 %v205_v50, %v204_v54  ;;  %v305_v27 = vadd.f32 %v304_v18, %v303_v21  ;;  %v316_v54 = vsel %vm181_vm0, %v269_v41, 0.0  ;;  %v237_v18 = vsel %vm181_vm0, %v177_v15, 0.0  ;;  %v178_v21 = vld [vmem:[%s482_s14 + $0xe8] sm:$0xff] }
  0x27   : > { %v280_v41 = vmul.f32 %v176_v9, %v176_v9  ;;  %v282_v49 = vmul.f32 %v178_v21, %v178_v21 }
  0x28   : > { %v208_v2 = vadd.f32 %v207_v56, %v206_v60  ;;  %v307_v33 = vadd.f32 %v306_v24, %v305_v27  ;;  %v318_v60 = vsel %vm181_vm0, %v270_v47, 0.0  ;;  %v239_v24 = vsel %vm181_vm0, %v178_v21, 0.0  ;;  %v179_v27 = vld [vmem:[%s482_s14 + $0xf0] sm:$0xff] }
  0x2a   : > { %v210_v8 = vadd.f32 %v209_v62, %v208_v2  ;;  %v309_v39 = vadd.f32 %v308_v30, %v307_v33  ;;  %v320_v2 = vsel %vm181_vm0, %v271_v53, 0.0  ;;  %v241_v30 = vsel %vm181_vm0, %v179_v27, 0.0  ;;  %v180_v33 = vld [vmem:[%s482_s14 + $0xf8] sm:$0xff] }
  0x2b   : > { %v283_v53 = vmul.f32 %v179_v27, %v179_v27 }
  0x2c   : > { %v212_v14 = vadd.f32 %v211_v4, %v210_v8  ;;  %v311_v45 = vadd.f32 %v310_v36, %v309_v39  ;;  %v322_v8 = vsel %vm181_vm0, %v272_v59, 0.0  ;;  %v243_v36 = vsel %vm181_vm0, %v180_v33, 0.0 }
  0x2d   : > { %v344_v61 = vsel %vm181_vm0, %v283_v53, 0.0 }
  0x2e   : > { %v214_v20 = vadd.f32 %v213_v10, %v212_v14  ;;  %v313_v51 = vadd.f32 %v312_v42, %v311_v45  ;;  %v324_v14 = vsel %vm181_vm0, %v273_v1, 0.0  ;;  %v334_v42 = vsel %vm181_vm0, %v278_v31, 0.0 }
  0x2f   : > { %v281_v45 = vmul.f32 %v177_v15, %v177_v15 }
  0x30   : > { %v216_v26 = vadd.f32 %v215_v16, %v214_v20  ;;  %v315_v57 = vadd.f32 %v314_v48, %v313_v51  ;;  %v326_v20 = vsel %vm181_vm0, %v274_v7, 0.0 }
  0x32   : > { %v218_v32 = vadd.f32 %v217_v22, %v216_v26  ;;  %v317_v63 = vadd.f32 %v316_v54, %v315_v57  ;;  %v328_v26 = vsel %vm181_vm0, %v275_v13, 0.0  ;;  %v340_v54 = vsel %vm181_vm0, %v281_v45, 0.0 }
  0x33   : > { %v284_v57 = vmul.f32 %v180_v33, %v180_v33 }
  0x34   : > { %v220_v38 = vadd.f32 %v219_v28, %v218_v32  ;;  %v319_v5 = vadd.f32 %v318_v60, %v317_v63  ;;  %v330_v32 = vsel %vm181_vm0, %v276_v19, 0.0 }
  0x36   : > { %v222_v44 = vadd.f32 %v221_v34, %v220_v38  ;;  %v321_v11 = vadd.f32 %v320_v2, %v319_v5  ;;  %v332_v38 = vsel %vm181_vm0, %v277_v25, 0.0 }
  0x38   : > { %v224_v50 = vadd.f32 %v223_v40, %v222_v44  ;;  %v323_v17 = vadd.f32 %v322_v8, %v321_v11 }
  0x3a   : > { %v226_v56 = vadd.f32 %v225_v46, %v224_v50  ;;  %v325_v23 = vadd.f32 %v324_v14, %v323_v17  ;;  %v336_v46 = vsel %vm181_vm0, %v279_v37, 0.0  ;;  %v338_v50 = vsel %vm181_vm0, %v280_v41, 0.0 }
  0x3c   : > { %v228_v62 = vadd.f32 %v227_v52, %v226_v56  ;;  %v327_v29 = vadd.f32 %v326_v20, %v325_v23 }
  0x3e   : > { %v230_v4 = vadd.f32 %v229_v58, %v228_v62  ;;  %v329_v35 = vadd.f32 %v328_v26, %v327_v29  ;;  %v342_v58 = vsel %vm181_vm0, %v282_v49, 0.0 }
  0x40   : > { %v232_v10 = vadd.f32 %v231_v0, %v230_v4  ;;  %v331_v40 = vadd.f32 %v330_v32, %v329_v35  ;;  %v346_v0 = vsel %vm181_vm0, %v284_v57, 0.0 }
  0x42   : > { %v234_v16 = vadd.f32 %v233_v6, %v232_v10  ;;  %v333_v44 = vadd.f32 %v332_v38, %v331_v40 }
  0x44   : > { %v236_v22 = vadd.f32 %v235_v12, %v234_v16  ;;  %v335_v48 = vadd.f32 %v334_v42, %v333_v44 }
  0x46   : > { %v238_v28 = vadd.f32 %v237_v18, %v236_v22  ;;  %v337_v52 = vadd.f32 %v336_v46, %v335_v48 }
  0x48   : > { %v240_v34 = vadd.f32 %v239_v24, %v238_v28  ;;  %v339_v56 = vadd.f32 %v338_v50, %v337_v52 }
  0x4a   : > { %v242_v39 = vadd.f32 %v241_v30, %v240_v34  ;;  %v341_v60 = vadd.f32 %v340_v54, %v339_v56 }
  0x4c   : > { %v244_v43 = vadd.f32 %v243_v36, %v242_v39  ;;  %v343_v63 = vadd.f32 %v342_v58, %v341_v60 }
  0x4e   : > { %v245_v47 = vrot.slane %v244_v43, 4  ;;  %v345_v2 = vadd.f32 %v344_v61, %v343_v63 }
  0x50   : > { %v246_v51 = vadd.f32 %v245_v47, %v244_v43  ;;  %v347_v3 = vadd.f32 %v346_v0, %v345_v2 }
  0x52   : > { %v247_v55 = vrot.slane %v246_v51, 2  ;;  %v348_v4 = vrot.slane %v347_v3, 4 }
  0x54   : > { %v248_v59 = vadd.f32 %v247_v55, %v246_v51  ;;  %v349_v5 = vadd.f32 %v348_v4, %v347_v3 }
  0x56   : > { %v249_v62 = vrot.slane %v248_v59, 1  ;;  %v350_v6 = vrot.slane %v349_v5, 2 }
  0x58   : > { %v250_v1 = vadd.f32 %v249_v62, %v248_v59  ;;  %v351_v7 = vadd.f32 %v350_v6, %v349_v5 }
  0x5a   : > { %252 = vst.msk [vmem:[%s145_s17] sm:$0x1] %vm251_vm1, %v250_v1  ;;  %v352_v8 = vrot.slane %v351_v7, 1 }
  0x5c   : > { %v353_v9 = vadd.f32 %v352_v8, %v351_v7 }
  0x5e   : > { %354 = vst.msk [vmem:[%s148_s20] sm:$0x1] %vm251_vm1, %v353_v9 }
  0x5f PF: > { %s13_s9 = sadd.s32 1, %s451_s9  }
  0x60   : > { %p10_p4 = scmp.ge.s32.totalorder %s13_s9, 4  }
  0x62   :  { %12 = sbr.rel (!%p10_p4) target bundleno = 1 (0x1), region = 66 }

// kernel: basic_block_forward.4
= control target key start
LH: loop header
LB: loop body
LE: loop exit
PB: predicated region body
PF: predicated region fallthrough
CT: control target
= control target key end

     0   :  { %s1686_s27 = smov 0   ;;  %s2280_s0 = inlined_call_operand.vmem [shape: f32[8,9,9,4], index: 0, kind: input, shape index: {}]   ;;  %s2281_s1 = inlined_call_operand.vmem [shape: f32[1,4], index: 1, kind: input, shape index: {}]   ;;  %s2282_s2 = inlined_call_operand.vmem [shape: f32[1,4], index: 2, kind: input, shape index: {}]   ;;  %s2283_s3 = inlined_call_operand.vmem [shape: bf16[9,4,8], index: 3, kind: input, shape index: {}]   ;;  %s2284_s4 = inlined_call_operand.vmem [shape: bf16[4,8], index: 4, kind: input, shape index: {}]   ;;  %s2285_s5 = inlined_call_operand.vmem [shape: f32[128,8], index: 5, kind: output, shape index: {0}]   ;;  %s2286_s6 = inlined_call_operand.vmem [shape: f32[128,8], index: 6, kind: output, shape index: {1}]   ;;  %s2287_s7 = inlined_call_operand.vmem [shape: f32[2,1,8], index: 7, kind: output, shape index: {2}]   ;;  %s2288_s8 = inlined_call_operand.vmem [shape: f32[2,1,8], index: 8, kind: output, shape index: {3}]  }
   0x1 LB: > { %s1692_s28 = sadd.s32 4294967295, %s1638_s27   ;;  %p1505_p0 = scmp.ge.s32.totalorder %s1638_s27, 1  ;;  %s1638_s27 = sphi %s1686_s27, %s19_s27  }
   0x2   : > { %p271_p1 = scmp.lt.s32.totalorder %s1638_s27, 3 }
   0x4   : > { %p272_p2 = pnand %p1505_p0, %p271_p1 }
   0x5   : > { %s1506_s11 = sshll.u32 (!%p272_p2), %s1692_s28, 2  ;;  %s1508_s16 = sshll.u32 (!%p272_p2), %s1692_s28, 3 }
   0x6   : > { %275 = sbr.rel (%p272_p2) target bundleno = 337 (0x151), region = 40  ;;  %p318_p3 = scmp.lt.s32.totalorder (!%p272_p2), %s1506_s11, 7 }
   0x7   : > { %p325_p4 = scmp.lt.s32.totalorder (!%p272_p2), %s1508_s16, 15  ;;  %p336_p5 = scmp.lt.s32.totalorder (!%p272_p2), %s1692_s28, 1 }
   0xb   : > { %v1520_v0 = vld [vmem:[%s2283_s3 + $0x2] sm:$0x3]  ;;  %vm480_vm0 = vcmask 1041408   ;;  %v408_v1 = vld [vmem:[%s2283_s3] sm:$0x3]  ;;  %v345_v2 = vlaneseq  ;;  %s2296_s11 = smov (!%p318_p3, %s1506_s11), 7 }
   0xc   : > { %v482_v3 = vsel %vm480_vm0, %v1520_v0, 0  ;;  %v526_v4 = vsel %vm480_vm0, %v408_v1, 0  ;;  %v1708_v6 = vld [vmem:[%s2281_s1] ss:$0 sm:$0xff]  ;;  %v1529_v7 = vld [vmem:[%s2283_s3 + $0x4] sm:$0x3] }
   0xd   : > { %1618 = vmatpush.bf16.msra.mxu2 %v482_v3  ;;  %1619 = vmatpush.bf16.msra.mxu3 %v526_v4  ;;  %v346_v5 = vshrl.u32 %v345_v2, 7  ;;  %v627_v9 = vsel %vm480_vm0, %v1529_v7, 0  ;;  %v1542_v10 = vld [vmem:[%s2283_s3 + $0x6] sm:$0x3]  ;;  %v1555_v11 = vld [vmem:[%s2283_s3 + $0x8] sm:$0x3] }
   0xe   : > { %491 = vmatpush.bf16.msra.mxu0 %v482_v3  ;;  %535 = vmatpush.bf16.msra.mxu1 %v526_v4  ;;  %s1620_s20 = smul.u32 144, %s2296_s11  ;;  %v726_v12 = vsel %vm480_vm0, %v1542_v10, 0  ;;  %v825_v13 = vsel %vm480_vm0, %v1555_v11, 0  ;;  %v864_v14 = vld [vmem:[%s2284_s4] sm:$0x3]  ;;  %vm467_vm7 = vcmask 31744  }
   0xf   : > { %v1713_v8 = vmul.u32 2, %v346_v5  ;;  %v866_v16 = vsel %vm480_vm0, %v864_v14, 0  ;;  %v1737_v17 = vld [vmem:[%s2282_s2] ss:$0 sm:$0xff]  ;;  %v1640_v60 = vmov 0.0   ;;  %s2298_s16 = smov (!%p325_p4, %s1508_s16), 15 }
  0x10   : > { %s1732_s25 = scalar_lea.vmem %s2280_s0, %s1620_s20  ;;  %s1509_s17 = sshll.u32 %s2298_s16, 3  ;;  %vm897_vm11 = vcmask 64512   ;;  %vm1321_vm12 = vcmask 57344  }
  0x11   : > { %636 = vmatpush.bf16.msrb.mxu2 %v627_v9  ;;  %v442_v15 = vadd.s32 1, %v1713_v8  ;;  %735 = vmatpush.bf16.msrb.mxu3 %v726_v12  ;;  %v1516_v18 = vld [vmem:[%s1732_s25 + $0xd0] sm:$0xff]  ;;  %v1517_v19 = vld [vmem:[%s1732_s25 + $0xe0] sm:$0xff]  ;;  %vm386_vm2 = vcmp.ge.s32.totalorder %v1713_v8, 1  ;;  %vm389_vm3 = vcmp.le.s32.totalorder %v1713_v8, 16  ;;  %s2165_s20 = scalar_lea.vmem %s2286_s6, %s1509_s17  ;;  %s2216_s23 = scalar_lea.vmem %s2285_s5, %s1509_s17 }
  0x12   : > { %834 = vmatpush.bf16.msrb.mxu0 %v825_v13  ;;  %875 = vmatpush.bf16.msrb.mxu1 %v866_v16  ;;  %v351_v20 = vld [vmem:[%s1732_s25 + $0x40] sm:$0xff]  ;;  %v422_v21 = vmul.f32 %v1708_v6, %v1516_v18  ;;  %v423_v22 = vmul.f32 %v1708_v6, %v1517_v19  ;;  %v352_v23 = vld [vmem:[%s1732_s25 + $0x50] sm:$0xff]  ;;  %vm1758_vm5 = vmand %vm386_vm2, %vm389_vm3  ;;  %s2300_s28 = smov (!%p336_p5, %s1692_s28), 1 }
  0x13   : > { %vm443_vm1 = vcmp.ge.s32.totalorder %v442_v15, 1  ;;  %vm446_vm4 = vcmp.le.s32.totalorder %v442_v15, 16  ;;  %v362_v24 = vmul.f32 %v1708_v6, %v351_v20  ;;  %v1513_v25 = vld [vmem:[%s1732_s25 + $0xa0] sm:$0xff]  ;;  %v363_v26 = vmul.f32 %v1708_v6, %v352_v23  ;;  %v348_v28 = vld [vmem:[%s1732_s25 + $0x10] sm:$0xff]  ;;  %s338_s26 = scalar_lea.vmem %s2287_s7, %s2300_s28  ;;  %s341_s9 = scalar_lea.vmem %s2288_s8, %s2300_s28 }
  0x14   : > { %v419_v27 = vmul.f32 %v1708_v6, %v1513_v25  ;;  %v1518_v29 = vld [vmem:[%s1732_s25 + $0xf0] sm:$0xff]  ;;  %v430_v30 = vadd.f32 %v1737_v17, %v422_v21  ;;  %v431_v31 = vadd.f32 %v1737_v17, %v423_v22  ;;  %v359_v34 = vmul.f32 %v1708_v6, %v348_v28  ;;  %v1519_v35 = vld [vmem:[%s1732_s25 + $0x100] sm:$0xff]  ;;  %vm1765_vm6 = vmand %vm443_vm1, %vm446_vm4 }
  0x15   : > { %v373_v32 = vadd.f32 %v1737_v17, %v362_v24  ;;  %v374_v37 = vadd.f32 %v1737_v17, %v363_v26  ;;  %v424_v39 = vmul.f32 %v1708_v6, %v1518_v29  ;;  %v425_v46 = vmul.f32 %v1708_v6, %v1519_v35  ;;  %v353_v51 = vld [vmem:[%s1732_s25 + $0x60] sm:$0xff]  ;;  %v354_v52 = vld [vmem:[%s1732_s25 + $0x70] sm:$0xff]  ;;  %v1572_v24 = vld [vmem:[%s2283_s3 + $0xa] sm:$0x3] }
  0x16   : > { %v427_v38 = vadd.f32 %v1737_v17, %v419_v27  ;;  %v438_v40 = vmax.f32 %v430_v30, 0.0  ;;  %v439_v41 = vmax.f32 %v431_v31, 0.0  ;;  %v370_v43 = vadd.f32 %v1737_v17, %v359_v34  ;;  %v1514_v56 = vld [vmem:[%s1732_s25 + $0xb0] sm:$0xff]  ;;  %v1515_v57 = vld [vmem:[%s1732_s25 + $0xc0] sm:$0xff]  ;;  %v1585_v27 = vld [vmem:[%s2283_s3 + $0xc] sm:$0x3] }
  0x17   : > { %v381_v42 = vmax.f32 %v373_v32, 0.0  ;;  %v382_v44 = vmax.f32 %v374_v37, 0.0  ;;  %v349_v58 = vld [vmem:[%s1732_s25 + $0x20] sm:$0xff]  ;;  %v432_v63 = vadd.f32 %v1737_v17, %v424_v39  ;;  %v350_v0 = vld [vmem:[%s1732_s25 + $0x30] sm:$0xff]  ;;  %v433_v2 = vadd.f32 %v1737_v17, %v425_v46  ;;  %v1598_v28 = vld [vmem:[%s2283_s3 + $0xe] sm:$0x3] }
  0x18   : > { %v435_v45 = vmax.f32 %v427_v38, 0.0  ;;  %v1776_v47 = vsel %vm1765_vm6, %v438_v40, 0.0  ;;  %v1780_v48 = vsel %vm1765_vm6, %v439_v41, 0.0  ;;  %v378_v50 = vmax.f32 %v370_v43, 0.0  ;;  %v1611_v34 = vld [vmem:[%s2283_s3 + $0x10] sm:$0x3] }
  0x19   : > { %v1784_v49 = vsel %vm1758_vm5, %v381_v42, 0.0  ;;  %v463_v53 = vpack.c.bf16 %v1780_v48, %v1776_v47  ;;  %v1792_v54 = vsel %vm1758_vm5, %v382_v44, 0.0  ;;  %v364_v3 = vmul.f32 %v1708_v6, %v353_v51  ;;  %v558_v39 = vld [vmem:[%s1732_s25 + $0x11] sm:$0xff]  ;;  %v1534_v40 = vld [vmem:[%s1732_s25 + $0x120] sm:$0xff] }
  0x1a   : > { %v1796_v55 = vsel %vm1765_vm6, %v435_v45, 0.0  ;;  %v406_v59 = vpack.c.bf16 %v1792_v54, %v1784_v49  ;;  %v1807_v62 = vsel %vm1758_vm5, %v378_v50, 0.0  ;;  %v365_v4 = vmul.f32 %v1708_v6, %v354_v52  ;;  %v1535_v44 = vld [vmem:[%s1732_s25 + $0x130] sm:$0xff]  ;;  %v1548_v46 = vld [vmem:[%s1732_s25 + $0x1c0] sm:$0xff] }
  0x1b   : > { %v461_v61 = vpack.c.bf16 %v1796_v55, %v1640_v60  ;;  %1523 = vmatmul.msk.bf16.vlgmr.msra.gmra.mxu2 %vm467_vm7, %v463_v53  ;;  %v404_v1 = vpack.c.bf16 %v1807_v62, %v1640_v60  ;;  %v420_v5 = vmul.f32 %v1708_v6, %v1514_v56  ;;  %v421_v7 = vmul.f32 %v1708_v6, %v1515_v57  ;;  %v1547_v45 = vld [vmem:[%s1732_s25 + $0x1b0] sm:$0xff] }
  0x1c   : > { %1527 = vmatmul.msk.bf16.vlgmr.msra.gmra.mxu3 %vm467_vm7, %v406_v59  ;;  %v360_v9 = vmul.f32 %v1708_v6, %v349_v58  ;;  %v375_v10 = vadd.f32 %v1737_v17, %v364_v3  ;;  %v376_v11 = vadd.f32 %v1737_v17, %v365_v4  ;;  %v361_v12 = vmul.f32 %v1708_v6, %v350_v0 }
  0x1d   : > { %1521 = vmatmul.msk.bf16.vlgmr.msra.gmra.mxu0 %vm467_vm7, %v461_v61  ;;  %1525 = vmatmul.msk.bf16.vlgmr.msra.gmra.mxu1 %vm467_vm7, %v404_v1  ;;  %v428_v13 = vadd.f32 %v1737_v17, %v420_v5  ;;  %v429_v14 = vadd.f32 %v1737_v17, %v421_v7  ;;  %v440_v18 = vmax.f32 %v432_v63, 0.0  ;;  %v441_v19 = vmax.f32 %v433_v2, 0.0 }
  0x1e   : > { %v371_v15 = vadd.f32 %v1737_v17, %v360_v9  ;;  %v372_v16 = vadd.f32 %v1737_v17, %v361_v12  ;;  %v383_v20 = vmax.f32 %v375_v10, 0.0  ;;  %v384_v21 = vmax.f32 %v376_v11, 0.0 }
  0x1f   : > { %v436_v22 = vmax.f32 %v428_v13, 0.0  ;;  %v437_v23 = vmax.f32 %v429_v14, 0.0  ;;  %v1841_v29 = vsel %vm1765_vm6, %v440_v18, 0.0  ;;  %v1845_v30 = vsel %vm1765_vm6, %v441_v19, 0.0 }
  0x20   : > { %v379_v25 = vmax.f32 %v371_v15, 0.0  ;;  %v380_v26 = vmax.f32 %v372_v16, 0.0  ;;  %v1849_v31 = vsel %vm1758_vm5, %v383_v20, 0.0  ;;  %v965_v32 = vsel %vm480_vm0, %v1572_v24, 0  ;;  %v559_v15 = vld [vmem:[%s1732_s25 + $0x21] sm:$0xff]  ;;  %v560_v16 = vld [vmem:[%s1732_s25 + $0x31] sm:$0xff] }
  0x21   : > { %v1857_v35 = vsel %vm1758_vm5, %v384_v21, 0.0  ;;  %v1861_v37 = vsel %vm1765_vm6, %v436_v22, 0.0  ;;  %v1865_v38 = vsel %vm1765_vm6, %v437_v23, 0.0  ;;  %974 = vmatpush.bf16.msra.mxu2 %v965_v32  ;;  %v1064_v41 = vsel %vm480_vm0, %v1585_v27, 0  ;;  %v1536_v22 = vld [vmem:[%s1732_s25 + $0x140] sm:$0xff]  ;;  %v1537_v23 = vld [vmem:[%s1732_s25 + $0x150] sm:$0xff] }
  0x22   : > { %v1872_v42 = vsel %vm1758_vm5, %v379_v25, 0.0  ;;  %v1876_v43 = vsel %vm1758_vm5, %v380_v26, 0.0  ;;  %1073 = vmatpush.bf16.msra.mxu3 %v1064_v41  ;;  %v1163_v50 = vsel %vm480_vm0, %v1598_v28, 0  ;;  %v464_v51 = vpack.c.bf16 %v1845_v30, %v1841_v29  ;;  %v1549_v24 = vld [vmem:[%s1732_s25 + $0x1d0] sm:$0xff]  ;;  %v1550_v25 = vld [vmem:[%s1732_s25 + $0x1e0] sm:$0xff] }
  0x23   : > { %1172 = vmatpush.bf16.msra.mxu0 %v1163_v50  ;;  %v1261_v52 = vsel %vm480_vm0, %v1611_v34, 0  ;;  %v407_v53 = vpack.c.bf16 %v1857_v35, %v1849_v31  ;;  %v462_v56 = vpack.c.bf16 %v1865_v38, %v1861_v37  ;;  %v566_v57 = vmul.f32 %v1708_v6, %v558_v39 }
  0x24   : > { %v675_v58 = vmul.f32 %v1708_v6, %v1534_v40  ;;  %1270 = vmatpush.bf16.msra.mxu1 %v1261_v52  ;;  %v405_v59 = vpack.c.bf16 %v1876_v43, %v1872_v42  ;;  %v676_v61 = vmul.f32 %v1708_v6, %v1535_v44  ;;  %v774_v63 = vmul.f32 %v1708_v6, %v1547_v45 }
  0x25   : > { %v775_v0 = vmul.f32 %v1708_v6, %v1548_v46  ;;  %v589_v1 = vadd.s32 2, %v1713_v8  ;;  %v574_v2 = vadd.f32 %v1737_v17, %v566_v57  ;;  %v567_v27 = vmul.f32 %v1708_v6, %v559_v15 }
  0x26   : > { %v683_v3 = vadd.f32 %v1737_v17, %v675_v58  ;;  %v684_v4 = vadd.f32 %v1737_v17, %v676_v61  ;;  %v782_v5 = vadd.f32 %v1737_v17, %v774_v63  ;;  %v568_v28 = vmul.f32 %v1708_v6, %v560_v16  ;;  %v561_v63 = vld [vmem:[%s1732_s25 + $0x41] sm:$0xff] }
  0x27   : > { %v783_v8 = vadd.f32 %v1737_v17, %v775_v0  ;;  %vm590_vm8 = vcmp.ge.s32.totalorder %v589_v1, 1  ;;  %vm593_vm9 = vcmp.le.s32.totalorder %v589_v1, 16  ;;  %v582_v7 = vmax.f32 %v574_v2, 0.0 }
  0x28   : > { %vm1906_vm10 = vmand %vm590_vm8, %vm593_vm9  ;;  %v691_v10 = vmax.f32 %v683_v3, 0.0  ;;  %v692_v11 = vmax.f32 %v684_v4, 0.0  ;;  %v790_v12 = vmax.f32 %v782_v5, 0.0  ;;  %v677_v39 = vmul.f32 %v1708_v6, %v1536_v22  ;;  %v562_v4 = vld [vmem:[%s1732_s25 + $0x51] sm:$0xff]  ;;  %v1538_v5 = vld [vmem:[%s1732_s25 + $0x160] sm:$0xff] }
  0x29   : > { %v791_v13 = vmax.f32 %v783_v8, 0.0  ;;  %v1912_v14 = vsel %vm1906_vm10, %v582_v7, 0.0  ;;  %v678_v40 = vmul.f32 %v1708_v6, %v1537_v23  ;;  %v776_v41 = vmul.f32 %v1708_v6, %v1549_v24 }
  0x2a   : > { %v699_v18 = vsel %vm1758_vm5, %v691_v10, 0.0  ;;  %v700_v19 = vsel %vm1758_vm5, %v692_v11, 0.0  ;;  %v798_v20 = vsel %vm1765_vm6, %v790_v12, 0.0  ;;  %v608_v26 = vpack.c.bf16 %v1912_v14, %v1640_v60  ;;  %v1539_v10 = vld [vmem:[%s1732_s25 + $0x170] sm:$0xff]  ;;  %v1552_v12 = vld [vmem:[%s1732_s25 + $0x200] sm:$0xff] }
  0x2b   : > { %1524 = vmatmul.msk.bf16.gmra.mxu2 %vm467_vm7, %v464_v51  ;;  %v799_v21 = vsel %vm1765_vm6, %v791_v13, 0.0  ;;  %v707_v32 = vpack.c.bf16 %v700_v19, %v699_v18  ;;  %v777_v44 = vmul.f32 %v1708_v6, %v1550_v25  ;;  %v575_v45 = vadd.f32 %v1737_v17, %v567_v27  ;;  %v1551_v11 = vld [vmem:[%s1732_s25 + $0x1f0] sm:$0xff] }
  0x2c   : > { %1528 = vmatmul.msk.bf16.gmra.mxu3 %vm467_vm7, %v407_v53  ;;  %v806_v34 = vpack.c.bf16 %v799_v21, %v798_v20  ;;  %v576_v60 = vadd.f32 %v1737_v17, %v568_v28  ;;  %v685_v46 = vadd.f32 %v1737_v17, %v677_v39  ;;  %v686_v50 = vadd.f32 %v1737_v17, %v678_v40 }
  0x2d   : > { %1522 = vmatmul.msk.bf16.gmra.mxu0 %vm467_vm7, %v462_v56  ;;  %1526 = vmatmul.msk.bf16.gmra.mxu1 %vm467_vm7, %v405_v59  ;;  %v784_v51 = vadd.f32 %v1737_v17, %v776_v41  ;;  %v785_v52 = vadd.f32 %v1737_v17, %v777_v44  ;;  %v583_v53 = vmax.f32 %v575_v45, 0.0  ;;  %v569_v13 = vmul.f32 %v1708_v6, %v561_v63  ;;  %v1553_v63 = vld [vmem:[%s1732_s25 + $0x210] sm:$0xff] }
  0x2e   : > { %v584_v56 = vmax.f32 %v576_v60, 0.0  ;;  %v693_v57 = vmax.f32 %v685_v46, 0.0  ;;  %v694_v58 = vmax.f32 %v686_v50, 0.0  ;;  %v570_v18 = vmul.f32 %v1708_v6, %v562_v4 }
  0x2f   : > { %v792_v59 = vmax.f32 %v784_v51, 0.0  ;;  %v793_v61 = vmax.f32 %v785_v52, 0.0  ;;  %v1949_v0 = vsel %vm1906_vm10, %v583_v53, 0.0  ;;  %v679_v19 = vmul.f32 %v1708_v6, %v1538_v5 }
  0x30   : > { %v1953_v1 = vsel %vm1906_vm10, %v584_v56, 0.0  ;;  %v701_v2 = vsel %vm1758_vm5, %v693_v57, 0.0  ;;  %v702_v3 = vsel %vm1758_vm5, %v694_v58, 0.0  ;;  %v680_v21 = vmul.f32 %v1708_v6, %v1539_v10  ;;  %v563_v56 = vld [vmem:[%s1732_s25 + $0x61] sm:$0xff]  ;;  %v564_v57 = vld [vmem:[%s1732_s25 + $0x71] sm:$0xff] }
  0x31   : > { %v800_v8 = vsel %vm1765_vm6, %v792_v59, 0.0  ;;  %v801_v7 = vsel %vm1765_vm6, %v793_v61, 0.0  ;;  %v609_v15 = vpack.c.bf16 %v1953_v1, %v1949_v0  ;;  %v708_v16 = vpack.c.bf16 %v702_v3, %v701_v2  ;;  %v1540_v58 = vld [vmem:[%s1732_s25 + $0x180] sm:$0xff]  ;;  %v1541_v59 = vld [vmem:[%s1732_s25 + $0x190] sm:$0xff] }
  0x32   : > { %v807_v20 = vpack.c.bf16 %v801_v7, %v800_v8  ;;  %v778_v22 = vmul.f32 %v1708_v6, %v1551_v11  ;;  %v779_v23 = vmul.f32 %v1708_v6, %v1552_v12  ;;  %v577_v24 = vadd.f32 %v1737_v17, %v569_v13  ;;  %v1554_v2 = vld [vmem:[%s1732_s25 + $0x220] sm:$0xff] }
  0x33   : > { %v578_v25 = vadd.f32 %v1737_v17, %v570_v18  ;;  %v688_v27 = vadd.f32 %v1737_v17, %v680_v21  ;;  %v571_v5 = vmul.f32 %v1708_v6, %v563_v56  ;;  %v572_v8 = vmul.f32 %v1708_v6, %v564_v57 }
  0x34   : > { %v786_v28 = vadd.f32 %v1737_v17, %v778_v22  ;;  %v681_v7 = vmul.f32 %v1708_v6, %v1540_v58  ;;  %v682_v10 = vmul.f32 %v1708_v6, %v1541_v59  ;;  %v780_v11 = vmul.f32 %v1708_v6, %v1553_v63  ;;  %v1566_v63 = vld [vmem:[%s1732_s25 + $0x141] sm:$0xff] }
  0x35   : > { %v586_v39 = vmax.f32 %v578_v25, 0.0  ;;  %v696_v41 = vmax.f32 %v688_v27, 0.0  ;;  %v781_v12 = vmul.f32 %v1708_v6, %v1554_v2  ;;  %v1045_v13 = vpack.c.bf16 %v1872_v42, %v1807_v62  ;;  %v1567_v2 = vld [vmem:[%s1732_s25 + $0x151] sm:$0xff] }
  0x36   : > { %v794_v44 = vmax.f32 %v786_v28, 0.0  ;;  %v689_v18 = vadd.f32 %v1737_v17, %v681_v7  ;;  %v788_v62 = vadd.f32 %v1737_v17, %v780_v11  ;;  %v1242_v7 = vpack.c.bf16 %v1949_v0, %v1912_v14  ;;  %v1568_v0 = vld [vmem:[%s1732_s25 + $0x161] sm:$0xff] }
  0x37   : > { %v1992_v46 = vsel %vm1906_vm10, %v586_v39, 0.0  ;;  %v704_v51 = vsel %vm1758_vm5, %v696_v41, 0.0  ;;  %v789_v42 = vadd.f32 %v1737_v17, %v781_v12  ;;  %v1565_v41 = vld [vmem:[%s1732_s25 + $0x131] sm:$0xff] }
  0x38   : > { %v802_v52 = vsel %vm1765_vm6, %v794_v44, 0.0  ;;  %v697_v22 = vmax.f32 %v689_v18, 0.0  ;;  %v1145_v18 = vpack.c.bf16 %v1776_v47, %v1865_v38 }
  0x39   : > { %v797_v25 = vmax.f32 %v789_v42, 0.0 }
  0x3a   : > { %v705_v28 = vsel %vm1758_vm5, %v697_v22, 0.0  ;;  %v1584_v22 = vld [vmem:[%s1732_s25 + $0x80] sm:$0xff] }
  0x3b   : > { %1530 = vmatmul.msk.bf16.vlgmr.msrb.gmra.mxu2 %vm467_vm7, %v608_v26  ;;  %v687_v26 = vadd.f32 %v1737_v17, %v679_v19  ;;  %v690_v19 = vadd.f32 %v1737_v17, %v682_v10  ;;  %v805_v39 = vsel %vm1765_vm6, %v797_v25, 0.0  ;;  %v1610_v25 = vld [vmem:[%s1732_s25 + $0x81] sm:$0xff] }
  0x3c   : > { %1543 = vmatmul.msk.bf16.vlgmr.msrb.gmra.mxu3 %vm467_vm7, %v707_v32  ;;  %v787_v32 = vadd.f32 %v1737_v17, %v779_v23 }
  0x3d   : > { %1556 = vmatmul.msk.bf16.vlgmr.msrb.gmra.mxu0 %vm467_vm7, %v806_v34  ;;  %1560 = vmatmul.msk.bf16.vlgmr.msrb.gmra.mxu1 %vm467_vm7, %v806_v34  ;;  %v585_v34 = vmax.f32 %v577_v24, 0.0  ;;  %v695_v40 = vmax.f32 %v687_v26, 0.0  ;;  %v698_v23 = vmax.f32 %v690_v19, 0.0  ;;  %v796_v24 = vmax.f32 %v788_v62, 0.0 }
  0x3e   : > { %v795_v45 = vmax.f32 %v787_v32, 0.0  ;;  %v918_v19 = vmul.f32 %v1708_v6, %v1568_v0 }
  0x3f   : > { %v1988_v60 = vsel %vm1906_vm10, %v585_v34, 0.0  ;;  %v703_v50 = vsel %vm1758_vm5, %v695_v40, 0.0  ;;  %v706_v32 = vsel %vm1758_vm5, %v698_v23, 0.0  ;;  %v804_v34 = vsel %vm1765_vm6, %v796_v24, 0.0  ;;  %v1564_v40 = vld [vmem:[%s1732_s25 + $0x121] sm:$0xff]  ;;  %v1597_v23 = vld [vmem:[%s1732_s25 + $0x110] sm:$0xff] }
  0x40   : > { %v803_v53 = vsel %vm1765_vm6, %v795_v45, 0.0  ;;  %v610_v61 = vpack.c.bf16 %v1992_v46, %v1988_v60  ;;  %v709_v3 = vpack.c.bf16 %v704_v51, %v703_v50  ;;  %v710_v45 = vpack.c.bf16 %v706_v32, %v705_v28 }
  0x41   : > { %v808_v4 = vpack.c.bf16 %v803_v53, %v802_v52  ;;  %v809_v50 = vpack.c.bf16 %v805_v39, %v804_v34  ;;  %v914_v51 = vmul.f32 %v1708_v6, %v1564_v40  ;;  %v915_v52 = vmul.f32 %v1708_v6, %v1565_v41 }
  0x42   : > { %v1243_v42 = vpack.c.bf16 %v1988_v60, %v1953_v1  ;;  %v1570_v60 = vld [vmem:[%s1732_s25 + $0x181] sm:$0xff]  ;;  %v1047_v28 = vpack.c.bf16 %v1849_v31, %v1792_v54  ;;  %v1146_v32 = vpack.c.bf16 %v1841_v29, %v1780_v48 }
  0x43   : > { %v922_v53 = vadd.f32 %v1737_v17, %v914_v51  ;;  %v923_v56 = vadd.f32 %v1737_v17, %v915_v52  ;;  %v920_v34 = vmul.f32 %v1708_v6, %v1570_v60  ;;  %v1217_v51 = vmul.f32 %v1708_v6, %v1610_v25 }
  0x45   : > { %v930_v57 = vmax.f32 %v922_v53, 0.0  ;;  %v931_v58 = vmax.f32 %v923_v56, 0.0  ;;  %v928_v48 = vadd.f32 %v1737_v17, %v920_v34 }
  0x47   : > { %v938_v59 = vsel %vm1906_vm10, %v930_v57, 0.0  ;;  %v936_v56 = vmax.f32 %v928_v48, 0.0 }
  0x4b   : > { %1531 = vmatmul.msk.bf16.gmra.mxu2 %vm467_vm7, %v609_v15  ;;  %v579_v15 = vadd.f32 %v1737_v17, %v571_v5  ;;  %v916_v5 = vmul.f32 %v1708_v6, %v1566_v63 }
  0x4c   : > { %1544 = vmatmul.msk.bf16.gmra.mxu3 %vm467_vm7, %v708_v16  ;;  %v580_v16 = vadd.f32 %v1737_v17, %v572_v8  ;;  %v917_v8 = vmul.f32 %v1708_v6, %v1567_v2 }
  0x4d   : > { %1557 = vmatmul.msk.bf16.gmra.mxu0 %vm467_vm7, %v807_v20  ;;  %1561 = vmatmul.msk.bf16.gmra.mxu1 %vm467_vm7, %v807_v20  ;;  %v587_v20 = vmax.f32 %v579_v15, 0.0  ;;  %v924_v10 = vadd.f32 %v1737_v17, %v916_v5  ;;  %v1569_v15 = vld [vmem:[%s1732_s25 + $0x171] sm:$0xff] }
  0x4e   : > { %v588_v21 = vmax.f32 %v580_v16, 0.0  ;;  %v925_v11 = vadd.f32 %v1737_v17, %v917_v8  ;;  %v919_v62 = vmul.f32 %v1708_v6, %v1569_v15 }
  0x4f   : > { %v2030_v26 = vsel %vm1906_vm10, %v587_v20, 0.0 }
  0x50   : > { %v2034_v27 = vsel %vm1906_vm10, %v588_v21, 0.0  ;;  %v927_v47 = vadd.f32 %v1737_v17, %v919_v62  ;;  %v1571_v21 = vld [vmem:[%s1732_s25 + $0x191] sm:$0xff]  ;;  %v1244_v41 = vpack.c.bf16 %v2030_v26, %v1992_v46 }
  0x51   : > { %v611_v44 = vpack.c.bf16 %v2034_v27, %v2030_v26  ;;  %v921_v39 = vmul.f32 %v1708_v6, %v1571_v21 }
  0x53   : > { %v929_v54 = vadd.f32 %v1737_v17, %v921_v39 }
  0x55   : > { %v937_v57 = vmax.f32 %v929_v54, 0.0 }
  0x57   : > { %v945_v5 = vsel %vm1906_vm10, %v937_v57, 0.0 }
  0x5b   : > { %1532 = vmatmul.msk.bf16.gmra.mxu2 %vm467_vm7, %v610_v61  ;;  %v939_v61 = vsel %vm1906_vm10, %v931_v58, 0.0 }
  0x5c   : > { %1545 = vmatmul.msk.bf16.gmra.mxu3 %vm467_vm7, %v709_v3  ;;  %v946_v3 = vpack.c.bf16 %v939_v61, %v938_v59 }
  0x5d   : > { %1558 = vmatmul.msk.bf16.gmra.mxu0 %vm467_vm7, %v808_v4  ;;  %1562 = vmatmul.msk.bf16.gmra.mxu1 %vm467_vm7, %v808_v4  ;;  %v1144_v4 = vpack.c.bf16 %v1861_v37, %v1796_v55  ;;  %v932_v55 = vmax.f32 %v924_v10, 0.0  ;;  %v933_v37 = vmax.f32 %v925_v11, 0.0 }
  0x5f   : > { %v940_v12 = vsel %vm1906_vm10, %v932_v55, 0.0  ;;  %v941_v14 = vsel %vm1906_vm10, %v933_v37, 0.0 }
  0x60   : > { %v947_v16 = vpack.c.bf16 %v941_v14, %v940_v12 }
  0x6b   : > { %1533 = vmatmul.msk.bf16.gmra.mxu2 %vm467_vm7, %v611_v44  ;;  %v1020_v44 = vmul.f32 %v1708_v6, %v1584_v22 }
  0x6c   : > { %1546 = vmatmul.msk.bf16.gmra.mxu3 %vm467_vm7, %v710_v45  ;;  %v1119_v45 = vmul.f32 %v1708_v6, %v1597_v23  ;;  %v1225_v6 = vadd.f32 %v1737_v17, %v1217_v51 }
  0x6d   : > { %1559 = vmatmul.msk.bf16.gmra.mxu0 %vm467_vm7, %v809_v50  ;;  %1563 = vmatmul.msk.bf16.gmra.mxu1 %vm467_vm7, %v809_v50  ;;  %v1028_v29 = vadd.f32 %v1737_v17, %v1020_v44 }
  0x6e   : > { %v1127_v31 = vadd.f32 %v1737_v17, %v1119_v45  ;;  %v1233_v2 = vmax.f32 %v1225_v6, 0.0 }
  0x6f   : > { %v1036_v59 = vmax.f32 %v1028_v29, 0.0 }
  0x70   : > { %v1135_v61 = vmax.f32 %v1127_v31, 0.0  ;;  %v1241_v10 = vsel %vm1906_vm10, %v1233_v2, 0.0 }
  0x71   : > { %v1245_v15 = vpack.c.bf16 %v1241_v10, %v2034_v27 }
  0x72   : > { %v1143_v8 = vsel %vm1765_vm6, %v1135_v61, 0.0 }
  0x73   : > { %v1147_v14 = vpack.c.bf16 %v1143_v8, %v1845_v30 }
  0x7b   : > { %1573 = vmatmul.msk.bf16.vlgmr.msra.gmra.mxu2 %vm467_vm7, %v946_v3 }
  0x7c   : > { %1586 = vmatmul.msk.bf16.vlgmr.msra.gmra.mxu3 %vm467_vm7, %v1045_v13  ;;  %v1046_v13 = vpack.c.bf16 %v1784_v49, %v1876_v43  ;;  %v926_v49 = vadd.f32 %v1737_v17, %v918_v19  ;;  %v935_v43 = vmax.f32 %v927_v47, 0.0  ;;  %v1044_v17 = vsel %vm1758_vm5, %v1036_v59, 0.0 }
  0x7d   : > { %1599 = vmatmul.msk.bf16.vlgmr.msra.gmra.mxu0 %vm467_vm7, %v1144_v4  ;;  %1612 = vmatmul.msk.bf16.vlgmr.msra.gmra.mxu1 %vm467_vm7, %v1242_v7  ;;  %v944_v4 = vsel %vm1906_vm10, %v936_v56, 0.0  ;;  %v1048_v12 = vpack.c.bf16 %v1044_v17, %v1857_v35 }
  0x7e   : > { %v934_v38 = vmax.f32 %v926_v49, 0.0  ;;  %v943_v1 = vsel %vm1906_vm10, %v935_v43, 0.0  ;;  %v949_v55 = vpack.c.bf16 %v945_v5, %v944_v4 }
  0x80   : > { %v942_v20 = vsel %vm1906_vm10, %v934_v38, 0.0 }
  0x81   : > { %v948_v24 = vpack.c.bf16 %v943_v1, %v942_v20 }
  0x8b   : > { %1574 = vmatmul.msk.bf16.gmra.mxu2 %vm467_vm7, %v947_v16 }
  0x8c   : > { %1587 = vmatmul.msk.bf16.gmra.mxu3 %vm467_vm7, %v1046_v13 }
  0x8d   : > { %1600 = vmatmul.msk.bf16.gmra.mxu0 %vm467_vm7, %v1145_v18  ;;  %1613 = vmatmul.msk.bf16.gmra.mxu1 %vm467_vm7, %v1243_v42 }
  0x9a   : > { %v493_v40 = vpop.f32.mrf.mxu0  ;;  %v537_v50 = vpop.f32.mrf.mxu1 }
  0x9b   : > { %v2114_v52 = vadd.f32 %v537_v50, %v493_v40  ;;  %1575 = vmatmul.msk.bf16.gmra.mxu2 %vm467_vm7, %v948_v24 }
  0x9c   : > { %1588 = vmatmul.msk.bf16.gmra.mxu3 %vm467_vm7, %v1047_v28 }
  0x9d   : > { %1601 = vmatmul.msk.bf16.gmra.mxu0 %vm467_vm7, %v1146_v32  ;;  %1614 = vmatmul.msk.bf16.gmra.mxu1 %vm467_vm7, %v1244_v41 }
  0x9e   : > { %v503_v46 = vpop.f32.mrf.mxu2 }
  0x9f   : > { %v547_v26 = vpop.f32.mrf.mxu3 }
  0xa0   : > { %v2125_v53 = vadd.f32 %v547_v26, %v503_v46 }
  0xa2   : > { %v495_v58 = vpop.f32.mrf.mxu0  ;;  %v539_v63 = vpop.f32.mrf.mxu1 }
  0xa3   : > { %v2127_v3 = vadd.f32 %v539_v63, %v495_v58 }
  0xa6   : > { %v505_v7 = vpop.f32.mrf.mxu2 }
  0xa7   : > { %v549_v11 = vpop.f32.mrf.mxu3 }
  0xa8   : > { %v2139_v37 = vadd.f32 %v549_v11, %v505_v7 }
  0xaa   : > { %v498_v0 = vpop.f32.mrf.mxu0  ;;  %v542_v33 = vpop.f32.mrf.mxu1 }
  0xab   : > { %v2145_v16 = vadd.f32 %v542_v33, %v498_v0  ;;  %1576 = vmatmul.msk.bf16.gmra.mxu2 %vm467_vm7, %v949_v55 }
  0xac   : > { %1589 = vmatmul.msk.bf16.gmra.mxu3 %vm467_vm7, %v1048_v12 }
  0xad   : > { %1602 = vmatmul.msk.bf16.gmra.mxu0 %vm467_vm7, %v1147_v14  ;;  %1615 = vmatmul.msk.bf16.gmra.mxu1 %vm467_vm7, %v1245_v15 }
  0xae   : > { %v508_v36 = vpop.f32.mrf.mxu2 }
  0xaf   : > { %v552_v35 = vpop.f32.mrf.mxu3 }
  0xb0   : > { %v2151_v9 = vadd.f32 %v552_v35, %v508_v36 }
  0xb2   : > { %v500_v30 = vpop.f32.mrf.mxu0  ;;  %v544_v27 = vpop.f32.mrf.mxu1 }
  0xb3   : > { %v2155_v13 = vadd.f32 %v544_v27, %v500_v30 }
  0xb6   : > { %v510_v18 = vpop.f32.mrf.mxu2 }
  0xb7   : > { %v554_v19 = vpop.f32.mrf.mxu3 }
  0xb8   : > { %v2158_v62 = vadd.f32 %v554_v19, %v510_v18 }
  0xba   : > { %v836_v42 = vpop.f32.mrf.mxu0  ;;  %v877_v49 = vpop.f32.mrf.mxu1 }
  0xbb   : > { %898 = vst.msk [vmem:[%s2165_s20] sm:$0xff] %vm897_vm11, %v877_v49 }
  0xbe   : > { %v638_v47 = vpop.f32.mrf.mxu2 }
  0xbf   : > { %v737_v38 = vpop.f32.mrf.mxu3  ;;  %v658_v56 = vadd.f32 %v638_v47, %v2114_v52 }
  0xc1   : > { %v757_v59 = vadd.f32 %v737_v38, %v658_v56 }
  0xc2   : > { %v838_v43 = vpop.f32.mrf.mxu0  ;;  %v879_v20 = vpop.f32.mrf.mxu1 }
  0xc3   : > { %899 = vst.msk [vmem:[%s2165_s20 + $0x8] sm:$0xff] %vm897_vm11, %v879_v20  ;;  %v856_v4 = vadd.f32 %v836_v42, %v757_v59 }
  0xc6   : > { %v640_v1 = vpop.f32.mrf.mxu2 }
  0xc7   : > { %v739_v60 = vpop.f32.mrf.mxu3  ;;  %v659_v2 = vadd.f32 %v640_v1, %v2127_v3 }
  0xc9   : > { %v758_v7 = vadd.f32 %v739_v60, %v659_v2 }
  0xca   : > { %v841_v21 = vpop.f32.mrf.mxu0  ;;  %v882_v22 = vpop.f32.mrf.mxu1 }
  0xcb   : > { %900 = vst.msk [vmem:[%s2165_s20 + $0x10] sm:$0xff] %vm897_vm11, %v882_v22  ;;  %v857_v3 = vadd.f32 %v838_v43, %v758_v7 }
  0xce   : > { %v643_v23 = vpop.f32.mrf.mxu2 }
  0xcf   : > { %v742_v24 = vpop.f32.mrf.mxu3  ;;  %v660_v52 = vadd.f32 %v643_v23, %v2145_v16 }
  0xd1   : > { %v759_v36 = vadd.f32 %v742_v24, %v660_v52 }
  0xd2   : > { %v2173_v25 = vpop.f32.mrf.mxu0  ;;  %v884_v28 = vpop.f32.mrf.mxu1 }
  0xd3   : > { %901 = vst.msk [vmem:[%s2165_s20 + $0x18] sm:$0xff] %vm897_vm11, %v884_v28  ;;  %v858_v47 = vadd.f32 %v841_v21, %v759_v36 }
  0xd6   : > { %v645_v32 = vpop.f32.mrf.mxu2 }
  0xd7   : > { %v744_v34 = vpop.f32.mrf.mxu3  ;;  %v661_v19 = vadd.f32 %v645_v32, %v2155_v13 }
  0xd9   : > { %v760_v23 = vadd.f32 %v744_v34, %v661_v19 }
  0xda   : > { %v2177_v39 = vpop.f32.mrf.mxu0  ;;  %v887_v40 = vpop.f32.mrf.mxu1 }
  0xdb   : > { %902 = vst.msk [vmem:[%s2165_s20 + $0x20] sm:$0xff] %vm897_vm11, %v887_v40  ;;  %v859_v56 = vadd.f32 %v2173_v25, %v760_v23 }
  0xde   : > { %v2181_v41 = vpop.f32.mrf.mxu2 }
  0xdf   : > { %v2183_v44 = vpop.f32.mrf.mxu3 }
  0xe2   : > { %v2185_v45 = vpop.f32.mrf.mxu0  ;;  %v889_v50 = vpop.f32.mrf.mxu1 }
  0xe3   : > { %903 = vst.msk [vmem:[%s2165_s20 + $0x28] sm:$0xff] %vm897_vm11, %v889_v50 }
  0xe6   : > { %v2189_v51 = vpop.f32.mrf.mxu2 }
  0xe7   : > { %v2191_v48 = vpop.f32.mrf.mxu3  ;;  %v663_v25 = vadd.f32 %v2189_v51, %v2139_v37 }
  0xea   : > { %v2193_v54 = vpop.f32.mrf.mxu0  ;;  %v892_v29 = vpop.f32.mrf.mxu1 }
  0xeb   : > { %904 = vst.msk [vmem:[%s2165_s20 + $0x30] sm:$0xff] %vm897_vm11, %v892_v29  ;;  %v662_v29 = vadd.f32 %v2181_v41, %v2125_v53 }
  0xee   : > { %v2197_v31 = vpop.f32.mrf.mxu2 }
  0xef   : > { %v2199_v46 = vpop.f32.mrf.mxu3 }
  0xf2   : > { %v2201_v6 = vpop.f32.mrf.mxu0  ;;  %v894_v26 = vpop.f32.mrf.mxu1 }
  0xf3   : > { %905 = vst.msk [vmem:[%s2165_s20 + $0x38] sm:$0xff] %vm897_vm11, %v894_v26 }
  0xf6   : > { %v2206_v57 = vpop.f32.mrf.mxu2 }
  0xf7   : > { %v2208_v58 = vpop.f32.mrf.mxu3 }
  0xfa   : > { %v1174_v61 = vpop.f32.mrf.mxu0  ;;  %v1272_v63 = vpop.f32.mrf.mxu1 }
  0xfe   : > { %v976_v5 = vpop.f32.mrf.mxu2 }
  0xff   : > { %v996_v17 = vadd.f32 %v976_v5, %v856_v4  ;;  %v1075_v8 = vpop.f32.mrf.mxu3  ;;  %v761_v5 = vadd.f32 %v2183_v44, %v662_v29 }
 0x101   : > { %v1095_v10 = vadd.f32 %v1075_v8, %v996_v17 }
 0x102   : > { %v1176_v11 = vpop.f32.mrf.mxu0  ;;  %v1274_v55 = vpop.f32.mrf.mxu1 }
 0x103   : > { %v1194_v12 = vadd.f32 %v1174_v61, %v1095_v10 }
 0x105   : > { %v1292_v14 = vadd.f32 %v1272_v63, %v1194_v12 }
 0x106   : > { %v978_v0 = vpop.f32.mrf.mxu2 }
 0x107   : > { %1353 = vst.msk [vmem:[%s2216_s23] sm:$0xff] %vm897_vm11, %v1292_v14  ;;  %v997_v15 = vadd.f32 %v978_v0, %v857_v3  ;;  %v1077_v33 = vpop.f32.mrf.mxu3  ;;  %v1323_v42 = vmul.f32 %v1292_v14, %v1292_v14  ;;  %v1300_v16 = vsel %vm897_vm11, %v1292_v14, 0.0 }
 0x109   : > { %v1096_v35 = vadd.f32 %v1077_v33, %v997_v15  ;;  %v1331_v24 = vsel %vm897_vm11, %v1323_v42, 0.0  ;;  %v762_v15 = vadd.f32 %v2191_v48, %v663_v25 }
 0x10a   : > { %v1179_v30 = vpop.f32.mrf.mxu0  ;;  %v1277_v27 = vpop.f32.mrf.mxu1 }
 0x10b   : > { %v1195_v18 = vadd.f32 %v1176_v11, %v1096_v35  ;;  %v860_v11 = vadd.f32 %v2177_v39, %v761_v5  ;;  %v664_v39 = vadd.f32 %v2197_v31, %v2151_v9 }
 0x10d   : > { %v1293_v49 = vadd.f32 %v1274_v55, %v1195_v18 }
 0x10e   : > { %v981_v38 = vpop.f32.mrf.mxu2 }
 0x10f   : > { %v1301_v43 = vsel %vm897_vm11, %v1293_v49, 0.0  ;;  %v1324_v20 = vmul.f32 %v1293_v49, %v1293_v49  ;;  %1354 = vst.msk [vmem:[%s2216_s23 + $0x8] sm:$0xff] %vm897_vm11, %v1293_v49  ;;  %v998_v1 = vadd.f32 %v981_v38, %v858_v47  ;;  %v1080_v60 = vpop.f32.mrf.mxu3 }
 0x110   : > { %v1302_v22 = vadd.f32 %v1301_v43, %v1300_v16  ;;  %v763_v16 = vadd.f32 %v2199_v46, %v664_v39 }
 0x111   : > { %v1332_v13 = vsel %vm897_vm11, %v1324_v20, 0.0  ;;  %v1097_v28 = vadd.f32 %v1080_v60, %v998_v1 }
 0x112   : > { %v1333_v32 = vadd.f32 %v1332_v13, %v1331_v24  ;;  %v1181_v21 = vpop.f32.mrf.mxu0  ;;  %v1279_v50 = vpop.f32.mrf.mxu1  ;;  %v862_v60 = vadd.f32 %v2193_v54, %v763_v16 }
 0x113   : > { %v1196_v40 = vadd.f32 %v1179_v30, %v1097_v28  ;;  %v861_v30 = vadd.f32 %v2185_v45, %v762_v15  ;;  %v665_v45 = vadd.f32 %v2206_v57, %v2158_v62 }
 0x115   : > { %v1294_v26 = vadd.f32 %v1277_v27, %v1196_v40 }
 0x116   : > { %v983_v59 = vpop.f32.mrf.mxu2 }
 0x117   : > { %v1303_v61 = vsel %vm897_vm11, %v1294_v26, 0.0  ;;  %v1325_v63 = vmul.f32 %v1294_v26, %v1294_v26  ;;  %1355 = vst.msk [vmem:[%s2216_s23 + $0x10] sm:$0xff] %vm897_vm11, %v1294_v26  ;;  %v999_v34 = vadd.f32 %v983_v59, %v859_v56  ;;  %v1082_v2 = vpop.f32.mrf.mxu3 }
 0x118   : > { %v1304_v4 = vadd.f32 %v1303_v61, %v1302_v22 }
 0x119   : > { %v1334_v17 = vsel %vm897_vm11, %v1325_v63, 0.0  ;;  %v1098_v8 = vadd.f32 %v1082_v2, %v999_v34 }
 0x11a   : > { %v1335_v7 = vadd.f32 %v1334_v17, %v1333_v32  ;;  %v1184_v41 = vpop.f32.mrf.mxu0  ;;  %v1282_v55 = vpop.f32.mrf.mxu1 }
 0x11b   : > { %v1197_v53 = vadd.f32 %v1181_v21, %v1098_v8  ;;  %v764_v21 = vadd.f32 %v2208_v58, %v665_v45 }
 0x11d   : > { %v1295_v10 = vadd.f32 %v1279_v50, %v1197_v53  ;;  %v863_v26 = vadd.f32 %v2201_v6, %v764_v21 }
 0x11e   : > { %v986_v12 = vpop.f32.mrf.mxu2 }
 0x11f   : > { %v1305_v52 = vsel %vm897_vm11, %v1295_v10, 0.0  ;;  %v1326_v14 = vmul.f32 %v1295_v10, %v1295_v10  ;;  %1356 = vst.msk [vmem:[%s2216_s23 + $0x18] sm:$0xff] %vm897_vm11, %v1295_v10  ;;  %v1000_v44 = vadd.f32 %v986_v12, %v860_v11  ;;  %v1085_v3 = vpop.f32.mrf.mxu3 }
 0x120   : > { %v1306_v0 = vadd.f32 %v1305_v52, %v1304_v4 }
 0x121   : > { %v1336_v33 = vsel %vm897_vm11, %v1326_v14, 0.0  ;;  %v1099_v36 = vadd.f32 %v1085_v3, %v1000_v44 }
 0x122   : > { %v1337_v37 = vadd.f32 %v1336_v33, %v1335_v7  ;;  %v1186_v27 = vpop.f32.mrf.mxu0  ;;  %v1284_v38 = vpop.f32.mrf.mxu1 }
 0x123   : > { %v1198_v51 = vadd.f32 %v1184_v41, %v1099_v36 }
 0x125   : > { %v1296_v35 = vadd.f32 %v1282_v55, %v1198_v51 }
 0x126   : > { %v988_v18 = vpop.f32.mrf.mxu2 }
 0x127   : > { %v1307_v19 = vsel %vm897_vm11, %v1296_v35, 0.0  ;;  %v1327_v42 = vmul.f32 %v1296_v35, %v1296_v35  ;;  %1357 = vst.msk [vmem:[%s2216_s23 + $0x20] sm:$0xff] %vm897_vm11, %v1296_v35  ;;  %v1001_v48 = vadd.f32 %v988_v18, %v861_v30  ;;  %v1087_v49 = vpop.f32.mrf.mxu3 }
 0x128   : > { %v1308_v47 = vadd.f32 %v1307_v19, %v1306_v0 }
 0x129   : > { %v1338_v43 = vsel %vm897_vm11, %v1327_v42, 0.0  ;;  %v1100_v9 = vadd.f32 %v1087_v49, %v1001_v48 }
 0x12a   : > { %v1339_v31 = vadd.f32 %v1338_v43, %v1337_v37  ;;  %v1189_v32 = vpop.f32.mrf.mxu0  ;;  %v1287_v57 = vpop.f32.mrf.mxu1 }
 0x12b   : > { %v1199_v20 = vadd.f32 %v1186_v27, %v1100_v9 }
 0x12d   : > { %v1297_v1 = vadd.f32 %v1284_v38, %v1199_v20 }
 0x12e   : > { %v991_v22 = vpop.f32.mrf.mxu2 }
 0x12f   : > { %v1309_v23 = vsel %vm897_vm11, %v1297_v1, 0.0  ;;  %v1328_v24 = vmul.f32 %v1297_v1, %v1297_v1  ;;  %1358 = vst.msk [vmem:[%s2216_s23 + $0x28] sm:$0xff] %vm897_vm11, %v1297_v1  ;;  %v1002_v13 = vadd.f32 %v991_v22, %v862_v60  ;;  %v1090_v46 = vpop.f32.mrf.mxu3 }
 0x130   : > { %v1310_v28 = vadd.f32 %v1309_v23, %v1308_v47 }
 0x131   : > { %v1340_v40 = vsel %vm897_vm11, %v1328_v24, 0.0  ;;  %v1101_v50 = vadd.f32 %v1090_v46, %v1002_v13 }
 0x132   : > { %v1341_v62 = vadd.f32 %v1340_v40, %v1339_v31  ;;  %v1191_v17 = vpop.f32.mrf.mxu0  ;;  %v1289_v7 = vpop.f32.mrf.mxu1 }
 0x133   : > { %v1200_v29 = vadd.f32 %v1189_v32, %v1101_v50 }
 0x135   : > { %v1298_v54 = vadd.f32 %v1287_v57, %v1200_v29 }
 0x136   : > { %v993_v56 = vpop.f32.mrf.mxu2 }
 0x137   : > { %v1311_v59 = vsel %vm897_vm11, %v1298_v54, 0.0  ;;  %v1329_v61 = vmul.f32 %v1298_v54, %v1298_v54  ;;  %1359 = vst.msk [vmem:[%s2216_s23 + $0x30] sm:$0xff] %vm897_vm11, %v1298_v54  ;;  %v1003_v63 = vadd.f32 %v993_v56, %v863_v26  ;;  %v1092_v58 = vpop.f32.mrf.mxu3 }
 0x138   : > { %v1312_v34 = vadd.f32 %v1311_v59, %v1310_v28 }
 0x139   : > { %v1342_v2 = vsel %vm897_vm11, %v1329_v61, 0.0  ;;  %v1102_v4 = vadd.f32 %v1092_v58, %v1003_v63 }
 0x13a   : > { %v1343_v5 = vadd.f32 %v1342_v2, %v1341_v62 }
 0x13b   : > { %v1201_v8 = vadd.f32 %v1191_v17, %v1102_v4 }
 0x13d   : > { %v1299_v6 = vadd.f32 %v1289_v7, %v1201_v8 }
 0x13f   : > { %v1313_v53 = vsel %vm897_vm11, %v1299_v6, 0.0  ;;  %v1330_v41 = vmul.f32 %v1299_v6, %v1299_v6  ;;  %1360 = vst.msk [vmem:[%s2216_s23 + $0x38] sm:$0xff] %vm897_vm11, %v1299_v6 }
 0x140   : > { %v1314_v25 = vadd.f32 %v1313_v53, %v1312_v34 }
 0x141   : > { %v1344_v10 = vsel %vm897_vm11, %v1330_v41, 0.0 }
 0x142   : > { %v1315_v11 = vrot.slane %v1314_v25, 4  ;;  %v1345_v55 = vadd.f32 %v1344_v10, %v1343_v5 }
 0x144   : > { %v1316_v12 = vadd.f32 %v1315_v11, %v1314_v25  ;;  %v1346_v52 = vrot.slane %v1345_v55, 4 }
 0x146   : > { %v1317_v14 = vrot.slane %v1316_v12, 2  ;;  %v1347_v44 = vadd.f32 %v1346_v52, %v1345_v55 }
 0x148   : > { %v1318_v3 = vadd.f32 %v1317_v14, %v1316_v12  ;;  %v1348_v0 = vrot.slane %v1347_v44, 2 }
 0x14a   : > { %v1319_v15 = vrot.slane %v1318_v3, 1  ;;  %v1349_v33 = vadd.f32 %v1348_v0, %v1347_v44 }
 0x14c   : > { %v1320_v36 = vadd.f32 %v1319_v15, %v1318_v3  ;;  %v1350_v37 = vrot.slane %v1349_v33, 1 }
 0x14e   : > { %1322 = vst.msk [vmem:[%s338_s26] sm:$0x1] %vm1321_vm12, %v1320_v36  ;;  %v1351_v51 = vadd.f32 %v1350_v37, %v1349_v33 }
 0x150   : > { %1352 = vst.msk [vmem:[%s341_s9] sm:$0x1] %vm1321_vm12, %v1351_v51 }
 0x151 PF: > { %s19_s27 = sadd.s32 1, %s1638_s27  }
 0x152   : > { %p16_p6 = scmp.ge.s32.totalorder %s19_s27, 4  }
 0x154   :  { %18 = sbr.rel (!%p16_p6) target bundleno = 1 (0x1), region = 119 }

// kernel: basic_block_forward.5
= control target key start
LH: loop header
LB: loop body
LE: loop exit
PB: predicated region body
PF: predicated region fallthrough
CT: control target
= control target key end

     0   :  { %s1410_s18 = smov 0   ;;  %s1800_s0 = inlined_call_operand.vmem [shape: f32[2,10,10,8], index: 0, kind: input, shape index: {}]   ;;  %s1801_s1 = inlined_call_operand.vmem [shape: f32[1,8], index: 1, kind: input, shape index: {}]   ;;  %s1802_s2 = inlined_call_operand.vmem [shape: f32[1,8], index: 2, kind: input, shape index: {}]   ;;  %s1803_s3 = inlined_call_operand.vmem [shape: bf16[9,8,8], index: 3, kind: input, shape index: {}]   ;;  %s1804_s4 = inlined_call_operand.vmem [shape: f32[128,8], index: 4, kind: input, shape index: {}]   ;;  %s1805_s5 = inlined_call_operand.vmem [shape: f32[128,8], index: 5, kind: output, shape index: {}]  }
   0x1 LB: > { %s1416_s19 = sadd.s32 4294967295, %s1377_s18   ;;  %p1256_p0 = scmp.ge.s32.totalorder %s1377_s18, 1  ;;  %s1377_s18 = sphi %s1410_s18, %s15_s18  }
   0x2   : > { %p198_p1 = scmp.lt.s32.totalorder %s1377_s18, 3 }
   0x4   : > { %p199_p2 = pnand %p1256_p0, %p198_p1 }
   0x5   : > { %p231_p3 = scmp.lt.s32.totalorder (!%p199_p2), %s1416_s19, 1  ;;  %s1258_s24 = sshll.u32 (!%p199_p2), %s1416_s19, 3 }
   0x6   : > { %202 = sbr.rel (%p199_p2) target bundleno = 303 (0x12f), region = 40  ;;  %p237_p4 = scmp.lt.s32.totalorder (!%p199_p2), %s1258_s24, 15 }
   0xb   : > { %v1262_v0 = vld [vmem:[%s1803_s3 + $0x4] sm:$0xf]  ;;  %vm384_vm0 = vcmask 1043456   ;;  %s232_s22 = scalar_select %p231_p3, %s1416_s19, 1  ;;  %v1429_v2 = vld [vmem:[%s1801_s1] ss:$0 sm:$0xff]  ;;  %v251_v15 = vlaneseq }
   0xc   : > { %v386_v1 = vsel %vm384_vm0, %v1262_v0, 0  ;;  %v1271_v3 = vld [vmem:[%s1803_s3 + $0x8] sm:$0xf]  ;;  %v1284_v5 = vld [vmem:[%s1803_s3 + $0xc] sm:$0xf]  ;;  %vm371_vm1 = vcmask 64512  }
   0xd   : > { %1356 = vmatpush.bf16.msra.mxu1 %v386_v1  ;;  %1357 = vmatpush.bf16.msra.mxu2 %v386_v1  ;;  %v531_v4 = vsel %vm384_vm0, %v1271_v3, 0  ;;  %v313_v6 = vld [vmem:[%s1803_s3] sm:$0xf]  ;;  %s1359_s6 = smul.u32 160, %s232_s22  ;;  %v630_v7 = vsel %vm384_vm0, %v1284_v5, 0  ;;  %v1488_v34 = vshrl.u32 %v251_v15, 7 }
   0xe   : > { %1358 = vmatpush.bf16.msra.mxu3 %v386_v1  ;;  %395 = vmatpush.bf16.msra.mxu0 %v386_v1  ;;  %v430_v8 = vsel %vm384_vm0, %v313_v6, 0  ;;  %v1297_v9 = vld [vmem:[%s1803_s3 + $0x10] sm:$0xf]  ;;  %v1455_v11 = vld [vmem:[%s1802_s2] ss:$0 sm:$0xff]  ;;  %v1379_v56 = vmov 0.0  }
   0xf   : > { %v728_v10 = vsel %vm384_vm0, %v1297_v9, 0  ;;  %s1450_s11 = scalar_lea.vmem %s1800_s0, %s1359_s6  ;;  %v1323_v36 = vld [vmem:[%s1803_s3 + $0x18] sm:$0xf]  ;;  %v1336_v42 = vld [vmem:[%s1803_s3 + $0x1c] sm:$0xf]  ;;  %v1544_v0 = vadd.s32 2, %v1488_v34 }
  0x10   : > { %v316_v12 = vld [vmem:[%s1450_s11 + $0x21] sm:$0xff]  ;;  %v317_v13 = vld [vmem:[%s1450_s11 + $0x31] sm:$0xff]  ;;  %v925_v55 = vsel %vm384_vm0, %v1323_v36, 0  ;;  %v1023_v58 = vsel %vm384_vm0, %v1336_v42, 0  ;;  %vm291_vm2 = vcmp.ge.s32.totalorder %v1488_v34, 1  ;;  %s1807_s24 = smov (!%p237_p4, %s1258_s24), 15 }
  0x11   : > { %540 = vmatpush.bf16.msrb.mxu2 %v531_v4  ;;  %439 = vmatpush.bf16.msrb.mxu1 %v430_v8  ;;  %v318_v14 = vld [vmem:[%s1450_s11 + $0x41] sm:$0xff]  ;;  %v324_v16 = vmul.f32 %v1429_v2, %v316_v12  ;;  %v325_v17 = vmul.f32 %v1429_v2, %v317_v13  ;;  %v319_v18 = vld [vmem:[%s1450_s11 + $0x51] sm:$0xff]  ;;  %vm497_vm3 = vcmp.le.s32.totalorder %v1544_v0, 8  ;;  %s1259_s25 = sshll.u32 %s1807_s24, 3 }
  0x12   : > { %639 = vmatpush.bf16.msrb.mxu3 %v630_v7  ;;  %737 = vmatpush.bf16.msrb.mxu0 %v728_v10  ;;  %v326_v19 = vmul.f32 %v1429_v2, %v318_v14  ;;  %v320_v20 = vld [vmem:[%s1450_s11 + $0x61] sm:$0xff]  ;;  %v321_v21 = vld [vmem:[%s1450_s11 + $0x71] sm:$0xff]  ;;  %v327_v22 = vmul.f32 %v1429_v2, %v319_v18  ;;  %s1741_s27 = scalar_lea.vmem %s1804_s4, %s1259_s25  ;;  %s1748_s30 = scalar_lea.vmem %s1805_s5, %s1259_s25 }
  0x13   : > { %v328_v23 = vmul.f32 %v1429_v2, %v320_v20  ;;  %v329_v24 = vmul.f32 %v1429_v2, %v321_v21  ;;  %v315_v25 = vld [vmem:[%s1450_s11 + $0x11] sm:$0xff]  ;;  %v332_v26 = vadd.f32 %v1455_v11, %v324_v16  ;;  %v1472_v27 = vadd.f32 %v1455_v11, %v325_v17  ;;  %v1277_v41 = vld [vmem:[%s1450_s11 + $0x20] sm:$0xff] }
  0x14   : > { %v1475_v28 = vadd.f32 %v1455_v11, %v326_v19  ;;  %v323_v29 = vmul.f32 %v1429_v2, %v315_v25  ;;  %v254_v30 = vld [vmem:[%s1450_s11 + $0x10] sm:$0xff]  ;;  %v1480_v31 = vadd.f32 %v1455_v11, %v327_v22  ;;  %v1349_v51 = vld [vmem:[%s1803_s3 + $0x20] sm:$0xf]  ;;  %v580_v54 = vmul.f32 %v1429_v2, %v1277_v41 }
  0x15   : > { %v1483_v32 = vadd.f32 %v1455_v11, %v328_v23  ;;  %v1486_v33 = vadd.f32 %v1455_v11, %v329_v24  ;;  %v462_v35 = vld [vmem:[%s1450_s11 + $0x12] sm:$0xff]  ;;  %v340_v37 = vmax.f32 %v332_v26, 0.0  ;;  %v341_v38 = vmax.f32 %v1472_v27, 0.0  ;;  %v463_v9 = vld [vmem:[%s1450_s11 + $0x22] sm:$0xff] }
  0x16   : > { %v342_v39 = vmax.f32 %v1475_v28, 0.0  ;;  %v331_v40 = vadd.f32 %v1455_v11, %v323_v29  ;;  %v343_v43 = vmax.f32 %v1480_v31, 0.0  ;;  %v265_v46 = vmul.f32 %v1429_v2, %v254_v30  ;;  %v1310_v47 = vld [vmem:[%s1803_s3 + $0x14] sm:$0xf]  ;;  %v1279_v12 = vld [vmem:[%s1450_s11 + $0x40] sm:$0xff] }
  0x17   : > { %v344_v44 = vmax.f32 %v1483_v32, 0.0  ;;  %v345_v45 = vmax.f32 %v1486_v33, 0.0  ;;  %v1510_v48 = vpack.c.bf16 %v341_v38, %v340_v37  ;;  %v470_v50 = vmul.f32 %v1429_v2, %v462_v35  ;;  %v256_v8 = vld [vmem:[%s1450_s11 + $0x30] sm:$0xff]  ;;  %v465_v42 = vld [vmem:[%s1450_s11 + $0x42] sm:$0xff] }
  0x18   : > { %v339_v49 = vmax.f32 %v331_v40, 0.0  ;;  %v1520_v52 = vpack.c.bf16 %v343_v43, %v342_v39  ;;  %v826_v59 = vsel %vm384_vm0, %v1310_v47, 0  ;;  %v276_v60 = vadd.f32 %v1455_v11, %v265_v46  ;;  %v464_v10 = vld [vmem:[%s1450_s11 + $0x32] sm:$0xff]  ;;  %v1281_v47 = vld [vmem:[%s1450_s11 + $0x60] sm:$0xff] }
  0x19   : > { %v1526_v53 = vpack.c.bf16 %v345_v45, %v344_v44  ;;  %1264 = vmatmul.msk.bf16.vlgmr.msra.gmra.mxu1 %vm371_vm1, %v1510_v48  ;;  %v1121_v61 = vsel %vm384_vm0, %v1349_v51, 0  ;;  %v478_v62 = vadd.f32 %v1455_v11, %v470_v50  ;;  %v588_v63 = vadd.f32 %v1455_v11, %v580_v54  ;;  %v258_v36 = vld [vmem:[%s1450_s11 + $0x50] sm:$0xff] }
  0x1a   : > { %v365_v57 = vpack.c.bf16 %v339_v49, %v1379_v56  ;;  %1265 = vmatmul.msk.bf16.vlgmr.msra.gmra.mxu2 %vm371_vm1, %v1520_v52  ;;  %835 = vmatpush.bf16.msra.mxu1 %v826_v59  ;;  %v284_v1 = vmax.f32 %v276_v60, 0.0  ;;  %v709_v14 = vpack.c.bf16 %v340_v37, %v339_v49  ;;  %v267_v17 = vmul.f32 %v1429_v2, %v256_v8  ;;  %v466_v46 = vld [vmem:[%s1450_s11 + $0x52] sm:$0xff] }
  0x1b   : > { %1266 = vmatmul.msk.bf16.vlgmr.msra.gmra.mxu3 %vm371_vm1, %v1526_v53  ;;  %934 = vmatpush.bf16.msra.mxu2 %v925_v55  ;;  %v486_v3 = vmax.f32 %v478_v62, 0.0  ;;  %v596_v4 = vmax.f32 %v588_v63, 0.0  ;;  %v471_v18 = vmul.f32 %v1429_v2, %v463_v9  ;;  %v472_v19 = vmul.f32 %v1429_v2, %v464_v10  ;;  %v468_v8 = vld [vmem:[%s1450_s11 + $0x72] sm:$0xff]  ;;  %v1283_v9 = vld [vmem:[%s1450_s11 + $0x80] sm:$0xff] }
  0x1c   : > { %1263 = vmatmul.msk.bf16.vlgmr.msra.gmra.mxu0 %vm371_vm1, %v365_v57  ;;  %1032 = vmatpush.bf16.msra.mxu3 %v1023_v58  ;;  %v302_v5 = vsel %vm291_vm2, %v284_v1, 0.0  ;;  %v582_v20 = vmul.f32 %v1429_v2, %v1279_v12  ;;  %v278_v21 = vadd.f32 %v1455_v11, %v267_v17  ;;  %v269_v50 = vmul.f32 %v1429_v2, %v258_v36 }
  0x1d   : > { %1130 = vmatpush.bf16.msra.mxu0 %v1121_v61  ;;  %v1552_v6 = vsel %vm497_vm3, %v486_v3, 0.0  ;;  %v604_v7 = vsel %vm291_vm2, %v596_v4, 0.0  ;;  %v309_v13 = vpack.c.bf16 %v302_v5, %v1379_v56  ;;  %v479_v22 = vadd.f32 %v1455_v11, %v471_v18 }
  0x1e   : > { %v512_v15 = vpack.c.bf16 %v1552_v6, %v1379_v56  ;;  %v611_v16 = vpack.c.bf16 %v604_v7, %v302_v5  ;;  %v480_v23 = vadd.f32 %v1455_v11, %v472_v19  ;;  %v590_v24 = vadd.f32 %v1455_v11, %v582_v20  ;;  %v260_v5 = vld [vmem:[%s1450_s11 + $0x70] sm:$0xff]  ;;  %v1296_v19 = vld [vmem:[%s1450_s11 + $0x81] sm:$0xff] }
  0x1f   : > { %v286_v25 = vmax.f32 %v278_v21, 0.0  ;;  %v487_v26 = vmax.f32 %v479_v22, 0.0  ;;  %v473_v55 = vmul.f32 %v1429_v2, %v465_v42  ;;  %v474_v56 = vmul.f32 %v1429_v2, %v466_v46 }
  0x20   : > { %v488_v29 = vmax.f32 %v480_v23, 0.0  ;;  %v598_v30 = vmax.f32 %v590_v24, 0.0  ;;  %v710_v57 = vpack.c.bf16 %v342_v39, %v341_v38  ;;  %v584_v58 = vmul.f32 %v1429_v2, %v1281_v47 }
  0x21   : > { %v304_v35 = vsel %vm291_vm2, %v286_v25, 0.0  ;;  %v1578_v37 = vsel %vm497_vm3, %v487_v26, 0.0  ;;  %v280_v59 = vadd.f32 %v1455_v11, %v269_v50  ;;  %v481_v27 = vadd.f32 %v1455_v11, %v473_v55 }
  0x22   : > { %v1582_v40 = vsel %vm497_vm3, %v488_v29, 0.0  ;;  %v606_v41 = vsel %vm291_vm2, %v598_v30, 0.0  ;;  %v1589_v49 = vpack.c.bf16 %v304_v35, %v604_v7  ;;  %v482_v28 = vadd.f32 %v1455_v11, %v474_v56  ;;  %v467_v7 = vld [vmem:[%s1450_s11 + $0x62] sm:$0xff] }
  0x23   : > { %v1594_v51 = vpack.c.bf16 %v1582_v40, %v1578_v37  ;;  %v612_v54 = vpack.c.bf16 %v606_v41, %v304_v35  ;;  %v592_v38 = vadd.f32 %v1455_v11, %v584_v58  ;;  %v288_v39 = vmax.f32 %v280_v59, 0.0 }
  0x24   : > { %v489_v60 = vmax.f32 %v481_v27, 0.0  ;;  %v490_v61 = vmax.f32 %v482_v28, 0.0  ;;  %v476_v17 = vmul.f32 %v1429_v2, %v468_v8  ;;  %v586_v18 = vmul.f32 %v1429_v2, %v1283_v9 }
  0x25   : > { %v600_v62 = vmax.f32 %v592_v38, 0.0  ;;  %v306_v63 = vsel %vm291_vm2, %v288_v39, 0.0  ;;  %v807_v34 = vpack.c.bf16 %v1578_v37, %v1552_v6 }
  0x26   : > { %v508_v1 = vsel %vm497_vm3, %v489_v60, 0.0  ;;  %v509_v3 = vsel %vm497_vm3, %v490_v61, 0.0  ;;  %v311_v10 = vpack.c.bf16 %v306_v63, %v606_v41  ;;  %v484_v31 = vadd.f32 %v1455_v11, %v476_v17 }
  0x27   : > { %v608_v4 = vsel %vm291_vm2, %v600_v62, 0.0  ;;  %v514_v12 = vpack.c.bf16 %v509_v3, %v508_v1  ;;  %v594_v32 = vadd.f32 %v1455_v11, %v586_v18  ;;  %v808_v33 = vpack.c.bf16 %v508_v1, %v1582_v40 }
  0x28   : > { %v492_v23 = vmax.f32 %v484_v31, 0.0 }
  0x29   : > { %1267 = vmatmul.msk.bf16.vlgmr.msrb.gmra.mxu1 %vm371_vm1, %v309_v13  ;;  %v613_v13 = vpack.c.bf16 %v608_v4, %v306_v63  ;;  %v602_v24 = vmax.f32 %v594_v32, 0.0 }
  0x2a   : > { %1272 = vmatmul.msk.bf16.vlgmr.msrb.gmra.mxu2 %vm371_vm1, %v512_v15  ;;  %v475_v15 = vmul.f32 %v1429_v2, %v467_v7  ;;  %v511_v30 = vsel %vm497_vm3, %v492_v23, 0.0 }
  0x2b   : > { %1285 = vmatmul.msk.bf16.vlgmr.msrb.gmra.mxu3 %vm371_vm1, %v611_v16  ;;  %v711_v16 = vpack.c.bf16 %v344_v44, %v343_v43  ;;  %v684_v43 = vmul.f32 %v1429_v2, %v1296_v19  ;;  %v610_v35 = vsel %vm291_vm2, %v602_v24, 0.0 }
  0x2c   : > { %1298 = vmatmul.msk.bf16.vlgmr.msrb.gmra.mxu0 %vm371_vm1, %v709_v14  ;;  %v271_v14 = vmul.f32 %v1429_v2, %v260_v5  ;;  %v483_v21 = vadd.f32 %v1455_v11, %v475_v15 }
  0x2d   : > { %v692_v25 = vadd.f32 %v1455_v11, %v684_v43 }
  0x2e   : > { %v282_v20 = vadd.f32 %v1455_v11, %v271_v14  ;;  %v491_v22 = vmax.f32 %v483_v21, 0.0 }
  0x2f   : > { %v700_v36 = vmax.f32 %v692_v25, 0.0 }
  0x30   : > { %v290_v44 = vmax.f32 %v282_v20, 0.0  ;;  %v510_v29 = vsel %vm497_vm3, %v491_v22, 0.0 }
  0x31   : > { %v515_v42 = vpack.c.bf16 %v511_v30, %v510_v29  ;;  %v712_v47 = vpack.c.bf16 %v700_v36, %v345_v45  ;;  %v1309_v45 = vld [vmem:[%s1450_s11 + $0x82] sm:$0xff]  ;;  %v809_v6 = vpack.c.bf16 %v510_v29, %v509_v3 }
  0x32   : > { %v308_v26 = vsel %vm291_vm2, %v290_v44, 0.0  ;;  %v782_v37 = vmul.f32 %v1429_v2, %v1309_v45  ;;  %v1007_v2 = vpack.c.bf16 0.0, %v700_v36 }
  0x33   : > { %v312_v41 = vpack.c.bf16 %v308_v26, %v608_v4  ;;  %v614_v46 = vpack.c.bf16 %v610_v35, %v308_v26 }
  0x39   : > { %1268 = vmatmul.msk.bf16.gmra.mxu1 %vm371_vm1, %v1589_v49 }
  0x3a   : > { %1273 = vmatmul.msk.bf16.gmra.mxu2 %vm371_vm1, %v1594_v51 }
  0x3b   : > { %1286 = vmatmul.msk.bf16.gmra.mxu3 %vm371_vm1, %v612_v54 }
  0x3c   : > { %1299 = vmatmul.msk.bf16.gmra.mxu0 %vm371_vm1, %v710_v57 }
  0x49   : > { %1269 = vmatmul.msk.bf16.gmra.mxu1 %vm371_vm1, %v311_v10 }
  0x4a   : > { %1274 = vmatmul.msk.bf16.gmra.mxu2 %vm371_vm1, %v514_v12 }
  0x4b   : > { %1287 = vmatmul.msk.bf16.gmra.mxu3 %vm371_vm1, %v613_v13 }
  0x4c   : > { %1300 = vmatmul.msk.bf16.gmra.mxu0 %vm371_vm1, %v711_v16 }
  0x59   : > { %1270 = vmatmul.msk.bf16.gmra.mxu1 %vm371_vm1, %v312_v41 }
  0x5a   : > { %1275 = vmatmul.msk.bf16.gmra.mxu2 %vm371_vm1, %v515_v42 }
  0x5b   : > { %1288 = vmatmul.msk.bf16.gmra.mxu3 %vm371_vm1, %v614_v46 }
  0x5c   : > { %1301 = vmatmul.msk.bf16.gmra.mxu0 %vm371_vm1, %v712_v47 }
  0x69   : > { %1311 = vmatmul.msk.bf16.vlgmr.msra.gmra.mxu1 %vm371_vm1, %v807_v34 }
  0x6a   : > { %1324 = vmatmul.msk.bf16.vlgmr.msra.gmra.mxu2 %vm371_vm1, %v1589_v49 }
  0x6b   : > { %1337 = vmatmul.msk.bf16.vlgmr.msra.gmra.mxu3 %vm371_vm1, %v1510_v48  ;;  %v790_v48 = vadd.f32 %v1455_v11, %v782_v37 }
  0x6c   : > { %1350 = vmatmul.msk.bf16.vlgmr.msra.gmra.mxu0 %vm371_vm1, %v1594_v51  ;;  %v909_v51 = vpack.c.bf16 0.0, %v610_v35 }
  0x6d   : > { %v798_v40 = vmax.f32 %v790_v48, 0.0  ;;  %v1160_v48 = vld [vmem:[%s1741_s27] sm:$0xff] }
  0x79   : > { %1312 = vmatmul.msk.bf16.gmra.mxu1 %vm371_vm1, %v808_v33 }
  0x7a   : > { %1325 = vmatmul.msk.bf16.gmra.mxu2 %vm371_vm1, %v311_v10 }
  0x7b   : > { %1338 = vmatmul.msk.bf16.gmra.mxu3 %vm371_vm1, %v1520_v52  ;;  %v806_v52 = vsel %vm497_vm3, %v798_v40, 0.0 }
  0x7c   : > { %1351 = vmatmul.msk.bf16.gmra.mxu0 %vm371_vm1, %v514_v12  ;;  %v810_v49 = vpack.c.bf16 %v806_v52, %v511_v30  ;;  %v1105_v54 = vpack.c.bf16 0.0, %v806_v52 }
  0x89   : > { %1313 = vmatmul.msk.bf16.gmra.mxu1 %vm371_vm1, %v809_v6 }
  0x8a   : > { %1326 = vmatmul.msk.bf16.gmra.mxu2 %vm371_vm1, %v312_v41 }
  0x8b   : > { %1339 = vmatmul.msk.bf16.gmra.mxu3 %vm371_vm1, %v1526_v53 }
  0x8c   : > { %1352 = vmatmul.msk.bf16.gmra.mxu0 %vm371_vm1, %v515_v42 }
  0x96   : > { %v1683_v50 = vpop.f32.mrf.mxu1 }
  0x99   : > { %v397_v55 = vpop.f32.mrf.mxu0  ;;  %1314 = vmatmul.msk.bf16.gmra.mxu1 %vm371_vm1, %v810_v49 }
  0x9a   : > { %1327 = vmatmul.msk.bf16.gmra.mxu2 %vm371_vm1, %v909_v51 }
  0x9b   : > { %1340 = vmatmul.msk.bf16.gmra.mxu3 %vm371_vm1, %v1007_v2 }
  0x9c   : > { %1353 = vmatmul.msk.bf16.gmra.mxu0 %vm371_vm1, %v1105_v54 }
  0x9d   : > { %v1689_v11 = vpop.f32.mrf.mxu2 }
  0x9e   : > { %v1691_v53 = vpop.f32.mrf.mxu3  ;;  %v1693_v0 = vpop.f32.mrf.mxu1 }
  0xa1   : > { %v399_v56 = vpop.f32.mrf.mxu0 }
  0xa5   : > { %v1695_v57 = vpop.f32.mrf.mxu2 }
  0xa6   : > { %v1697_v58 = vpop.f32.mrf.mxu3  ;;  %v441_v59 = vpop.f32.mrf.mxu1 }
  0xa7   : > { %v442_v43 = vadd.f32 %v441_v59, %v397_v55 }
  0xa9   : > { %v739_v27 = vpop.f32.mrf.mxu0 }
  0xad   : > { %v542_v28 = vpop.f32.mrf.mxu2 }
  0xae   : > { %v641_v38 = vpop.f32.mrf.mxu3  ;;  %v443_v39 = vpop.f32.mrf.mxu1  ;;  %v562_v22 = vadd.f32 %v542_v28, %v442_v43 }
  0xaf   : > { %v444_v29 = vadd.f32 %v443_v39, %v399_v56  ;;  %v1161_v39 = vld [vmem:[%s1741_s27 + $0x8] sm:$0xff] }
  0xb0   : > { %v661_v25 = vadd.f32 %v641_v38, %v562_v22 }
  0xb1   : > { %v741_v60 = vpop.f32.mrf.mxu0 }
  0xb2   : > { %v759_v36 = vadd.f32 %v739_v27, %v661_v25 }
  0xb5   : > { %v544_v61 = vpop.f32.mrf.mxu2 }
  0xb6   : > { %v643_v62 = vpop.f32.mrf.mxu3  ;;  %v446_v63 = vpop.f32.mrf.mxu1  ;;  %v563_v35 = vadd.f32 %v544_v61, %v444_v29  ;;  %v1162_v29 = vld [vmem:[%s1741_s27 + $0x10] sm:$0xff] }
  0xb7   : > { %v447_v45 = vadd.f32 %v446_v63, %v1683_v50 }
  0xb8   : > { %v662_v47 = vadd.f32 %v643_v62, %v563_v35 }
  0xb9   : > { %v1699_v1 = vpop.f32.mrf.mxu0 }
  0xba   : > { %v760_v49 = vadd.f32 %v741_v60, %v662_v47 }
  0xbd   : > { %v547_v3 = vpop.f32.mrf.mxu2 }
  0xbe   : > { %v646_v4 = vpop.f32.mrf.mxu3  ;;  %v448_v5 = vpop.f32.mrf.mxu1  ;;  %v564_v40 = vadd.f32 %v547_v3, %v447_v45 }
  0xbf   : > { %v449_v27 = vadd.f32 %v448_v5, %v1693_v0 }
  0xc0   : > { %v663_v56 = vadd.f32 %v646_v4, %v564_v40 }
  0xc1   : > { %v1701_v7 = vpop.f32.mrf.mxu0 }
  0xc2   : > { %v761_v62 = vadd.f32 %v1699_v1, %v663_v56 }
  0xc5   : > { %v549_v8 = vpop.f32.mrf.mxu2 }
  0xc6   : > { %v1703_v9 = vpop.f32.mrf.mxu3  ;;  %v1705_v10 = vpop.f32.mrf.mxu1  ;;  %v565_v60 = vadd.f32 %v549_v8, %v449_v27 }
  0xc7   : > { %v452_v0 = vadd.f32 %v1705_v10, %v1689_v11 }
  0xc8   : > { %v664_v4 = vadd.f32 %v1703_v9, %v565_v60 }
  0xc9   : > { %v1707_v12 = vpop.f32.mrf.mxu0 }
  0xca   : > { %v762_v35 = vadd.f32 %v1701_v7, %v664_v4 }
  0xcd   : > { %v1709_v13 = vpop.f32.mrf.mxu2 }
  0xce   : > { %v1711_v14 = vpop.f32.mrf.mxu3  ;;  %v1713_v15 = vpop.f32.mrf.mxu1  ;;  %v566_v1 = vadd.f32 %v1709_v13, %v452_v0  ;;  %v1163_v13 = vld [vmem:[%s1741_s27 + $0x18] sm:$0xff] }
  0xcf   : > { %v454_v10 = vadd.f32 %v1713_v15, %v1695_v57 }
  0xd1   : > { %v1715_v16 = vpop.f32.mrf.mxu0 }
  0xd5   : > { %v1717_v17 = vpop.f32.mrf.mxu2 }
  0xd6   : > { %v1719_v18 = vpop.f32.mrf.mxu3  ;;  %v1721_v19 = vpop.f32.mrf.mxu1 }
  0xd7   : > { %v457_v15 = vadd.f32 %v1721_v19, %v1691_v53 }
  0xd9   : > { %v1723_v20 = vpop.f32.mrf.mxu0 }
  0xdd   : > { %v1725_v21 = vpop.f32.mrf.mxu2 }
  0xde   : > { %v1727_v31 = vpop.f32.mrf.mxu3  ;;  %v1729_v32 = vpop.f32.mrf.mxu1 }
  0xdf   : > { %v459_v19 = vadd.f32 %v1729_v32, %v1697_v58  ;;  %v1166_v32 = vld [vmem:[%s1741_s27 + $0x30] sm:$0xff] }
  0xe1   : > { %v1731_v44 = vpop.f32.mrf.mxu0 }
  0xe5   : > { %v1734_v23 = vpop.f32.mrf.mxu2 }
  0xe6   : > { %v1736_v24 = vpop.f32.mrf.mxu3  ;;  %v837_v26 = vpop.f32.mrf.mxu1 }
  0xe7   : > { %v857_v41 = vadd.f32 %v837_v26, %v759_v36 }
  0xe9   : > { %v1132_v30 = vpop.f32.mrf.mxu0 }
  0xed   : > { %v936_v42 = vpop.f32.mrf.mxu2 }
  0xee   : > { %v1034_v46 = vpop.f32.mrf.mxu3  ;;  %v956_v34 = vadd.f32 %v936_v42, %v857_v41  ;;  %v839_v33 = vpop.f32.mrf.mxu1 }
  0xef   : > { %v858_v2 = vadd.f32 %v839_v33, %v760_v49  ;;  %v567_v33 = vadd.f32 %v1717_v17, %v454_v10  ;;  %v1164_v17 = vld [vmem:[%s1741_s27 + $0x20] sm:$0xff] }
  0xf0   : > { %v1054_v6 = vadd.f32 %v1034_v46, %v956_v34  ;;  %v665_v46 = vadd.f32 %v1711_v14, %v566_v1  ;;  %v1167_v1 = vld [vmem:[%s1741_s27 + $0x38] sm:$0xff] }
  0xf1   : > { %v1134_v37 = vpop.f32.mrf.mxu0 }
  0xf2   : > { %v1152_v52 = vadd.f32 %v1132_v30, %v1054_v6  ;;  %v763_v45 = vadd.f32 %v1707_v12, %v665_v46  ;;  %v568_v12 = vadd.f32 %v1725_v21, %v457_v15 }
  0xf4   : > { %v1168_v51 = vadd.f32 %v1160_v48, %v1152_v52  ;;  %v666_v52 = vadd.f32 %v1719_v18, %v567_v33  ;;  %v667_v27 = vadd.f32 %v1727_v31, %v568_v12 }
  0xf5   : > { %v938_v54 = vpop.f32.mrf.mxu2 }
  0xf6   : > { %v1036_v55 = vpop.f32.mrf.mxu3  ;;  %1176 = vst.msk [vmem:[%s1748_s30] sm:$0xff] %vm371_vm1, %v1168_v51  ;;  %v957_v50 = vadd.f32 %v938_v54, %v858_v2  ;;  %v842_v59 = vpop.f32.mrf.mxu1  ;;  %v764_v54 = vadd.f32 %v1715_v16, %v666_v52  ;;  %v569_v16 = vadd.f32 %v1734_v23, %v459_v19  ;;  %v765_v60 = vadd.f32 %v1723_v20, %v667_v27 }
  0xf7   : > { %v859_v3 = vadd.f32 %v842_v59, %v761_v62 }
  0xf8   : > { %v1055_v28 = vadd.f32 %v1036_v55, %v957_v50 }
  0xf9   : > { %v1137_v38 = vpop.f32.mrf.mxu0 }
  0xfa   : > { %v1153_v61 = vadd.f32 %v1134_v37, %v1055_v28 }
  0xfc   : > { %v1169_v63 = vadd.f32 %v1161_v39, %v1153_v61 }
  0xfd   : > { %v941_v43 = vpop.f32.mrf.mxu2 }
  0xfe   : > { %v1039_v22 = vpop.f32.mrf.mxu3  ;;  %1177 = vst.msk [vmem:[%s1748_s30 + $0x8] sm:$0xff] %vm371_vm1, %v1169_v63  ;;  %v958_v25 = vadd.f32 %v941_v43, %v859_v3  ;;  %v844_v26 = vpop.f32.mrf.mxu1  ;;  %v668_v3 = vadd.f32 %v1736_v24, %v569_v16 }
  0xff   : > { %v860_v41 = vadd.f32 %v844_v26, %v762_v35 }
 0x100   : > { %v1056_v5 = vadd.f32 %v1039_v22, %v958_v25  ;;  %v766_v25 = vadd.f32 %v1731_v44, %v668_v3 }
 0x101   : > { %v1139_v8 = vpop.f32.mrf.mxu0 }
 0x102   : > { %v1154_v30 = vadd.f32 %v1137_v38, %v1056_v5  ;;  %v1165_v38 = vld [vmem:[%s1741_s27 + $0x28] sm:$0xff] }
 0x104   : > { %v1170_v36 = vadd.f32 %v1162_v29, %v1154_v30 }
 0x105   : > { %v943_v9 = vpop.f32.mrf.mxu2 }
 0x106   : > { %v1041_v42 = vpop.f32.mrf.mxu3  ;;  %1178 = vst.msk [vmem:[%s1748_s30 + $0x10] sm:$0xff] %vm371_vm1, %v1170_v36  ;;  %v959_v47 = vadd.f32 %v943_v9, %v860_v41  ;;  %v847_v11 = vpop.f32.mrf.mxu1 }
 0x107   : > { %v861_v48 = vadd.f32 %v847_v11, %v763_v45 }
 0x108   : > { %v1057_v34 = vadd.f32 %v1041_v42, %v959_v47 }
 0x109   : > { %v1142_v6 = vpop.f32.mrf.mxu0 }
 0x10a   : > { %v1155_v7 = vadd.f32 %v1139_v8, %v1057_v34 }
 0x10c   : > { %v1171_v37 = vadd.f32 %v1163_v13, %v1155_v7 }
 0x10d   : > { %v946_v14 = vpop.f32.mrf.mxu2 }
 0x10e   : > { %v1044_v40 = vpop.f32.mrf.mxu3  ;;  %1179 = vst.msk [vmem:[%s1748_s30 + $0x18] sm:$0xff] %vm371_vm1, %v1171_v37  ;;  %v960_v49 = vadd.f32 %v946_v14, %v861_v48  ;;  %v849_v57 = vpop.f32.mrf.mxu1 }
 0x10f   : > { %v862_v56 = vadd.f32 %v849_v57, %v764_v54 }
 0x110   : > { %v1058_v51 = vadd.f32 %v1044_v40, %v960_v49 }
 0x111   : > { %v1144_v50 = vpop.f32.mrf.mxu0 }
 0x112   : > { %v1156_v2 = vadd.f32 %v1142_v6, %v1058_v51 }
 0x114   : > { %v1172_v55 = vadd.f32 %v1164_v17, %v1156_v2 }
 0x115   : > { %v948_v18 = vpop.f32.mrf.mxu2 }
 0x116   : > { %v1046_v59 = vpop.f32.mrf.mxu3  ;;  %1180 = vst.msk [vmem:[%s1748_s30 + $0x20] sm:$0xff] %vm371_vm1, %v1172_v55  ;;  %v961_v28 = vadd.f32 %v948_v18, %v862_v56  ;;  %v852_v53 = vpop.f32.mrf.mxu1 }
 0x117   : > { %v863_v62 = vadd.f32 %v852_v53, %v765_v60 }
 0x118   : > { %v1059_v21 = vadd.f32 %v1046_v59, %v961_v28 }
 0x119   : > { %v1147_v22 = vpop.f32.mrf.mxu0 }
 0x11a   : > { %v1157_v39 = vadd.f32 %v1144_v50, %v1059_v21 }
 0x11c   : > { %v1173_v61 = vadd.f32 %v1165_v38, %v1157_v39 }
 0x11d   : > { %v951_v63 = vpop.f32.mrf.mxu2 }
 0x11e   : > { %v1049_v31 = vpop.f32.mrf.mxu3  ;;  %1181 = vst.msk [vmem:[%s1748_s30 + $0x28] sm:$0xff] %vm371_vm1, %v1173_v61  ;;  %v962_v43 = vadd.f32 %v951_v63, %v863_v62  ;;  %v854_v4 = vpop.f32.mrf.mxu1 }
 0x11f   : > { %v864_v26 = vadd.f32 %v854_v4, %v766_v25 }
 0x120   : > { %v1060_v58 = vadd.f32 %v1049_v31, %v962_v43 }
 0x121   : > { %v1149_v29 = vpop.f32.mrf.mxu0 }
 0x122   : > { %v1158_v23 = vadd.f32 %v1147_v22, %v1060_v58 }
 0x124   : > { %v1174_v20 = vadd.f32 %v1166_v32, %v1158_v23 }
 0x125   : > { %v953_v0 = vpop.f32.mrf.mxu2 }
 0x126   : > { %1182 = vst.msk [vmem:[%s1748_s30 + $0x30] sm:$0xff] %vm371_vm1, %v1174_v20  ;;  %v963_v5 = vadd.f32 %v953_v0, %v864_v26  ;;  %v1051_v8 = vpop.f32.mrf.mxu3 }
 0x128   : > { %v1061_v24 = vadd.f32 %v1051_v8, %v963_v5 }
 0x12a   : > { %v1159_v30 = vadd.f32 %v1149_v29, %v1061_v24 }
 0x12c   : > { %v1175_v35 = vadd.f32 %v1167_v1, %v1159_v30 }
 0x12e   : > { %1183 = vst.msk [vmem:[%s1748_s30 + $0x38] sm:$0xff] %vm371_vm1, %v1175_v35 }
 0x12f PF: > { %s15_s18 = sadd.s32 1, %s1377_s18  }
 0x130   : > { %p12_p5 = scmp.ge.s32.totalorder %s15_s18, 4  }
 0x132   :  { %14 = sbr.rel (!%p12_p5) target bundleno = 1 (0x1), region = 83 }

</bundles_post_ra>
